<compile_context>
chip_gen: v7x
topology: tpu7x:2x2x1
jax: 0.10.0
libtpu: 0.0.40
codegen_flags: <defaults>
</compile_context>

<pallas_src>
import functools

import jax
import jax.numpy as jnp
from jax.experimental import pallas as pl
from jax.experimental.pallas import tpu as pltpu


CP = 128                       # padded channel width -> dense 128-lane stores
DEFAULT_TM = 256               # M tile for conv matmuls (VMEM-safe on v7x)
VMEM_LIMIT = 32 * 1024 * 1024  # explicit scoped-VMEM request (<= all gens)


def _round_up(x, m):
    return (x + m - 1) // m * m


# ----------------------------- Pallas kernels ------------------------------

def _mm_bn_kernel(x_ref, w_ref, s_ref, b_ref, o_ref, *, relu):
    # (tm, K)bf16 @ (K, 128)bf16 on the MXU (f32 acc) + folded-BN affine (+ReLU).
    acc = jnp.dot(x_ref[...], w_ref[...], preferred_element_type=jnp.float32)
    acc = acc * s_ref[...] + b_ref[...]
    if relu:
        acc = jnp.maximum(acc, 0.0)
    o_ref[...] = acc.astype(o_ref.dtype)


def _mm_bn_res_kernel(x_ref, w_ref, s_ref, b_ref, r_ref, o_ref, *, relu):
    # Same, fusing the BasicBlock residual add before the ReLU (f32 epilogue).
    acc = jnp.dot(x_ref[...], w_ref[...], preferred_element_type=jnp.float32)
    acc = acc * s_ref[...] + b_ref[...] + r_ref[...].astype(jnp.float32)
    if relu:
        acc = jnp.maximum(acc, 0.0)
    o_ref[...] = acc.astype(o_ref.dtype)


def _maxpool_kernel(x0_ref, x1_ref, x2_ref, o_ref):
    # x{j}: (1, 2*Ho+2, Wo, C) = j-th W-shifted stride-2 view (-inf padded).
    # Max over the 3 W shifts, then the 3-tap H window via a leading-dim
    # reshape (rows 2ho / 2ho+1 / 2ho+2) -- no strided in-kernel loads needed.
    ho, wo, c = o_ref.shape[1], o_ref.shape[2], o_ref.shape[3]
    m = jnp.maximum(jnp.maximum(x0_ref[...], x1_ref[...]), x2_ref[...])
    r = m.reshape(ho + 1, 2, wo, c)
    o_ref[0] = jnp.maximum(jnp.maximum(r[:ho, 0], r[:ho, 1]), r[1:, 0])


def _avgpool_fc_kernel(x_ref, w_ref, b_ref, o_ref):
    # Global average pool over the spatial axis fused with the fc classifier.
    feat = jnp.mean(x_ref[...], axis=1)                       # (N, CP) f32
    o_ref[...] = (jnp.dot(feat, w_ref[...],
                          preferred_element_type=jnp.float32) + b_ref[...])


# ----------------------------- Pallas wrappers ------------------------------

def fused_matmul_bn(rows, wm, scale, bias, residual=None, relu=False,
                    tm=DEFAULT_TM):
    """relu?( (rows @ wm) * scale + bias (+ residual) ), tiled over rows."""
    M, K = rows.shape
    Kp, Op = wm.shape
    rows = rows.astype(jnp.bfloat16)
    if Kp > K:                                   # zero-pad K to the padded wm
        rows = jnp.pad(rows, ((0, 0), (0, Kp - K)))
    tm = min(tm, _round_up(M, 8))
    Mp = _round_up(M, tm)
    if Mp > M:
        rows = jnp.pad(rows, ((0, Mp - M), (0, 0)))

    in_specs = [pl.BlockSpec((tm, Kp), lambda i: (i, 0)),
                pl.BlockSpec((Kp, Op), lambda i: (0, 0)),
                pl.BlockSpec((1, Op), lambda i: (0, 0)),
                pl.BlockSpec((1, Op), lambda i: (0, 0))]
    args = [rows, wm, scale, bias]
    if residual is None:
        kernel = functools.partial(_mm_bn_kernel, relu=relu)
    else:
        kernel = functools.partial(_mm_bn_res_kernel, relu=relu)
        res = residual.astype(jnp.float32)
        if Mp > M:
            res = jnp.pad(res, ((0, Mp - M), (0, 0)))
        args.append(res)
        in_specs.append(pl.BlockSpec((tm, Op), lambda i: (i, 0)))

    # TODO(synk): add a K grid axis + f32 VMEM accumulator (pl.when init /
    # finalize) once the real backbone's K (up to ~4608) no longer fits a tile.
    out = pl.pallas_call(
        kernel,
        out_shape=jax.ShapeDtypeStruct((Mp, Op), jnp.float32),
        grid=(Mp // tm,),
        in_specs=in_specs,
        out_specs=pl.BlockSpec((tm, Op), lambda i: (i, 0)),
        compiler_params=pltpu.CompilerParams(
            dimension_semantics=("parallel",),
            vmem_limit_bytes=VMEM_LIMIT),
    )(*args)
    return out[:M] if Mp > M else out


def maxpool2d_3x3_s2_p1(x):
    """nn.MaxPool2d(3, stride=2, padding=1) on NHWC (channel-padded) input."""
    N, H, W, C = x.shape
    Ho = (H - 1) // 2 + 1
    Wo = (W - 1) // 2 + 1
    He = 2 * Ho + 2
    We = 2 * Wo + 2
    xp = jnp.pad(x, ((0, 0), (1, He - H - 1), (1, We - W - 1), (0, 0)),
                 constant_values=-jnp.inf)
    # 3 W-shifted stride-2 views (XLA); the H window is handled in-kernel.
    views = [xp[:, :, j:j + 2 * Wo:2, :] for j in range(3)]
    return pl.pallas_call(
        _maxpool_kernel,
        out_shape=jax.ShapeDtypeStruct((N, Ho, Wo, C), x.dtype),
        grid=(N,),
        in_specs=[pl.BlockSpec((1, He, Wo, C), lambda n: (n, 0, 0, 0))
                  for _ in range(3)],
        out_specs=pl.BlockSpec((1, Ho, Wo, C), lambda n: (n, 0, 0, 0)),
        compiler_params=pltpu.CompilerParams(
            dimension_semantics=("parallel",),
            vmem_limit_bytes=VMEM_LIMIT),
    )(*views)


def avgpool_fc(h, w_fc, b_fc):
    """AdaptiveAvgPool2d((1,1)) + flatten + fc classifier, fused in one kernel."""
    N, H, W, C = h.shape
    x = h.reshape(N, H * W, C)
    ncp = w_fc.shape[1]
    return pl.pallas_call(
        _avgpool_fc_kernel,
        out_shape=jax.ShapeDtypeStruct((N, ncp), jnp.float32),
        grid=(1,),
        in_specs=[pl.BlockSpec((N, H * W, C), lambda i: (0, 0, 0)),
                  pl.BlockSpec((C, ncp), lambda i: (0, 0)),
                  pl.BlockSpec((1, ncp), lambda i: (0, 0))],
        out_specs=pl.BlockSpec((N, ncp), lambda i: (0, 0)),
        compiler_params=pltpu.CompilerParams(
            dimension_semantics=("arbitrary",),
            vmem_limit_bytes=VMEM_LIMIT),
    )(x, w_fc, b_fc)


# ------------------------------ conv glue -----------------------------------

def _im2col_nhwc(x, kh, kw, stride, pad):
    """NHWC -> bf16 rows (N*Ho*Wo, kh*kw*C); feature order (i, j, c) matches
    the prepared weight layout."""
    # TODO(synk): move the window extraction inside the matmul kernel (strided
    # loads over an NHWC spatial tile) to remove this HBM im2col intermediate.
    N, H, W, C = x.shape
    xb = x.astype(jnp.bfloat16)
    xp = jnp.pad(xb, ((0, 0), (pad, pad), (pad, pad), (0, 0)))
    Ho = (H + 2 * pad - kh) // stride + 1
    Wo = (W + 2 * pad - kw) // stride + 1
    cols = [xp[:, i:i + stride * Ho:stride, j:j + stride * Wo:stride, :]
            for i in range(kh) for j in range(kw)]
    rows = jnp.concatenate(cols, axis=-1).reshape(N * Ho * Wo, kh * kw * C)
    return rows, Ho, Wo


def conv_bn(x, layer, *, relu, residual=None):
    """Conv2d(bias=False) + BatchNorm2d(eval) [+ residual] [+ ReLU], NHWC->NHWC.

    The residual (when given) is consumed tile-by-tile in the same matmul pass.
    TODO(synk): keep the residual VMEM-resident across both convs of a
    BasicBlock (would require fusing the two convs into one pallas_call).
    """
    N = x.shape[0]
    rows, Ho, Wo = _im2col_nhwc(x, layer['kh'], layer['kw'],
                                layer['stride'], layer['pad'])
    res_rows = None
    if residual is not None:
        res_rows = residual.reshape(N * Ho * Wo, residual.shape[-1])
    out = fused_matmul_bn(rows, layer['wm'], layer['scale'], layer['bias'],
                          residual=res_rows, relu=relu)
    return out.reshape(N, Ho, Wo, CP)


# ------------------------------- parameters ---------------------------------

def make_params(key, num_classes=10):
    ks = list(jax.random.split(key, 40))
    it = iter(ks)

    def w(shape, s=0.1):
        return s * jax.random.normal(next(it), shape, jnp.float32)

    def bn(c):
        return dict(
            gamma=1.0 + 0.1 * jax.random.normal(next(it), (c,), jnp.float32),
            beta=0.1 * jax.random.normal(next(it), (c,), jnp.float32),
            mean=0.1 * jax.random.normal(next(it), (c,), jnp.float32),
            var=1.0 + 0.1 * jax.random.uniform(next(it), (c,), jnp.float32))

    p = {}
    p['conv1_w'] = w((8, 3, 7, 7));      p['bn1'] = bn(8)
    p['l1_conv1_w'] = w((8, 8, 3, 3));   p['l1_bn1'] = bn(8)
    p['l1_conv2_w'] = w((8, 8, 3, 3));   p['l1_bn2'] = bn(8)
    p['l2_conv1_w'] = w((16, 8, 3, 3));  p['l2_bn1'] = bn(16)
    p['l2_conv2_w'] = w((16, 16, 3, 3)); p['l2_bn2'] = bn(16)
    p['l2_down_w'] = w((16, 8, 1, 1));   p['l2_down_bn'] = bn(16)
    # hidden_dim = 16 (ssl_model.base_encoder.backbone.fc[0].weight.shape[1])
    p['fc_w'] = w((num_classes, 16))     # PyTorch Linear: (out, in)
    p['fc_b'] = w((num_classes,))
    return p


def _prep_conv(w, bn, *, stride, pad, cin_pad, eps=1e-5):
    """Fold BN and pre-pad the conv weight to a lane-dense (Kp, 128) bf16
    matmul operand in (i, j, c) feature order (matches _im2col_nhwc)."""
    O, C, kh, kw = w.shape
    wm = jnp.transpose(w, (2, 3, 1, 0))                        # (kh, kw, C, O)
    wm = jnp.pad(wm, ((0, 0), (0, 0), (0, cin_pad - C), (0, CP - O)))
    K = kh * kw * cin_pad
    Kp = _round_up(K, 128)
    wm = jnp.pad(wm.reshape(K, CP), ((0, Kp - K), (0, 0))).astype(jnp.bfloat16)
    scale = bn['gamma'] / jnp.sqrt(bn['var'] + eps)
    bias = bn['beta'] - bn['mean'] * scale
    scale = jnp.pad(scale, (0, CP - O)).reshape(1, CP).astype(jnp.float32)
    bias = jnp.pad(bias, (0, CP - O)).reshape(1, CP).astype(jnp.float32)
    return dict(wm=wm, scale=scale, bias=bias,
                stride=stride, pad=pad, kh=kh, kw=kw)


def prepare_params(p):
    """Precompute folded / channel-padded Pallas-side parameters (one time)."""
    num_classes, hidden = p['fc_w'].shape
    ncp = _round_up(num_classes, 128)
    return {
        'stem': _prep_conv(p['conv1_w'], p['bn1'], stride=2, pad=3, cin_pad=3),
        'l1c1': _prep_conv(p['l1_conv1_w'], p['l1_bn1'], stride=1, pad=1,
                           cin_pad=CP),
        'l1c2': _prep_conv(p['l1_conv2_w'], p['l1_bn2'], stride=1, pad=1,
                           cin_pad=CP),
        'l2down': _prep_conv(p['l2_down_w'], p['l2_down_bn'], stride=2, pad=0,
                             cin_pad=CP),
        'l2c1': _prep_conv(p['l2_conv1_w'], p['l2_bn1'], stride=2, pad=1,
                           cin_pad=CP),
        'l2c2': _prep_conv(p['l2_conv2_w'], p['l2_bn2'], stride=1, pad=1,
                           cin_pad=CP),
        'fc_w': jnp.pad(p['fc_w'].T.astype(jnp.float32),
                        ((0, CP - hidden), (0, ncp - num_classes))),
        'fc_b': jnp.pad(p['fc_b'].astype(jnp.float32),
                        (0, ncp - num_classes)).reshape(1, ncp),
        'num_classes': num_classes,
    }


# ------------------------------- the model ----------------------------------

def moco_resnet_classifier_forward(p, x):
    """x: NCHW float32 (PyTorch layout); returns (N, num_classes) logits."""
    h = jnp.transpose(x, (0, 2, 3, 1))            # NCHW -> NHWC, once
    # stem
    h = conv_bn(h, p['stem'], relu=True)
    h = maxpool2d_3x3_s2_p1(h)
    # layer1: BasicBlock(8 -> 8, stride 1)
    idn = h
    o = conv_bn(h, p['l1c1'], relu=True)
    h = conv_bn(o, p['l1c2'], relu=True, residual=idn)
    # layer2: BasicBlock(8 -> 16, stride 2) with 1x1 downsample shortcut
    idn = conv_bn(h, p['l2down'], relu=False)
    o = conv_bn(h, p['l2c1'], relu=True)
    h = conv_bn(o, p['l2c2'], relu=True, residual=idn)
    # head: global avg pool + fc (the replaced nn.Linear classifier), fused
    logits = avgpool_fc(h, p['fc_w'], p['fc_b'])
    return logits[:, :p['num_classes']]


# --------------------------- pure-JAX reference ------------------------------

def reference_forward(p, x):
    def conv(x, w, stride, pad):
        return jax.lax.conv_general_dilated(
            x, w, (stride, stride), [(pad, pad), (pad, pad)],
            dimension_numbers=('NCHW', 'OIHW', 'NCHW'))

    def bn(x, b):
        s = b['gamma'] / jnp.sqrt(b['var'] + 1e-5)
        return (x * s[None, :, None, None]
                + (b['beta'] - b['mean'] * s)[None, :, None, None])

    h = jax.nn.relu(bn(conv(x, p['conv1_w'], 2, 3), p['bn1']))
    h = jax.lax.reduce_window(h, -jnp.inf, jax.lax.max, (1, 1, 3, 3),
                              (1, 1, 2, 2),
                              [(0, 0), (0, 0), (1, 1), (1, 1)])
    idn = h
    o = jax.nn.relu(bn(conv(h, p['l1_conv1_w'], 1, 1), p['l1_bn1']))
    h = jax.nn.relu(bn(conv(o, p['l1_conv2_w'], 1, 1), p['l1_bn2']) + idn)
    idn = bn(conv(h, p['l2_down_w'], 2, 0), p['l2_down_bn'])
    o = jax.nn.relu(bn(conv(h, p['l2_conv1_w'], 2, 1), p['l2_bn1']))
    h = jax.nn.relu(bn(conv(o, p['l2_conv2_w'], 1, 1), p['l2_bn2']) + idn)
    feat = jnp.mean(h, axis=(2, 3))
    return feat @ p['fc_w'].T + p['fc_b']


if __name__ == "__main__":
    key = jax.random.PRNGKey(0)
    pkey, xkey = jax.random.split(key)
    raw = make_params(pkey, num_classes=10)
    params = prepare_params(raw)
    x = jax.random.normal(xkey, (2, 3, 32, 32), jnp.float32)

    fwd = jax.jit(functools.partial(moco_resnet_classifier_forward, params))
    logits = jax.block_until_ready(fwd(x))
    ref = jax.block_until_ready(reference_forward(raw, x))

    assert logits.shape == (2, 10), logits.shape
    assert bool(jnp.all(jnp.isfinite(logits)))
    # bf16 MXU inputs (per perf review) => compare against the f32 reference
    # with a bf16-level tolerance; observed error is well below this bound.
    assert bool(jnp.allclose(logits, ref, atol=5e-2, rtol=5e-2)), (logits, ref)
    print("KERNEL_OK")
</pallas_src>

<mosaic_0001>
module attributes {stable_mosaic.version = 11 : i64} {
  func.func @_mm_bn_kernel(%arg0: i32, %arg1: memref<256x256xbf16, #tpu.memory_space<vmem>>, %arg2: memref<256x128xbf16, #tpu.memory_space<vmem>>, %arg3: memref<1x128xf32, #tpu.memory_space<vmem>>, %arg4: memref<1x128xf32, #tpu.memory_space<vmem>>, %arg5: memref<256x128xf32, #tpu.memory_space<vmem>>) attributes {dimension_semantics = [#tpu.dimension_semantics<parallel>], iteration_bounds = array<i64: 2>, scalar_prefetch = 0 : i64, scratch_operands = 0 : i64, tpu.core_type = #tpu.core_type<tc>, window_params = [{transform_indices = @transform_0, window_bounds = array<i64: 256, 256>}, {pipeline_mode = #tpu.pipeline_mode<synchronous>, transform_indices = @transform_1, window_bounds = array<i64: 256, 128>}, {pipeline_mode = #tpu.pipeline_mode<synchronous>, transform_indices = @transform_2, window_bounds = array<i64: 1, 128>}, {pipeline_mode = #tpu.pipeline_mode<synchronous>, transform_indices = @transform_3, window_bounds = array<i64: 1, 128>}, {transform_indices = @transform_4, window_bounds = array<i64: 256, 128>}]} {
    %c0 = arith.constant 0 : index
    %c0_0 = arith.constant 0 : index
    %0 = vector.load %arg1[%c0, %c0_0] : memref<256x256xbf16, #tpu.memory_space<vmem>>, vector<256x256xbf16>
    %c0_1 = arith.constant 0 : index
    %c0_2 = arith.constant 0 : index
    %1 = vector.load %arg2[%c0_1, %c0_2] : memref<256x128xbf16, #tpu.memory_space<vmem>>, vector<256x128xbf16>
    %cst = arith.constant dense<0.000000e+00> : vector<256x128xf32>
    %2 = tpu.matmul %0, %1, %cst {dimension_numbers = #tpu.dot_dimension_numbers<[1], [0], [0], [1], [0, 0, 1, 1], [], []>} : vector<256x256xbf16>, vector<256x128xbf16>, vector<256x128xf32> -> vector<256x128xf32>
    %c0_3 = arith.constant 0 : index
    %c0_4 = arith.constant 0 : index
    %3 = vector.load %arg3[%c0_3, %c0_4] : memref<1x128xf32, #tpu.memory_space<vmem>>, vector<1x128xf32>
    %4 = vector.broadcast %3 : vector<1x128xf32> to vector<256x128xf32>
    %5 = arith.mulf %2, %4 : vector<256x128xf32>
    %c0_5 = arith.constant 0 : index
    %c0_6 = arith.constant 0 : index
    %6 = vector.load %arg4[%c0_5, %c0_6] : memref<1x128xf32, #tpu.memory_space<vmem>>, vector<1x128xf32>
    %7 = vector.broadcast %6 : vector<1x128xf32> to vector<256x128xf32>
    %8 = arith.addf %5, %7 : vector<256x128xf32>
    %cst_7 = arith.constant 0.000000e+00 : f32
    %9 = vector.broadcast %cst_7 : f32 to vector<256x128xf32>
    %10 = arith.maximumf %8, %9 : vector<256x128xf32>
    %c0_8 = arith.constant 0 : index
    %c0_9 = arith.constant 0 : index
    %11 = vector.load %arg5[%c0_8, %c0_9] : memref<256x128xf32, #tpu.memory_space<vmem>>, vector<256x128xf32>
    tpu.vector_store %arg5[%c0_8, %c0_9], %10 {strides = array<i32>} : memref<256x128xf32, #tpu.memory_space<vmem>>, vector<256x128xf32>,
    return
  }
  func.func @transform_0(%arg0: i32) -> (i32, i32) {
    %c0_i32 = arith.constant 0 : i32
    %c0_i32_0 = arith.constant 0 : i32
    return %arg0, %c0_i32 : i32, i32
  }
  func.func @transform_1(%arg0: i32) -> (i32, i32) {
    %c0_i32 = arith.constant 0 : i32
    %c0_i32_0 = arith.constant 0 : i32
    %c0_i32_1 = arith.constant 0 : i32
    return %c0_i32, %c0_i32_0 : i32, i32
  }
  func.func @transform_2(%arg0: i32) -> (i32, i32) {
    %c0_i32 = arith.constant 0 : i32
    %c0_i32_0 = arith.constant 0 : i32
    %c0_i32_1 = arith.constant 0 : i32
    return %c0_i32, %c0_i32_0 : i32, i32
  }
  func.func @transform_3(%arg0: i32) -> (i32, i32) {
    %c0_i32 = arith.constant 0 : i32
    %c0_i32_0 = arith.constant 0 : i32
    %c0_i32_1 = arith.constant 0 : i32
    return %c0_i32, %c0_i32_0 : i32, i32
  }
  func.func @transform_4(%arg0: i32) -> (i32, i32) {
    %c0_i32 = arith.constant 0 : i32
    %c0_i32_0 = arith.constant 0 : i32
    return %arg0, %c0_i32 : i32, i32
  }
}

module attributes {stable_mosaic.version = 11 : i64} {
  func.func @_maxpool_kernel(%arg0: i32, %arg1: memref<1x18x8x128xf32, #tpu.memory_space<vmem>>, %arg2: memref<1x18x8x128xf32, #tpu.memory_space<vmem>>, %arg3: memref<1x18x8x128xf32, #tpu.memory_space<vmem>>, %arg4: memref<1x8x8x128xf32, #tpu.memory_space<vmem>>) attributes {dimension_semantics = [#tpu.dimension_semantics<parallel>], iteration_bounds = array<i64: 2>, scalar_prefetch = 0 : i64, scratch_operands = 0 : i64, tpu.core_type = #tpu.core_type<tc>, window_params = [{transform_indices = @transform_0, window_bounds = array<i64: 1, 18, 8, 128>}, {transform_indices = @transform_1, window_bounds = array<i64: 1, 18, 8, 128>}, {transform_indices = @transform_2, window_bounds = array<i64: 1, 18, 8, 128>}, {transform_indices = @transform_3, window_bounds = array<i64: 1, 8, 8, 128>}]} {
    %c0 = arith.constant 0 : index
    %c0_0 = arith.constant 0 : index
    %c0_1 = arith.constant 0 : index
    %c0_2 = arith.constant 0 : index
    %0 = vector.load %arg1[%c0, %c0_0, %c0_1, %c0_2] : memref<1x18x8x128xf32, #tpu.memory_space<vmem>>, vector<1x18x8x128xf32>
    %c0_3 = arith.constant 0 : index
    %c0_4 = arith.constant 0 : index
    %c0_5 = arith.constant 0 : index
    %c0_6 = arith.constant 0 : index
    %1 = vector.load %arg2[%c0_3, %c0_4, %c0_5, %c0_6] : memref<1x18x8x128xf32, #tpu.memory_space<vmem>>, vector<1x18x8x128xf32>
    %2 = arith.maximumf %0, %1 : vector<1x18x8x128xf32>
    %c0_7 = arith.constant 0 : index
    %c0_8 = arith.constant 0 : index
    %c0_9 = arith.constant 0 : index
    %c0_10 = arith.constant 0 : index
    %3 = vector.load %arg3[%c0_7, %c0_8, %c0_9, %c0_10] : memref<1x18x8x128xf32, #tpu.memory_space<vmem>>, vector<1x18x8x128xf32>
    %4 = arith.maximumf %2, %3 : vector<1x18x8x128xf32>
    %5 = vector.shape_cast %4 : vector<1x18x8x128xf32> to vector<9x2x8x128xf32>
    %6 = vector.extract_strided_slice %5 {offsets = [0, 0, 0, 0], sizes = [8, 1, 8, 128], strides = [1, 1, 1, 1]} : vector<9x2x8x128xf32> to vector<8x1x8x128xf32>
    %7 = vector.shape_cast %6 : vector<8x1x8x128xf32> to vector<8x8x128xf32>
    %8 = vector.extract_strided_slice %5 {offsets = [0, 1, 0, 0], sizes = [8, 1, 8, 128], strides = [1, 1, 1, 1]} : vector<9x2x8x128xf32> to vector<8x1x8x128xf32>
    %9 = vector.shape_cast %8 : vector<8x1x8x128xf32> to vector<8x8x128xf32>
    %10 = arith.maximumf %7, %9 : vector<8x8x128xf32>
    %11 = vector.extract_strided_slice %5 {offsets = [1, 0, 0, 0], sizes = [8, 1, 8, 128], strides = [1, 1, 1, 1]} : vector<9x2x8x128xf32> to vector<8x1x8x128xf32>
    %12 = vector.shape_cast %11 : vector<8x1x8x128xf32> to vector<8x8x128xf32>
    %13 = arith.maximumf %10, %12 : vector<8x8x128xf32>
    %c0_11 = arith.constant 0 : index
    %c0_12 = arith.constant 0 : index
    %c0_13 = arith.constant 0 : index
    %c0_14 = arith.constant 0 : index
    %14 = vector.load %arg4[%c0_11, %c0_12, %c0_13, %c0_14] : memref<1x8x8x128xf32, #tpu.memory_space<vmem>>, vector<1x8x8x128xf32>
    %15 = vector.shape_cast %14 : vector<1x8x8x128xf32> to vector<8x8x128xf32>
    %16 = vector.shape_cast %13 : vector<8x8x128xf32> to vector<1x8x8x128xf32>
    tpu.vector_store %arg4[%c0_11, %c0_12, %c0_13, %c0_14], %16 {strides = array<i32>} : memref<1x8x8x128xf32, #tpu.memory_space<vmem>>, vector<1x8x8x128xf32>,
    return
  }
  func.func @transform_0(%arg0: i32) -> (i32, i32, i32, i32) {
    %c0_i32 = arith.constant 0 : i32
    %c0_i32_0 = arith.constant 0 : i32
    %c0_i32_1 = arith.constant 0 : i32
    %c0_i32_2 = arith.constant 0 : i32
    return %arg0, %c0_i32, %c0_i32_0, %c0_i32_1 : i32, i32, i32, i32
  }
  func.func @transform_1(%arg0: i32) -> (i32, i32, i32, i32) {
    %c0_i32 = arith.constant 0 : i32
    %c0_i32_0 = arith.constant 0 : i32
    %c0_i32_1 = arith.constant 0 : i32
    %c0_i32_2 = arith.constant 0 : i32
    return %arg0, %c0_i32, %c0_i32_0, %c0_i32_1 : i32, i32, i32, i32
  }
  func.func @transform_2(%arg0: i32) -> (i32, i32, i32, i32) {
    %c0_i32 = arith.constant 0 : i32
    %c0_i32_0 = arith.constant 0 : i32
    %c0_i32_1 = arith.constant 0 : i32
    %c0_i32_2 = arith.constant 0 : i32
    return %arg0, %c0_i32, %c0_i32_0, %c0_i32_1 : i32, i32, i32, i32
  }
  func.func @transform_3(%arg0: i32) -> (i32, i32, i32, i32) {
    %c0_i32 = arith.constant 0 : i32
    %c0_i32_0 = arith.constant 0 : i32
    %c0_i32_1 = arith.constant 0 : i32
    %c0_i32_2 = arith.constant 0 : i32
    return %arg0, %c0_i32, %c0_i32_0, %c0_i32_1 : i32, i32, i32, i32
  }
}

module attributes {stable_mosaic.version = 11 : i64} {
  func.func @_mm_bn_kernel(%arg0: i32, %arg1: memref<128x1152xbf16, #tpu.memory_space<vmem>>, %arg2: memref<1152x128xbf16, #tpu.memory_space<vmem>>, %arg3: memref<1x128xf32, #tpu.memory_space<vmem>>, %arg4: memref<1x128xf32, #tpu.memory_space<vmem>>, %arg5: memref<128x128xf32, #tpu.memory_space<vmem>>) attributes {dimension_semantics = [#tpu.dimension_semantics<parallel>], iteration_bounds = array<i64: 1>, scalar_prefetch = 0 : i64, scratch_operands = 0 : i64, tpu.core_type = #tpu.core_type<tc>, window_params = [{transform_indices = @transform_0, window_bounds = array<i64: 128, 1152>}, {pipeline_mode = #tpu.pipeline_mode<synchronous>, transform_indices = @transform_1, window_bounds = array<i64: 1152, 128>}, {pipeline_mode = #tpu.pipeline_mode<synchronous>, transform_indices = @transform_2, window_bounds = array<i64: 1, 128>}, {pipeline_mode = #tpu.pipeline_mode<synchronous>, transform_indices = @transform_3, window_bounds = array<i64: 1, 128>}, {transform_indices = @transform_4, window_bounds = array<i64: 128, 128>}]} {
    %c0 = arith.constant 0 : index
    %c0_0 = arith.constant 0 : index
    %0 = vector.load %arg1[%c0, %c0_0] : memref<128x1152xbf16, #tpu.memory_space<vmem>>, vector<128x1152xbf16>
    %c0_1 = arith.constant 0 : index
    %c0_2 = arith.constant 0 : index
    %1 = vector.load %arg2[%c0_1, %c0_2] : memref<1152x128xbf16, #tpu.memory_space<vmem>>, vector<1152x128xbf16>
    %cst = arith.constant dense<0.000000e+00> : vector<128x128xf32>
    %2 = tpu.matmul %0, %1, %cst {dimension_numbers = #tpu.dot_dimension_numbers<[1], [0], [0], [1], [0, 0, 1, 1], [], []>} : vector<128x1152xbf16>, vector<1152x128xbf16>, vector<128x128xf32> -> vector<128x128xf32>
    %c0_3 = arith.constant 0 : index
    %c0_4 = arith.constant 0 : index
    %3 = vector.load %arg3[%c0_3, %c0_4] : memref<1x128xf32, #tpu.memory_space<vmem>>, vector<1x128xf32>
    %4 = vector.broadcast %3 : vector<1x128xf32> to vector<128x128xf32>
    %5 = arith.mulf %2, %4 : vector<128x128xf32>
    %c0_5 = arith.constant 0 : index
    %c0_6 = arith.constant 0 : index
    %6 = vector.load %arg4[%c0_5, %c0_6] : memref<1x128xf32, #tpu.memory_space<vmem>>, vector<1x128xf32>
    %7 = vector.broadcast %6 : vector<1x128xf32> to vector<128x128xf32>
    %8 = arith.addf %5, %7 : vector<128x128xf32>
    %cst_7 = arith.constant 0.000000e+00 : f32
    %9 = vector.broadcast %cst_7 : f32 to vector<128x128xf32>
    %10 = arith.maximumf %8, %9 : vector<128x128xf32>
    %c0_8 = arith.constant 0 : index
    %c0_9 = arith.constant 0 : index
    %11 = vector.load %arg5[%c0_8, %c0_9] : memref<128x128xf32, #tpu.memory_space<vmem>>, vector<128x128xf32>
    tpu.vector_store %arg5[%c0_8, %c0_9], %10 {strides = array<i32>} : memref<128x128xf32, #tpu.memory_space<vmem>>, vector<128x128xf32>,
    return
  }
  func.func @transform_0(%arg0: i32) -> (i32, i32) {
    %c0_i32 = arith.constant 0 : i32
    %c0_i32_0 = arith.constant 0 : i32
    return %arg0, %c0_i32 : i32, i32
  }
  func.func @transform_1(%arg0: i32) -> (i32, i32) {
    %c0_i32 = arith.constant 0 : i32
    %c0_i32_0 = arith.constant 0 : i32
    %c0_i32_1 = arith.constant 0 : i32
    return %c0_i32, %c0_i32_0 : i32, i32
  }
  func.func @transform_2(%arg0: i32) -> (i32, i32) {
    %c0_i32 = arith.constant 0 : i32
    %c0_i32_0 = arith.constant 0 : i32
    %c0_i32_1 = arith.constant 0 : i32
    return %c0_i32, %c0_i32_0 : i32, i32
  }
  func.func @transform_3(%arg0: i32) -> (i32, i32) {
    %c0_i32 = arith.constant 0 : i32
    %c0_i32_0 = arith.constant 0 : i32
    %c0_i32_1 = arith.constant 0 : i32
    return %c0_i32, %c0_i32_0 : i32, i32
  }
  func.func @transform_4(%arg0: i32) -> (i32, i32) {
    %c0_i32 = arith.constant 0 : i32
    %c0_i32_0 = arith.constant 0 : i32
    return %arg0, %c0_i32 : i32, i32
  }
}

module attributes {stable_mosaic.version = 11 : i64} {
  func.func @_mm_bn_res_kernel(%arg0: i32, %arg1: memref<128x1152xbf16, #tpu.memory_space<vmem>>, %arg2: memref<1152x128xbf16, #tpu.memory_space<vmem>>, %arg3: memref<1x128xf32, #tpu.memory_space<vmem>>, %arg4: memref<1x128xf32, #tpu.memory_space<vmem>>, %arg5: memref<128x128xf32, #tpu.memory_space<vmem>>, %arg6: memref<128x128xf32, #tpu.memory_space<vmem>>) attributes {dimension_semantics = [#tpu.dimension_semantics<parallel>], iteration_bounds = array<i64: 1>, scalar_prefetch = 0 : i64, scratch_operands = 0 : i64, tpu.core_type = #tpu.core_type<tc>, window_params = [{transform_indices = @transform_0, window_bounds = array<i64: 128, 1152>}, {pipeline_mode = #tpu.pipeline_mode<synchronous>, transform_indices = @transform_1, window_bounds = array<i64: 1152, 128>}, {pipeline_mode = #tpu.pipeline_mode<synchronous>, transform_indices = @transform_2, window_bounds = array<i64: 1, 128>}, {pipeline_mode = #tpu.pipeline_mode<synchronous>, transform_indices = @transform_3, window_bounds = array<i64: 1, 128>}, {transform_indices = @transform_4, window_bounds = array<i64: 128, 128>}, {transform_indices = @transform_5, window_bounds = array<i64: 128, 128>}]} {
    %c0 = arith.constant 0 : index
    %c0_0 = arith.constant 0 : index
    %0 = vector.load %arg1[%c0, %c0_0] : memref<128x1152xbf16, #tpu.memory_space<vmem>>, vector<128x1152xbf16>
    %c0_1 = arith.constant 0 : index
    %c0_2 = arith.constant 0 : index
    %1 = vector.load %arg2[%c0_1, %c0_2] : memref<1152x128xbf16, #tpu.memory_space<vmem>>, vector<1152x128xbf16>
    %cst = arith.constant dense<0.000000e+00> : vector<128x128xf32>
    %2 = tpu.matmul %0, %1, %cst {dimension_numbers = #tpu.dot_dimension_numbers<[1], [0], [0], [1], [0, 0, 1, 1], [], []>} : vector<128x1152xbf16>, vector<1152x128xbf16>, vector<128x128xf32> -> vector<128x128xf32>
    %c0_3 = arith.constant 0 : index
    %c0_4 = arith.constant 0 : index
    %3 = vector.load %arg3[%c0_3, %c0_4] : memref<1x128xf32, #tpu.memory_space<vmem>>, vector<1x128xf32>
    %4 = vector.broadcast %3 : vector<1x128xf32> to vector<128x128xf32>
    %5 = arith.mulf %2, %4 : vector<128x128xf32>
    %c0_5 = arith.constant 0 : index
    %c0_6 = arith.constant 0 : index
    %6 = vector.load %arg4[%c0_5, %c0_6] : memref<1x128xf32, #tpu.memory_space<vmem>>, vector<1x128xf32>
    %7 = vector.broadcast %6 : vector<1x128xf32> to vector<128x128xf32>
    %8 = arith.addf %5, %7 : vector<128x128xf32>
    %c0_7 = arith.constant 0 : index
    %c0_8 = arith.constant 0 : index
    %9 = vector.load %arg5[%c0_7, %c0_8] : memref<128x128xf32, #tpu.memory_space<vmem>>, vector<128x128xf32>
    %10 = arith.addf %8, %9 : vector<128x128xf32>
    %cst_9 = arith.constant 0.000000e+00 : f32
    %11 = vector.broadcast %cst_9 : f32 to vector<128x128xf32>
    %12 = arith.maximumf %10, %11 : vector<128x128xf32>
    %c0_10 = arith.constant 0 : index
    %c0_11 = arith.constant 0 : index
    %13 = vector.load %arg6[%c0_10, %c0_11] : memref<128x128xf32, #tpu.memory_space<vmem>>, vector<128x128xf32>
    tpu.vector_store %arg6[%c0_10, %c0_11], %12 {strides = array<i32>} : memref<128x128xf32, #tpu.memory_space<vmem>>, vector<128x128xf32>,
    return
  }
  func.func @transform_0(%arg0: i32) -> (i32, i32) {
    %c0_i32 = arith.constant 0 : i32
    %c0_i32_0 = arith.constant 0 : i32
    return %arg0, %c0_i32 : i32, i32
  }
  func.func @transform_1(%arg0: i32) -> (i32, i32) {
    %c0_i32 = arith.constant 0 : i32
    %c0_i32_0 = arith.constant 0 : i32
    %c0_i32_1 = arith.constant 0 : i32
    return %c0_i32, %c0_i32_0 : i32, i32
  }
  func.func @transform_2(%arg0: i32) -> (i32, i32) {
    %c0_i32 = arith.constant 0 : i32
    %c0_i32_0 = arith.constant 0 : i32
    %c0_i32_1 = arith.constant 0 : i32
    return %c0_i32, %c0_i32_0 : i32, i32
  }
  func.func @transform_3(%arg0: i32) -> (i32, i32) {
    %c0_i32 = arith.constant 0 : i32
    %c0_i32_0 = arith.constant 0 : i32
    %c0_i32_1 = arith.constant 0 : i32
    return %c0_i32, %c0_i32_0 : i32, i32
  }
  func.func @transform_4(%arg0: i32) -> (i32, i32) {
    %c0_i32 = arith.constant 0 : i32
    %c0_i32_0 = arith.constant 0 : i32
    return %arg0, %c0_i32 : i32, i32
  }
  func.func @transform_5(%arg0: i32) -> (i32, i32) {
    %c0_i32 = arith.constant 0 : i32
    %c0_i32_0 = arith.constant 0 : i32
    return %arg0, %c0_i32 : i32, i32
  }
}

module attributes {stable_mosaic.version = 11 : i64} {
  func.func @_mm_bn_kernel(%arg0: i32, %arg1: memref<32x128xbf16, #tpu.memory_space<vmem>>, %arg2: memref<128x128xbf16, #tpu.memory_space<vmem>>, %arg3: memref<1x128xf32, #tpu.memory_space<vmem>>, %arg4: memref<1x128xf32, #tpu.memory_space<vmem>>, %arg5: memref<32x128xf32, #tpu.memory_space<vmem>>) attributes {dimension_semantics = [#tpu.dimension_semantics<parallel>], iteration_bounds = array<i64: 1>, scalar_prefetch = 0 : i64, scratch_operands = 0 : i64, tpu.core_type = #tpu.core_type<tc>, window_params = [{transform_indices = @transform_0, window_bounds = array<i64: 32, 128>}, {pipeline_mode = #tpu.pipeline_mode<synchronous>, transform_indices = @transform_1, window_bounds = array<i64: 128, 128>}, {pipeline_mode = #tpu.pipeline_mode<synchronous>, transform_indices = @transform_2, window_bounds = array<i64: 1, 128>}, {pipeline_mode = #tpu.pipeline_mode<synchronous>, transform_indices = @transform_3, window_bounds = array<i64: 1, 128>}, {transform_indices = @transform_4, window_bounds = array<i64: 32, 128>}]} {
    %c0 = arith.constant 0 : index
    %c0_0 = arith.constant 0 : index
    %0 = vector.load %arg1[%c0, %c0_0] : memref<32x128xbf16, #tpu.memory_space<vmem>>, vector<32x128xbf16>
    %c0_1 = arith.constant 0 : index
    %c0_2 = arith.constant 0 : index
    %1 = vector.load %arg2[%c0_1, %c0_2] : memref<128x128xbf16, #tpu.memory_space<vmem>>, vector<128x128xbf16>
    %cst = arith.constant dense<0.000000e+00> : vector<32x128xf32>
    %2 = tpu.matmul %0, %1, %cst {dimension_numbers = #tpu.dot_dimension_numbers<[1], [0], [0], [1], [0, 0, 1, 1], [], []>} : vector<32x128xbf16>, vector<128x128xbf16>, vector<32x128xf32> -> vector<32x128xf32>
    %c0_3 = arith.constant 0 : index
    %c0_4 = arith.constant 0 : index
    %3 = vector.load %arg3[%c0_3, %c0_4] : memref<1x128xf32, #tpu.memory_space<vmem>>, vector<1x128xf32>
    %4 = vector.broadcast %3 : vector<1x128xf32> to vector<32x128xf32>
    %5 = arith.mulf %2, %4 : vector<32x128xf32>
    %c0_5 = arith.constant 0 : index
    %c0_6 = arith.constant 0 : index
    %6 = vector.load %arg4[%c0_5, %c0_6] : memref<1x128xf32, #tpu.memory_space<vmem>>, vector<1x128xf32>
    %7 = vector.broadcast %6 : vector<1x128xf32> to vector<32x128xf32>
    %8 = arith.addf %5, %7 : vector<32x128xf32>
    %c0_7 = arith.constant 0 : index
    %c0_8 = arith.constant 0 : index
    %9 = vector.load %arg5[%c0_7, %c0_8] : memref<32x128xf32, #tpu.memory_space<vmem>>, vector<32x128xf32>
    tpu.vector_store %arg5[%c0_7, %c0_8], %8 {strides = array<i32>} : memref<32x128xf32, #tpu.memory_space<vmem>>, vector<32x128xf32>,
    return
  }
  func.func @transform_0(%arg0: i32) -> (i32, i32) {
    %c0_i32 = arith.constant 0 : i32
    %c0_i32_0 = arith.constant 0 : i32
    return %arg0, %c0_i32 : i32, i32
  }
  func.func @transform_1(%arg0: i32) -> (i32, i32) {
    %c0_i32 = arith.constant 0 : i32
    %c0_i32_0 = arith.constant 0 : i32
    %c0_i32_1 = arith.constant 0 : i32
    return %c0_i32, %c0_i32_0 : i32, i32
  }
  func.func @transform_2(%arg0: i32) -> (i32, i32) {
    %c0_i32 = arith.constant 0 : i32
    %c0_i32_0 = arith.constant 0 : i32
    %c0_i32_1 = arith.constant 0 : i32
    return %c0_i32, %c0_i32_0 : i32, i32
  }
  func.func @transform_3(%arg0: i32) -> (i32, i32) {
    %c0_i32 = arith.constant 0 : i32
    %c0_i32_0 = arith.constant 0 : i32
    %c0_i32_1 = arith.constant 0 : i32
    return %c0_i32, %c0_i32_0 : i32, i32
  }
  func.func @transform_4(%arg0: i32) -> (i32, i32) {
    %c0_i32 = arith.constant 0 : i32
    %c0_i32_0 = arith.constant 0 : i32
    return %arg0, %c0_i32 : i32, i32
  }
}

module attributes {stable_mosaic.version = 11 : i64} {
  func.func @_mm_bn_res_kernel(%arg0: i32, %arg1: memref<32x1152xbf16, #tpu.memory_space<vmem>>, %arg2: memref<1152x128xbf16, #tpu.memory_space<vmem>>, %arg3: memref<1x128xf32, #tpu.memory_space<vmem>>, %arg4: memref<1x128xf32, #tpu.memory_space<vmem>>, %arg5: memref<32x128xf32, #tpu.memory_space<vmem>>, %arg6: memref<32x128xf32, #tpu.memory_space<vmem>>) attributes {dimension_semantics = [#tpu.dimension_semantics<parallel>], iteration_bounds = array<i64: 1>, scalar_prefetch = 0 : i64, scratch_operands = 0 : i64, tpu.core_type = #tpu.core_type<tc>, window_params = [{transform_indices = @transform_0, window_bounds = array<i64: 32, 1152>}, {pipeline_mode = #tpu.pipeline_mode<synchronous>, transform_indices = @transform_1, window_bounds = array<i64: 1152, 128>}, {pipeline_mode = #tpu.pipeline_mode<synchronous>, transform_indices = @transform_2, window_bounds = array<i64: 1, 128>}, {pipeline_mode = #tpu.pipeline_mode<synchronous>, transform_indices = @transform_3, window_bounds = array<i64: 1, 128>}, {transform_indices = @transform_4, window_bounds = array<i64: 32, 128>}, {transform_indices = @transform_5, window_bounds = array<i64: 32, 128>}]} {
    %c0 = arith.constant 0 : index
    %c0_0 = arith.constant 0 : index
    %0 = vector.load %arg1[%c0, %c0_0] : memref<32x1152xbf16, #tpu.memory_space<vmem>>, vector<32x1152xbf16>
    %c0_1 = arith.constant 0 : index
    %c0_2 = arith.constant 0 : index
    %1 = vector.load %arg2[%c0_1, %c0_2] : memref<1152x128xbf16, #tpu.memory_space<vmem>>, vector<1152x128xbf16>
    %cst = arith.constant dense<0.000000e+00> : vector<32x128xf32>
    %2 = tpu.matmul %0, %1, %cst {dimension_numbers = #tpu.dot_dimension_numbers<[1], [0], [0], [1], [0, 0, 1, 1], [], []>} : vector<32x1152xbf16>, vector<1152x128xbf16>, vector<32x128xf32> -> vector<32x128xf32>
    %c0_3 = arith.constant 0 : index
    %c0_4 = arith.constant 0 : index
    %3 = vector.load %arg3[%c0_3, %c0_4] : memref<1x128xf32, #tpu.memory_space<vmem>>, vector<1x128xf32>
    %4 = vector.broadcast %3 : vector<1x128xf32> to vector<32x128xf32>
    %5 = arith.mulf %2, %4 : vector<32x128xf32>
    %c0_5 = arith.constant 0 : index
    %c0_6 = arith.constant 0 : index
    %6 = vector.load %arg4[%c0_5, %c0_6] : memref<1x128xf32, #tpu.memory_space<vmem>>, vector<1x128xf32>
    %7 = vector.broadcast %6 : vector<1x128xf32> to vector<32x128xf32>
    %8 = arith.addf %5, %7 : vector<32x128xf32>
    %c0_7 = arith.constant 0 : index
    %c0_8 = arith.constant 0 : index
    %9 = vector.load %arg5[%c0_7, %c0_8] : memref<32x128xf32, #tpu.memory_space<vmem>>, vector<32x128xf32>
    %10 = arith.addf %8, %9 : vector<32x128xf32>
    %cst_9 = arith.constant 0.000000e+00 : f32
    %11 = vector.broadcast %cst_9 : f32 to vector<32x128xf32>
    %12 = arith.maximumf %10, %11 : vector<32x128xf32>
    %c0_10 = arith.constant 0 : index
    %c0_11 = arith.constant 0 : index
    %13 = vector.load %arg6[%c0_10, %c0_11] : memref<32x128xf32, #tpu.memory_space<vmem>>, vector<32x128xf32>
    tpu.vector_store %arg6[%c0_10, %c0_11], %12 {strides = array<i32>} : memref<32x128xf32, #tpu.memory_space<vmem>>, vector<32x128xf32>,
    return
  }
  func.func @transform_0(%arg0: i32) -> (i32, i32) {
    %c0_i32 = arith.constant 0 : i32
    %c0_i32_0 = arith.constant 0 : i32
    return %arg0, %c0_i32 : i32, i32
  }
  func.func @transform_1(%arg0: i32) -> (i32, i32) {
    %c0_i32 = arith.constant 0 : i32
    %c0_i32_0 = arith.constant 0 : i32
    %c0_i32_1 = arith.constant 0 : i32
    return %c0_i32, %c0_i32_0 : i32, i32
  }
  func.func @transform_2(%arg0: i32) -> (i32, i32) {
    %c0_i32 = arith.constant 0 : i32
    %c0_i32_0 = arith.constant 0 : i32
    %c0_i32_1 = arith.constant 0 : i32
    return %c0_i32, %c0_i32_0 : i32, i32
  }
  func.func @transform_3(%arg0: i32) -> (i32, i32) {
    %c0_i32 = arith.constant 0 : i32
    %c0_i32_0 = arith.constant 0 : i32
    %c0_i32_1 = arith.constant 0 : i32
    return %c0_i32, %c0_i32_0 : i32, i32
  }
  func.func @transform_4(%arg0: i32) -> (i32, i32) {
    %c0_i32 = arith.constant 0 : i32
    %c0_i32_0 = arith.constant 0 : i32
    return %arg0, %c0_i32 : i32, i32
  }
  func.func @transform_5(%arg0: i32) -> (i32, i32) {
    %c0_i32 = arith.constant 0 : i32
    %c0_i32_0 = arith.constant 0 : i32
    return %arg0, %c0_i32 : i32, i32
  }
}

module attributes {stable_mosaic.version = 11 : i64} {
  func.func @_avgpool_fc_kernel(%arg0: i32, %arg1: memref<2x16x128xf32, #tpu.memory_space<vmem>>, %arg2: memref<128x128xf32, #tpu.memory_space<vmem>>, %arg3: memref<1x128xf32, #tpu.memory_space<vmem>>, %arg4: memref<2x128xf32, #tpu.memory_space<vmem>>) attributes {dimension_semantics = [#tpu.dimension_semantics<arbitrary>], iteration_bounds = array<i64: 1>, scalar_prefetch = 0 : i64, scratch_operands = 0 : i64, tpu.core_type = #tpu.core_type<tc>, window_params = [{pipeline_mode = #tpu.pipeline_mode<synchronous>, transform_indices = @transform_0, window_bounds = array<i64: 2, 16, 128>}, {pipeline_mode = #tpu.pipeline_mode<synchronous>, transform_indices = @transform_1, window_bounds = array<i64: 128, 128>}, {pipeline_mode = #tpu.pipeline_mode<synchronous>, transform_indices = @transform_2, window_bounds = array<i64: 1, 128>}, {pipeline_mode = #tpu.pipeline_mode<synchronous>, transform_indices = @transform_3, window_bounds = array<i64: 2, 128>}]} {
    %c0 = arith.constant 0 : index
    %c0_0 = arith.constant 0 : index
    %c0_1 = arith.constant 0 : index
    %0 = vector.load %arg1[%c0, %c0_0, %c0_1] : memref<2x16x128xf32, #tpu.memory_space<vmem>>, vector<2x16x128xf32>
    %cst = arith.constant dense<0.000000e+00> : vector<2x128xf32>
    %1 = vector.multi_reduction <add>, %0, %cst [1] : vector<2x16x128xf32> to vector<2x128xf32>
    %cst_2 = arith.constant 1.600000e+01 : f32
    %2 = vector.broadcast %cst_2 : f32 to vector<2x128xf32>
    %3 = arith.divf %1, %2 : vector<2x128xf32>
    %c0_3 = arith.constant 0 : index
    %c0_4 = arith.constant 0 : index
    %4 = vector.load %arg2[%c0_3, %c0_4] : memref<128x128xf32, #tpu.memory_space<vmem>>, vector<128x128xf32>
    %cst_5 = arith.constant dense<0.000000e+00> : vector<2x128xf32>
    %5 = tpu.matmul %3, %4, %cst_5 {dimension_numbers = #tpu.dot_dimension_numbers<[1], [0], [0], [1], [0, 0, 1, 1], [], []>} : vector<2x128xf32>, vector<128x128xf32>, vector<2x128xf32> -> vector<2x128xf32>
    %c0_6 = arith.constant 0 : index
    %c0_7 = arith.constant 0 : index
    %6 = vector.load %arg3[%c0_6, %c0_7] : memref<1x128xf32, #tpu.memory_space<vmem>>, vector<1x128xf32>
    %7 = vector.broadcast %6 : vector<1x128xf32> to vector<2x128xf32>
    %8 = arith.addf %5, %7 : vector<2x128xf32>
    %c0_8 = arith.constant 0 : index
    %c0_9 = arith.constant 0 : index
    %9 = vector.load %arg4[%c0_8, %c0_9] : memref<2x128xf32, #tpu.memory_space<vmem>>, vector<2x128xf32>
    tpu.vector_store %arg4[%c0_8, %c0_9], %8 {strides = array<i32>} : memref<2x128xf32, #tpu.memory_space<vmem>>, vector<2x128xf32>,
    return
  }
  func.func @transform_0(%arg0: i32) -> (i32, i32, i32) {
    %c0_i32 = arith.constant 0 : i32
    %c0_i32_0 = arith.constant 0 : i32
    %c0_i32_1 = arith.constant 0 : i32
    %c0_i32_2 = arith.constant 0 : i32
    return %c0_i32, %c0_i32_0, %c0_i32_1 : i32, i32, i32
  }
  func.func @transform_1(%arg0: i32) -> (i32, i32) {
    %c0_i32 = arith.constant 0 : i32
    %c0_i32_0 = arith.constant 0 : i32
    %c0_i32_1 = arith.constant 0 : i32
    return %c0_i32, %c0_i32_0 : i32, i32
  }
  func.func @transform_2(%arg0: i32) -> (i32, i32) {
    %c0_i32 = arith.constant 0 : i32
    %c0_i32_0 = arith.constant 0 : i32
    %c0_i32_1 = arith.constant 0 : i32
    return %c0_i32, %c0_i32_0 : i32, i32
  }
  func.func @transform_3(%arg0: i32) -> (i32, i32) {
    %c0_i32 = arith.constant 0 : i32
    %c0_i32_0 = arith.constant 0 : i32
    %c0_i32_1 = arith.constant 0 : i32
    return %c0_i32, %c0_i32_0 : i32, i32
  }
}

module attributes {stable_mosaic.version = 11 : i64} {
  func.func @_mm_bn_kernel(%arg0: i32, %arg1: memref<32x1152xbf16, #tpu.memory_space<vmem>>, %arg2: memref<1152x128xbf16, #tpu.memory_space<vmem>>, %arg3: memref<1x128xf32, #tpu.memory_space<vmem>>, %arg4: memref<1x128xf32, #tpu.memory_space<vmem>>, %arg5: memref<32x128xf32, #tpu.memory_space<vmem>>) attributes {dimension_semantics = [#tpu.dimension_semantics<parallel>], iteration_bounds = array<i64: 1>, scalar_prefetch = 0 : i64, scratch_operands = 0 : i64, tpu.core_type = #tpu.core_type<tc>, window_params = [{transform_indices = @transform_0, window_bounds = array<i64: 32, 1152>}, {pipeline_mode = #tpu.pipeline_mode<synchronous>, transform_indices = @transform_1, window_bounds = array<i64: 1152, 128>}, {pipeline_mode = #tpu.pipeline_mode<synchronous>, transform_indices = @transform_2, window_bounds = array<i64: 1, 128>}, {pipeline_mode = #tpu.pipeline_mode<synchronous>, transform_indices = @transform_3, window_bounds = array<i64: 1, 128>}, {transform_indices = @transform_4, window_bounds = array<i64: 32, 128>}]} {
    %c0 = arith.constant 0 : index
    %c0_0 = arith.constant 0 : index
    %0 = vector.load %arg1[%c0, %c0_0] : memref<32x1152xbf16, #tpu.memory_space<vmem>>, vector<32x1152xbf16>
    %c0_1 = arith.constant 0 : index
    %c0_2 = arith.constant 0 : index
    %1 = vector.load %arg2[%c0_1, %c0_2] : memref<1152x128xbf16, #tpu.memory_space<vmem>>, vector<1152x128xbf16>
    %cst = arith.constant dense<0.000000e+00> : vector<32x128xf32>
    %2 = tpu.matmul %0, %1, %cst {dimension_numbers = #tpu.dot_dimension_numbers<[1], [0], [0], [1], [0, 0, 1, 1], [], []>} : vector<32x1152xbf16>, vector<1152x128xbf16>, vector<32x128xf32> -> vector<32x128xf32>
    %c0_3 = arith.constant 0 : index
    %c0_4 = arith.constant 0 : index
    %3 = vector.load %arg3[%c0_3, %c0_4] : memref<1x128xf32, #tpu.memory_space<vmem>>, vector<1x128xf32>
    %4 = vector.broadcast %3 : vector<1x128xf32> to vector<32x128xf32>
    %5 = arith.mulf %2, %4 : vector<32x128xf32>
    %c0_5 = arith.constant 0 : index
    %c0_6 = arith.constant 0 : index
    %6 = vector.load %arg4[%c0_5, %c0_6] : memref<1x128xf32, #tpu.memory_space<vmem>>, vector<1x128xf32>
    %7 = vector.broadcast %6 : vector<1x128xf32> to vector<32x128xf32>
    %8 = arith.addf %5, %7 : vector<32x128xf32>
    %cst_7 = arith.constant 0.000000e+00 : f32
    %9 = vector.broadcast %cst_7 : f32 to vector<32x128xf32>
    %10 = arith.maximumf %8, %9 : vector<32x128xf32>
    %c0_8 = arith.constant 0 : index
    %c0_9 = arith.constant 0 : index
    %11 = vector.load %arg5[%c0_8, %c0_9] : memref<32x128xf32, #tpu.memory_space<vmem>>, vector<32x128xf32>
    tpu.vector_store %arg5[%c0_8, %c0_9], %10 {strides = array<i32>} : memref<32x128xf32, #tpu.memory_space<vmem>>, vector<32x128xf32>,
    return
  }
  func.func @transform_0(%arg0: i32) -> (i32, i32) {
    %c0_i32 = arith.constant 0 : i32
    %c0_i32_0 = arith.constant 0 : i32
    return %arg0, %c0_i32 : i32, i32
  }
  func.func @transform_1(%arg0: i32) -> (i32, i32) {
    %c0_i32 = arith.constant 0 : i32
    %c0_i32_0 = arith.constant 0 : i32
    %c0_i32_1 = arith.constant 0 : i32
    return %c0_i32, %c0_i32_0 : i32, i32
  }
  func.func @transform_2(%arg0: i32) -> (i32, i32) {
    %c0_i32 = arith.constant 0 : i32
    %c0_i32_0 = arith.constant 0 : i32
    %c0_i32_1 = arith.constant 0 : i32
    return %c0_i32, %c0_i32_0 : i32, i32
  }
  func.func @transform_3(%arg0: i32) -> (i32, i32) {
    %c0_i32 = arith.constant 0 : i32
    %c0_i32_0 = arith.constant 0 : i32
    %c0_i32_1 = arith.constant 0 : i32
    return %c0_i32, %c0_i32_0 : i32, i32
  }
  func.func @transform_4(%arg0: i32) -> (i32, i32) {
    %c0_i32 = arith.constant 0 : i32
    %c0_i32_0 = arith.constant 0 : i32
    return %arg0, %c0_i32 : i32, i32
  }
}

</mosaic_0001>

<bundles_post_ra>
// kernel: moco_resnet_classifier_forward.8
= control target key start
LH: loop header
LB: loop body
LE: loop exit
PB: predicated region body
PF: predicated region fallthrough
CT: control target
= control target key end

     0   :  { %s1180_s15 = smov 0   ;;  %s1394_s0 = inlined_call_operand.vmem [shape: bf16[512,256], index: 0, kind: input, shape index: {}]   ;;  %s1395_s1 = inlined_call_operand.vmem [shape: bf16[256,128], index: 1, kind: input, shape index: {}]   ;;  %s1396_s2 = inlined_call_operand.vmem [shape: f32[1,128], index: 2, kind: input, shape index: {}]   ;;  %s1397_s3 = inlined_call_operand.vmem [shape: f32[1,128], index: 3, kind: input, shape index: {}]   ;;  %s1398_s4 = inlined_call_operand.vmem [shape: f32[512,128], index: 4, kind: output, shape index: {}]  }
   0x1 LB: > { %s884_s16 = sadd.s32 4294967295, %s1153_s15   ;;  %p888_p0 = scmp.ge.s32.totalorder %s1153_s15, 1  ;;  %s1153_s15 = sphi %s1180_s15, %s14_s15  }
   0x2   : > { %p164_p1 = scmp.lt.s32.totalorder %s1153_s15, 3 }
   0x4   : > { %p165_p2 = pnand %p888_p0, %p164_p1 }
   0x5   : > { %v1083_v0 = vld [vmem:[%s1395_s1 + $0x40] sm:$0xff] (!%p165_p2)   ;;  %s889_s19 = sshll.u32 (!%p165_p2), %s884_s16, 5  ;;  %v1085_v2 = vld [vmem:[%s1395_s1 + $0x48] sm:$0xff] (!%p165_p2)   ;;  %v1087_v4 = vld [vmem:[%s1395_s1 + $0x50] sm:$0xff] (!%p165_p2)  }
   0x6   : > { %168 = sbr.rel (%p165_p2) target bundleno = 319 (0x13f), region = 36  ;;  %v1084_v1 = vld [vmem:[%s1395_s1] sm:$0xff] (!%p165_p2)   ;;  %947 = vmatprep.subr.bf16.mxu0 (!%p165_p2), %v1083_v0  ;;  %1059 = vmatprep.subr.bf16.mxu1 (!%p165_p2), %v1083_v0  ;;  %v1086_v3 = vld [vmem:[%s1395_s1 + $0x8] sm:$0xff] (!%p165_p2)   ;;  %p192_p3 = scmp.lt.s32.totalorder (!%p165_p2), %s889_s19, 63  ;;  %v1088_v5 = vld [vmem:[%s1395_s1 + $0x10] sm:$0xff] (!%p165_p2)  }
   0x7   : > { %948 = vmatpush3.bf16.msra.mxu0 (!%p165_p2), %v1084_v1  ;;  %1067 = vmatpush3.bf16.msra.mxu1 (!%p165_p2), %v1084_v1  ;;  %v1089_v6 = vld [vmem:[%s1395_s1 + $0x58] sm:$0xff] (!%p165_p2)   ;;  %v1091_v8 = vld [vmem:[%s1395_s1 + $0x60] sm:$0xff] (!%p165_p2)   ;;  %v1093_v10 = vld [vmem:[%s1395_s1 + $0x68] sm:$0xff] (!%p165_p2)  }
   0x8   : > { %949 = vmatprep.subr.bf16.mxu0 (!%p165_p2), %v1085_v2  ;;  %1060 = vmatprep.subr.bf16.mxu1 (!%p165_p2), %v1085_v2  ;;  %v1090_v7 = vld [vmem:[%s1395_s1 + $0x18] sm:$0xff] (!%p165_p2)   ;;  %v1092_v9 = vld [vmem:[%s1395_s1 + $0x20] sm:$0xff] (!%p165_p2)   ;;  %v1094_v13 = vld [vmem:[%s1395_s1 + $0x28] sm:$0xff] (!%p165_p2)  }
   0x9   : > { %v1095_v14 = vld [vmem:[%s1395_s1 + $0x70] sm:$0xff] (!%p165_p2)   ;;  %v1097_v16 = vld [vmem:[%s1395_s1 + $0x78] sm:$0xff] (!%p165_p2)   ;;  %v1281_v51 = vld [vmem:[%s1396_s2] ss:$0 sm:$0xff] (!%p165_p2) }
   0xa   : > { %v1096_v15 = vld [vmem:[%s1395_s1 + $0x30] sm:$0xff] (!%p165_p2)   ;;  %v1098_v17 = vld [vmem:[%s1395_s1 + $0x38] sm:$0xff] (!%p165_p2)   ;;  %v1286_v57 = vld [vmem:[%s1397_s3] ss:$0 sm:$0xff] (!%p165_p2) }
   0xb   : > { %950 = vmatpush3.bf16.msra.mxu0 (!%p165_p2), %v1086_v3  ;;  %1068 = vmatpush3.bf16.msra.mxu1 (!%p165_p2), %v1086_v3 }
   0xc   : > { %951 = vmatprep.subr.bf16.mxu0 (!%p165_p2), %v1087_v4  ;;  %1061 = vmatprep.subr.bf16.mxu1 (!%p165_p2), %v1087_v4 }
   0xd   : > { %s1400_s19 = smov (!%p192_p3, %s889_s19), 63 }
   0xe   : > { %s946_s8 = sshll.u32 %s1400_s19, 3 }
   0xf   : > { %952 = vmatpush3.bf16.msra.mxu0 %v1088_v5  ;;  %1069 = vmatpush3.bf16.msra.mxu1 %v1088_v5  ;;  %s1223_s13 = scalar_lea.vmem %s1394_s0, %s946_s8  ;;  %s1299_s11 = scalar_lea.vmem %s1398_s4, %s946_s8 }
  0x10   : > { %953 = vmatprep.subr.bf16.mxu0 %v1089_v6  ;;  %1062 = vmatprep.subr.bf16.mxu1 %v1089_v6  ;;  %v1101_v11 = vld [vmem:[%s1223_s13 + $0x4] ss:$8 sps:$4 sm:$0xff]   ;;  %v1099_v18 = vld [vmem:[%s1223_s13] ss:$8 sps:$4 sm:$0xff]   ;;  %v1105_v20 = vld [vmem:[%s1223_s13 + $0x14] ss:$8 sps:$4 sm:$0xff]  }
  0x11   : > { %v1104_v12 = vld [vmem:[%s1223_s13 + $0x84] ss:$8 sps:$4 sm:$0xff]   ;;  %557 = vmatprep.mubr.bf16.mxu0 %v1101_v11  ;;  %v1102_v19 = vld [vmem:[%s1223_s13 + $0x80] ss:$8 sps:$4 sm:$0xff]   ;;  %v1107_v21 = vld [vmem:[%s1223_s13 + $0x94] ss:$8 sps:$4 sm:$0xff]  }
  0x12   : > { %621 = vmatprep.mubr.bf16.mxu1 %v1104_v12  ;;  %v1109_v22 = vld [vmem:[%s1223_s13 + $0x10] ss:$8 sps:$4 sm:$0xff]   ;;  %v1111_v24 = vld [vmem:[%s1223_s13 + $0x24] ss:$8 sps:$4 sm:$0xff]   ;;  %v1115_v26 = vld [vmem:[%s1223_s13 + $0x20] ss:$8 sps:$4 sm:$0xff]  }
  0x13   : > { %954 = vmatpush3.bf16.msra.mxu0 %v1090_v7  ;;  %1070 = vmatpush3.bf16.msra.mxu1 %v1090_v7  ;;  %v1110_v23 = vld [vmem:[%s1223_s13 + $0x90] ss:$8 sps:$4 sm:$0xff]   ;;  %v1113_v25 = vld [vmem:[%s1223_s13 + $0xa4] ss:$8 sps:$4 sm:$0xff]   ;;  %v1116_v27 = vld [vmem:[%s1223_s13 + $0xa0] ss:$8 sps:$4 sm:$0xff]  }
  0x14   : > { %955 = vmatprep.subr.bf16.mxu0 %v1091_v8  ;;  %1063 = vmatprep.subr.bf16.mxu1 %v1091_v8  ;;  %v1117_v28 = vld [vmem:[%s1223_s13 + $0x34] ss:$8 sps:$4 sm:$0xff]   ;;  %v1121_v30 = vld [vmem:[%s1223_s13 + $0x30] ss:$8 sps:$4 sm:$0xff]   ;;  %v1123_v32 = vld [vmem:[%s1223_s13 + $0x44] ss:$8 sps:$4 sm:$0xff]  }
  0x15   : > { %v1119_v29 = vld [vmem:[%s1223_s13 + $0xb4] ss:$8 sps:$4 sm:$0xff]   ;;  %v1122_v31 = vld [vmem:[%s1223_s13 + $0xb0] ss:$8 sps:$4 sm:$0xff]   ;;  %v1125_v33 = vld [vmem:[%s1223_s13 + $0xc4] ss:$8 sps:$4 sm:$0xff]  }
  0x16   : > { %v1127_v34 = vld [vmem:[%s1223_s13 + $0x40] ss:$8 sps:$4 sm:$0xff]   ;;  %v1129_v36 = vld [vmem:[%s1223_s13 + $0x54] ss:$8 sps:$4 sm:$0xff]   ;;  %v1133_v38 = vld [vmem:[%s1223_s13 + $0x50] ss:$8 sps:$4 sm:$0xff]  }
  0x17   : > { %956 = vmatpush3.bf16.msra.mxu0 %v1092_v9  ;;  %1071 = vmatpush3.bf16.msra.mxu1 %v1092_v9  ;;  %v1128_v35 = vld [vmem:[%s1223_s13 + $0xc0] ss:$8 sps:$4 sm:$0xff]   ;;  %v1131_v37 = vld [vmem:[%s1223_s13 + $0xd4] ss:$8 sps:$4 sm:$0xff]   ;;  %v1134_v39 = vld [vmem:[%s1223_s13 + $0xd0] ss:$8 sps:$4 sm:$0xff]  }
  0x18   : > { %957 = vmatprep.subr.bf16.mxu0 %v1093_v10  ;;  %1064 = vmatprep.subr.bf16.mxu1 %v1093_v10  ;;  %v1135_v40 = vld [vmem:[%s1223_s13 + $0x64] ss:$8 sps:$4 sm:$0xff]   ;;  %v1139_v42 = vld [vmem:[%s1223_s13 + $0x60] ss:$8 sps:$4 sm:$0xff]   ;;  %v1141_v44 = vld [vmem:[%s1223_s13 + $0x74] ss:$8 sps:$4 sm:$0xff]  }
  0x19   : > { %v1137_v41 = vld [vmem:[%s1223_s13 + $0xe4] ss:$8 sps:$4 sm:$0xff]   ;;  %v1140_v43 = vld [vmem:[%s1223_s13 + $0xe0] ss:$8 sps:$4 sm:$0xff]   ;;  %v1143_v45 = vld [vmem:[%s1223_s13 + $0xf4] ss:$8 sps:$4 sm:$0xff]  }
  0x1a   : > { %v1145_v46 = vld [vmem:[%s1223_s13 + $0x70] ss:$8 sps:$4 sm:$0xff]  }
  0x1b   : > { %958 = vmatpush3.bf16.msra.mxu0 %v1094_v13  ;;  %1072 = vmatpush3.bf16.msra.mxu1 %v1094_v13  ;;  %v1146_v47 = vld [vmem:[%s1223_s13 + $0xf0] ss:$8 sps:$4 sm:$0xff]  }
  0x1c   : > { %959 = vmatprep.subr.bf16.mxu0 %v1095_v14  ;;  %1065 = vmatprep.subr.bf16.mxu1 %v1095_v14 }
  0x1f   : > { %960 = vmatpush3.bf16.msra.mxu0 %v1096_v15  ;;  %1073 = vmatpush3.bf16.msra.mxu1 %v1096_v15 }
  0x20   : > { %961 = vmatprep.subr.bf16.mxu0 %v1097_v16  ;;  %1066 = vmatprep.subr.bf16.mxu1 %v1097_v16 }
  0x23   : > { %962 = vmatpush3.bf16.msra.mxu0 %v1098_v17  ;;  %1074 = vmatpush3.bf16.msra.mxu1 %v1098_v17 }
  0x26   : > { %558 = vmatmul.mubr.bf16.vlgmr.msra.gmra.mrb[0].mxu0 %v1099_v18  ;;  %622 = vmatmul.mubr.bf16.vlgmr.msra.gmra.mrb[0].mxu1 %v1102_v19 }
  0x27   : > { %565 = vmatprep.mubr.bf16.mxu0 %v1105_v20  ;;  %629 = vmatprep.mubr.bf16.mxu1 %v1107_v21 }
  0x2e   : > { %566 = vmatmul.mubr.bf16.gmra.mrb[4].mxu0 %v1109_v22  ;;  %630 = vmatmul.mubr.bf16.gmra.mrb[4].mxu1 %v1110_v23 }
  0x2f   : > { %573 = vmatprep.mubr.bf16.mxu0 %v1111_v24  ;;  %637 = vmatprep.mubr.bf16.mxu1 %v1113_v25 }
  0x36   : > { %574 = vmatmul.mubr.bf16.gmra.mrb[8].mxu0 %v1115_v26  ;;  %638 = vmatmul.mubr.bf16.gmra.mrb[8].mxu1 %v1116_v27 }
  0x37   : > { %581 = vmatprep.mubr.bf16.mxu0 %v1117_v28  ;;  %645 = vmatprep.mubr.bf16.mxu1 %v1119_v29 }
  0x3e   : > { %582 = vmatmul.mubr.bf16.gmra.mrb[12].mxu0 %v1121_v30  ;;  %646 = vmatmul.mubr.bf16.gmra.mrb[12].mxu1 %v1122_v31 }
  0x3f   : > { %589 = vmatprep.mubr.bf16.mxu0 %v1123_v32  ;;  %653 = vmatprep.mubr.bf16.mxu1 %v1125_v33 }
  0x46   : > { %590 = vmatmul.mubr.bf16.gmra.mrb[16].mxu0 %v1127_v34  ;;  %654 = vmatmul.mubr.bf16.gmra.mrb[16].mxu1 %v1128_v35 }
  0x47   : > { %597 = vmatprep.mubr.bf16.mxu0 %v1129_v36  ;;  %661 = vmatprep.mubr.bf16.mxu1 %v1131_v37 }
  0x4e   : > { %598 = vmatmul.mubr.bf16.gmra.mrb[20].mxu0 %v1133_v38  ;;  %662 = vmatmul.mubr.bf16.gmra.mrb[20].mxu1 %v1134_v39 }
  0x4f   : > { %605 = vmatprep.mubr.bf16.mxu0 %v1135_v40  ;;  %669 = vmatprep.mubr.bf16.mxu1 %v1137_v41 }
  0x56   : > { %606 = vmatmul.mubr.bf16.gmra.mrb[24].mxu0 %v1139_v42  ;;  %670 = vmatmul.mubr.bf16.gmra.mrb[24].mxu1 %v1140_v43 }
  0x57   : > { %613 = vmatprep.mubr.bf16.mxu0 %v1141_v44  ;;  %677 = vmatprep.mubr.bf16.mxu1 %v1143_v45 }
  0x5e   : > { %614 = vmatmul.mubr.bf16.gmra.mrb[28].mxu0 %v1145_v46  ;;  %678 = vmatmul.mubr.bf16.gmra.mrb[28].mxu1 %v1146_v47 }
  0xf9   : > { %v963_v48 = vpop.f32.mrb[0].mxu0  ;;  %v1011_v49 = vpop.f32.mrb[0].mxu1 }
  0xfa   : > { %v964_v50 = vpop.f32.mrb[1].mxu0  ;;  %v1012_v52 = vpop.f32.mrb[1].mxu1 }
  0xfb   : > { %v965_v53 = vadd.f32 %v964_v50, %v963_v48  ;;  %v1013_v54 = vadd.f32 %v1012_v52, %v1011_v49  ;;  %v966_v55 = vpop.f32.mrb[2].mxu0  ;;  %v1014_v56 = vpop.f32.mrb[2].mxu1 }
  0xfc   : > { %v967_v58 = vpop.f32.mrb[3].mxu0  ;;  %v1015_v59 = vpop.f32.mrb[3].mxu1 }
  0xfd   : > { %v693_v60 = vmul.f32 %v965_v53, %v1281_v51  ;;  %v709_v61 = vmul.f32 %v1013_v54, %v1281_v51  ;;  %v968_v62 = vadd.f32 %v967_v58, %v966_v55  ;;  %v1016_v63 = vadd.f32 %v1015_v59, %v1014_v56 }
  0xff   : > { %v732_v0 = vadd.f32 %v1286_v57, %v693_v60  ;;  %v748_v1 = vadd.f32 %v1286_v57, %v709_v61  ;;  %v694_v2 = vmul.f32 %v968_v62, %v1281_v51  ;;  %v710_v3 = vmul.f32 %v1016_v63, %v1281_v51 }
 0x101   : > { %v764_v4 = vmax.f32 %v732_v0, 0.0  ;;  %v780_v5 = vmax.f32 %v748_v1, 0.0  ;;  %v733_v6 = vadd.f32 %v1286_v57, %v694_v2  ;;  %v749_v7 = vadd.f32 %v1286_v57, %v710_v3  ;;  %v969_v8 = vpop.f32.mrb[4].mxu0  ;;  %v1017_v9 = vpop.f32.mrb[4].mxu1 }
 0x102   : > { %v970_v10 = vpop.f32.mrb[5].mxu0  ;;  %v1018_v11 = vpop.f32.mrb[5].mxu1 }
 0x103   : > { %796 = vst [vmem:[%s1299_s11] sm:$0xff] %v764_v4  ;;  %812 = vst [vmem:[%s1299_s11 + $0x80] sm:$0xff] %v780_v5  ;;  %v765_v12 = vmax.f32 %v733_v6, 0.0  ;;  %v781_v13 = vmax.f32 %v749_v7, 0.0  ;;  %v971_v14 = vadd.f32 %v970_v10, %v969_v8  ;;  %v1019_v15 = vadd.f32 %v1018_v11, %v1017_v9  ;;  %v972_v16 = vpop.f32.mrb[6].mxu0  ;;  %v1020_v17 = vpop.f32.mrb[6].mxu1 }
 0x104   : > { %v973_v18 = vpop.f32.mrb[7].mxu0  ;;  %v1021_v19 = vpop.f32.mrb[7].mxu1 }
 0x105   : > { %797 = vst [vmem:[%s1299_s11 + $0x8] sm:$0xff] %v765_v12  ;;  %813 = vst [vmem:[%s1299_s11 + $0x88] sm:$0xff] %v781_v13  ;;  %v695_v20 = vmul.f32 %v971_v14, %v1281_v51  ;;  %v711_v21 = vmul.f32 %v1019_v15, %v1281_v51  ;;  %v974_v22 = vadd.f32 %v973_v18, %v972_v16 }
 0x106   : > { %v1022_v23 = vadd.f32 %v1021_v19, %v1020_v17 }
 0x107   : > { %v734_v24 = vadd.f32 %v1286_v57, %v695_v20  ;;  %v750_v25 = vadd.f32 %v1286_v57, %v711_v21  ;;  %v696_v26 = vmul.f32 %v974_v22, %v1281_v51 }
 0x108   : > { %v712_v27 = vmul.f32 %v1022_v23, %v1281_v51 }
 0x109   : > { %v766_v28 = vmax.f32 %v734_v24, 0.0  ;;  %v782_v29 = vmax.f32 %v750_v25, 0.0  ;;  %v735_v30 = vadd.f32 %v1286_v57, %v696_v26  ;;  %v975_v32 = vpop.f32.mrb[8].mxu0  ;;  %v1023_v33 = vpop.f32.mrb[8].mxu1 }
 0x10a   : > { %v751_v31 = vadd.f32 %v1286_v57, %v712_v27  ;;  %v976_v34 = vpop.f32.mrb[9].mxu0  ;;  %v1024_v35 = vpop.f32.mrb[9].mxu1 }
 0x10b   : > { %798 = vst [vmem:[%s1299_s11 + $0x10] sm:$0xff] %v766_v28  ;;  %814 = vst [vmem:[%s1299_s11 + $0x90] sm:$0xff] %v782_v29  ;;  %v767_v36 = vmax.f32 %v735_v30, 0.0  ;;  %v977_v38 = vadd.f32 %v976_v34, %v975_v32  ;;  %v1025_v39 = vadd.f32 %v1024_v35, %v1023_v33  ;;  %v978_v40 = vpop.f32.mrb[10].mxu0  ;;  %v1026_v41 = vpop.f32.mrb[10].mxu1 }
 0x10c   : > { %v783_v37 = vmax.f32 %v751_v31, 0.0  ;;  %v979_v42 = vpop.f32.mrb[11].mxu0  ;;  %v1027_v43 = vpop.f32.mrb[11].mxu1 }
 0x10d   : > { %799 = vst [vmem:[%s1299_s11 + $0x18] sm:$0xff] %v767_v36  ;;  %v697_v44 = vmul.f32 %v977_v38, %v1281_v51  ;;  %v713_v45 = vmul.f32 %v1025_v39, %v1281_v51  ;;  %v980_v46 = vadd.f32 %v979_v42, %v978_v40  ;;  %v1028_v47 = vadd.f32 %v1027_v43, %v1026_v41 }
 0x10e   : > { %815 = vst [vmem:[%s1299_s11 + $0x98] sm:$0xff] %v783_v37 }
 0x10f   : > { %v736_v48 = vadd.f32 %v1286_v57, %v697_v44  ;;  %v752_v49 = vadd.f32 %v1286_v57, %v713_v45  ;;  %v698_v50 = vmul.f32 %v980_v46, %v1281_v51  ;;  %v714_v52 = vmul.f32 %v1028_v47, %v1281_v51 }
 0x111   : > { %v768_v53 = vmax.f32 %v736_v48, 0.0  ;;  %v784_v54 = vmax.f32 %v752_v49, 0.0  ;;  %v737_v55 = vadd.f32 %v1286_v57, %v698_v50  ;;  %v753_v56 = vadd.f32 %v1286_v57, %v714_v52  ;;  %v981_v58 = vpop.f32.mrb[12].mxu0  ;;  %v1029_v59 = vpop.f32.mrb[12].mxu1 }
 0x112   : > { %v982_v60 = vpop.f32.mrb[13].mxu0  ;;  %v1030_v61 = vpop.f32.mrb[13].mxu1 }
 0x113   : > { %800 = vst [vmem:[%s1299_s11 + $0x20] sm:$0xff] %v768_v53  ;;  %816 = vst [vmem:[%s1299_s11 + $0xa0] sm:$0xff] %v784_v54  ;;  %v769_v62 = vmax.f32 %v737_v55, 0.0  ;;  %v785_v63 = vmax.f32 %v753_v56, 0.0  ;;  %v983_v0 = vadd.f32 %v982_v60, %v981_v58  ;;  %v1031_v1 = vadd.f32 %v1030_v61, %v1029_v59  ;;  %v984_v2 = vpop.f32.mrb[14].mxu0  ;;  %v1032_v3 = vpop.f32.mrb[14].mxu1 }
 0x114   : > { %v985_v4 = vpop.f32.mrb[15].mxu0  ;;  %v1033_v5 = vpop.f32.mrb[15].mxu1 }
 0x115   : > { %801 = vst [vmem:[%s1299_s11 + $0x28] sm:$0xff] %v769_v62  ;;  %817 = vst [vmem:[%s1299_s11 + $0xa8] sm:$0xff] %v785_v63  ;;  %v699_v6 = vmul.f32 %v983_v0, %v1281_v51  ;;  %v715_v7 = vmul.f32 %v1031_v1, %v1281_v51  ;;  %v986_v8 = vadd.f32 %v985_v4, %v984_v2 }
 0x116   : > { %v1034_v9 = vadd.f32 %v1033_v5, %v1032_v3 }
 0x117   : > { %v738_v10 = vadd.f32 %v1286_v57, %v699_v6  ;;  %v754_v11 = vadd.f32 %v1286_v57, %v715_v7  ;;  %v700_v12 = vmul.f32 %v986_v8, %v1281_v51 }
 0x118   : > { %v716_v13 = vmul.f32 %v1034_v9, %v1281_v51 }
 0x119   : > { %v770_v14 = vmax.f32 %v738_v10, 0.0  ;;  %v786_v15 = vmax.f32 %v754_v11, 0.0  ;;  %v739_v16 = vadd.f32 %v1286_v57, %v700_v12  ;;  %v987_v18 = vpop.f32.mrb[16].mxu0  ;;  %v1035_v19 = vpop.f32.mrb[16].mxu1 }
 0x11a   : > { %v755_v17 = vadd.f32 %v1286_v57, %v716_v13  ;;  %v988_v20 = vpop.f32.mrb[17].mxu0  ;;  %v1036_v21 = vpop.f32.mrb[17].mxu1 }
 0x11b   : > { %802 = vst [vmem:[%s1299_s11 + $0x30] sm:$0xff] %v770_v14  ;;  %818 = vst [vmem:[%s1299_s11 + $0xb0] sm:$0xff] %v786_v15  ;;  %v771_v22 = vmax.f32 %v739_v16, 0.0  ;;  %v989_v24 = vadd.f32 %v988_v20, %v987_v18  ;;  %v1037_v25 = vadd.f32 %v1036_v21, %v1035_v19  ;;  %v990_v26 = vpop.f32.mrb[18].mxu0  ;;  %v1038_v27 = vpop.f32.mrb[18].mxu1 }
 0x11c   : > { %v787_v23 = vmax.f32 %v755_v17, 0.0  ;;  %v991_v28 = vpop.f32.mrb[19].mxu0  ;;  %v1039_v29 = vpop.f32.mrb[19].mxu1 }
 0x11d   : > { %803 = vst [vmem:[%s1299_s11 + $0x38] sm:$0xff] %v771_v22  ;;  %v701_v30 = vmul.f32 %v989_v24, %v1281_v51  ;;  %v717_v31 = vmul.f32 %v1037_v25, %v1281_v51  ;;  %v992_v32 = vadd.f32 %v991_v28, %v990_v26  ;;  %v1040_v33 = vadd.f32 %v1039_v29, %v1038_v27 }
 0x11e   : > { %819 = vst [vmem:[%s1299_s11 + $0xb8] sm:$0xff] %v787_v23 }
 0x11f   : > { %v740_v34 = vadd.f32 %v1286_v57, %v701_v30  ;;  %v756_v35 = vadd.f32 %v1286_v57, %v717_v31  ;;  %v702_v36 = vmul.f32 %v992_v32, %v1281_v51  ;;  %v718_v37 = vmul.f32 %v1040_v33, %v1281_v51 }
 0x121   : > { %v772_v38 = vmax.f32 %v740_v34, 0.0  ;;  %v788_v39 = vmax.f32 %v756_v35, 0.0  ;;  %v741_v40 = vadd.f32 %v1286_v57, %v702_v36  ;;  %v757_v41 = vadd.f32 %v1286_v57, %v718_v37  ;;  %v993_v42 = vpop.f32.mrb[20].mxu0  ;;  %v1041_v43 = vpop.f32.mrb[20].mxu1 }
 0x122   : > { %v994_v44 = vpop.f32.mrb[21].mxu0  ;;  %v1042_v45 = vpop.f32.mrb[21].mxu1 }
 0x123   : > { %804 = vst [vmem:[%s1299_s11 + $0x40] sm:$0xff] %v772_v38  ;;  %820 = vst [vmem:[%s1299_s11 + $0xc0] sm:$0xff] %v788_v39  ;;  %v773_v46 = vmax.f32 %v741_v40, 0.0  ;;  %v789_v47 = vmax.f32 %v757_v41, 0.0  ;;  %v995_v48 = vadd.f32 %v994_v44, %v993_v42  ;;  %v1043_v49 = vadd.f32 %v1042_v45, %v1041_v43  ;;  %v996_v50 = vpop.f32.mrb[22].mxu0  ;;  %v1044_v52 = vpop.f32.mrb[22].mxu1 }
 0x124   : > { %v997_v53 = vpop.f32.mrb[23].mxu0  ;;  %v1045_v54 = vpop.f32.mrb[23].mxu1 }
 0x125   : > { %805 = vst [vmem:[%s1299_s11 + $0x48] sm:$0xff] %v773_v46  ;;  %821 = vst [vmem:[%s1299_s11 + $0xc8] sm:$0xff] %v789_v47  ;;  %v703_v55 = vmul.f32 %v995_v48, %v1281_v51  ;;  %v719_v56 = vmul.f32 %v1043_v49, %v1281_v51  ;;  %v998_v58 = vadd.f32 %v997_v53, %v996_v50 }
 0x126   : > { %v1046_v59 = vadd.f32 %v1045_v54, %v1044_v52 }
 0x127   : > { %v742_v60 = vadd.f32 %v1286_v57, %v703_v55  ;;  %v758_v61 = vadd.f32 %v1286_v57, %v719_v56  ;;  %v704_v62 = vmul.f32 %v998_v58, %v1281_v51 }
 0x128   : > { %v720_v63 = vmul.f32 %v1046_v59, %v1281_v51 }
 0x129   : > { %v774_v0 = vmax.f32 %v742_v60, 0.0  ;;  %v790_v1 = vmax.f32 %v758_v61, 0.0  ;;  %v743_v2 = vadd.f32 %v1286_v57, %v704_v62  ;;  %v999_v4 = vpop.f32.mrb[24].mxu0  ;;  %v1047_v5 = vpop.f32.mrb[24].mxu1 }
 0x12a   : > { %v759_v3 = vadd.f32 %v1286_v57, %v720_v63  ;;  %v1000_v6 = vpop.f32.mrb[25].mxu0  ;;  %v1048_v7 = vpop.f32.mrb[25].mxu1 }
 0x12b   : > { %806 = vst [vmem:[%s1299_s11 + $0x50] sm:$0xff] %v774_v0  ;;  %822 = vst [vmem:[%s1299_s11 + $0xd0] sm:$0xff] %v790_v1  ;;  %v775_v8 = vmax.f32 %v743_v2, 0.0  ;;  %v1001_v10 = vadd.f32 %v1000_v6, %v999_v4  ;;  %v1049_v11 = vadd.f32 %v1048_v7, %v1047_v5  ;;  %v1002_v12 = vpop.f32.mrb[26].mxu0  ;;  %v1050_v13 = vpop.f32.mrb[26].mxu1 }
 0x12c   : > { %v791_v9 = vmax.f32 %v759_v3, 0.0  ;;  %v1003_v14 = vpop.f32.mrb[27].mxu0  ;;  %v1051_v15 = vpop.f32.mrb[27].mxu1 }
 0x12d   : > { %807 = vst [vmem:[%s1299_s11 + $0x58] sm:$0xff] %v775_v8  ;;  %v705_v16 = vmul.f32 %v1001_v10, %v1281_v51  ;;  %v721_v17 = vmul.f32 %v1049_v11, %v1281_v51  ;;  %v1004_v18 = vadd.f32 %v1003_v14, %v1002_v12  ;;  %v1052_v19 = vadd.f32 %v1051_v15, %v1050_v13 }
 0x12e   : > { %823 = vst [vmem:[%s1299_s11 + $0xd8] sm:$0xff] %v791_v9 }
 0x12f   : > { %v744_v20 = vadd.f32 %v1286_v57, %v705_v16  ;;  %v760_v21 = vadd.f32 %v1286_v57, %v721_v17  ;;  %v706_v22 = vmul.f32 %v1004_v18, %v1281_v51  ;;  %v722_v23 = vmul.f32 %v1052_v19, %v1281_v51 }
 0x131   : > { %v776_v24 = vmax.f32 %v744_v20, 0.0  ;;  %v792_v25 = vmax.f32 %v760_v21, 0.0  ;;  %v745_v26 = vadd.f32 %v1286_v57, %v706_v22  ;;  %v761_v27 = vadd.f32 %v1286_v57, %v722_v23  ;;  %v1005_v28 = vpop.f32.mrb[28].mxu0  ;;  %v1053_v29 = vpop.f32.mrb[28].mxu1 }
 0x132   : > { %v1006_v30 = vpop.f32.mrb[29].mxu0  ;;  %v1054_v31 = vpop.f32.mrb[29].mxu1 }
 0x133   : > { %808 = vst [vmem:[%s1299_s11 + $0x60] sm:$0xff] %v776_v24  ;;  %824 = vst [vmem:[%s1299_s11 + $0xe0] sm:$0xff] %v792_v25  ;;  %v777_v32 = vmax.f32 %v745_v26, 0.0  ;;  %v793_v33 = vmax.f32 %v761_v27, 0.0  ;;  %v1007_v34 = vadd.f32 %v1006_v30, %v1005_v28  ;;  %v1055_v35 = vadd.f32 %v1054_v31, %v1053_v29  ;;  %v1008_v36 = vpop.f32.mrb[30].mxu0  ;;  %v1056_v37 = vpop.f32.mrb[30].mxu1 }
 0x134   : > { %v1009_v38 = vpop.f32.mrb[31].mxu0  ;;  %v1057_v39 = vpop.f32.mrb[31].mxu1 }
 0x135   : > { %809 = vst [vmem:[%s1299_s11 + $0x68] sm:$0xff] %v777_v32  ;;  %825 = vst [vmem:[%s1299_s11 + $0xe8] sm:$0xff] %v793_v33  ;;  %v707_v40 = vmul.f32 %v1007_v34, %v1281_v51  ;;  %v723_v41 = vmul.f32 %v1055_v35, %v1281_v51  ;;  %v1010_v42 = vadd.f32 %v1009_v38, %v1008_v36 }
 0x136   : > { %v1058_v43 = vadd.f32 %v1057_v39, %v1056_v37 }
 0x137   : > { %v746_v44 = vadd.f32 %v1286_v57, %v707_v40  ;;  %v762_v45 = vadd.f32 %v1286_v57, %v723_v41  ;;  %v708_v46 = vmul.f32 %v1010_v42, %v1281_v51 }
 0x138   : > { %v724_v47 = vmul.f32 %v1058_v43, %v1281_v51 }
 0x139   : > { %v778_v48 = vmax.f32 %v746_v44, 0.0  ;;  %v794_v49 = vmax.f32 %v762_v45, 0.0  ;;  %v747_v50 = vadd.f32 %v1286_v57, %v708_v46 }
 0x13a   : > { %v763_v52 = vadd.f32 %v1286_v57, %v724_v47 }
 0x13b   : > { %810 = vst [vmem:[%s1299_s11 + $0x70] sm:$0xff] %v778_v48  ;;  %826 = vst [vmem:[%s1299_s11 + $0xf0] sm:$0xff] %v794_v49  ;;  %v779_v53 = vmax.f32 %v747_v50, 0.0 }
 0x13c   : > { %v795_v54 = vmax.f32 %v763_v52, 0.0 }
 0x13d   : > { %811 = vst [vmem:[%s1299_s11 + $0x78] sm:$0xff] %v779_v53 }
 0x13e   : > { %827 = vst [vmem:[%s1299_s11 + $0xf8] sm:$0xff] %v795_v54 }
 0x13f PF: > { %s14_s15 = sadd.s32 1, %s1153_s15  }
 0x140   : > { %p11_p4 = scmp.ge.s32.totalorder %s14_s15, 4  }
 0x142   :  { %13 = sbr.rel (!%p11_p4) target bundleno = 1 (0x1), region = 66 }

// kernel: moco_resnet_classifier_forward.9
= control target key start
LH: loop header
LB: loop body
LE: loop exit
PB: predicated region body
PF: predicated region fallthrough
CT: control target
= control target key end

     0   :  { %s449_s12 = smov 0   ;;  %s543_s0 = inlined_call_operand.vmem [shape: f32[2,18,8,128], index: 0, kind: input, shape index: {}]   ;;  %s544_s1 = inlined_call_operand.vmem [shape: f32[2,18,8,128], index: 1, kind: input, shape index: {}]   ;;  %s545_s2 = inlined_call_operand.vmem [shape: f32[2,18,8,128], index: 2, kind: input, shape index: {}]   ;;  %s546_s3 = inlined_call_operand.vmem [shape: f32[2,8,8,128], index: 3, kind: output, shape index: {}]  }
   0x1 LB: > { %s399_s13 = sadd.s32 4294967295, %s427_s12   ;;  %p403_p0 = scmp.ge.s32.totalorder %s427_s12, 1  ;;  %s427_s12 = sphi %s449_s12, %s13_s12  }
   0x2   : > { %p157_p1 = scmp.lt.s32.totalorder %s427_s12, 3 }
   0x4   : > { %p158_p2 = pnand %p403_p0, %p157_p1 }
   0x5   : > { %p191_p3 = scmp.lt.s32.totalorder (!%p158_p2), %s399_s13, 1 }
   0x6   : > { %161 = sbr.rel (%p158_p2) target bundleno = 42 (0x2a), region = 32 }
   0xd   : > { %s548_s13 = smov (!%p191_p3, %s399_s13), 1 }
   0xe   : > { %s412_s14 = smul.u32 144, %s548_s13  ;;  %s411_s24 = sshll.u32 %s548_s13, 6 }
   0xf   : > { %s500_s27 = scalar_lea.vmem %s546_s3, %s411_s24 }
  0x10   : > { %s463_s17 = scalar_lea.vmem %s543_s0, %s412_s14  ;;  %s468_s20 = scalar_lea.vmem %s544_s1, %s412_s14 }
  0x11   : > { %s473_s23 = scalar_lea.vmem %s545_s2, %s412_s14  ;;  %v211_v0 = vld [vmem:[%s463_s17] sm:$0xff]  ;;  %v212_v1 = vld [vmem:[%s463_s17 + $0x8] sm:$0xff]  ;;  %v213_v2 = vld [vmem:[%s463_s17 + $0x10] sm:$0xff] }
  0x12   : > { %v228_v3 = vld [vmem:[%s468_s20] sm:$0xff]  ;;  %v229_v4 = vld [vmem:[%s468_s20 + $0x8] sm:$0xff]  ;;  %v230_v5 = vld [vmem:[%s468_s20 + $0x10] sm:$0xff] }
  0x13   : > { %v245_v6 = vmax.f32 %v211_v0, %v228_v3  ;;  %v246_v7 = vmax.f32 %v212_v1, %v229_v4  ;;  %v247_v8 = vmax.f32 %v213_v2, %v230_v5  ;;  %v262_v9 = vld [vmem:[%s473_s23] sm:$0xff]  ;;  %v263_v10 = vld [vmem:[%s473_s23 + $0x8] sm:$0xff]  ;;  %v264_v11 = vld [vmem:[%s473_s23 + $0x10] sm:$0xff] }
  0x14   : > { %v214_v12 = vld [vmem:[%s463_s17 + $0x18] sm:$0xff]  ;;  %v215_v13 = vld [vmem:[%s463_s17 + $0x20] sm:$0xff]  ;;  %v216_v23 = vld [vmem:[%s463_s17 + $0x28] sm:$0xff] }
  0x15   : > { %v231_v14 = vld [vmem:[%s468_s20 + $0x18] sm:$0xff]  ;;  %v279_v15 = vmax.f32 %v245_v6, %v262_v9  ;;  %v280_v16 = vmax.f32 %v246_v7, %v263_v10  ;;  %v281_v17 = vmax.f32 %v247_v8, %v264_v11  ;;  %v232_v18 = vld [vmem:[%s468_s20 + $0x20] sm:$0xff]  ;;  %v217_v24 = vld [vmem:[%s463_s17 + $0x30] sm:$0xff] }
  0x16   : > { %v248_v19 = vmax.f32 %v214_v12, %v231_v14  ;;  %v265_v20 = vld [vmem:[%s473_s23 + $0x18] sm:$0xff]  ;;  %v266_v21 = vld [vmem:[%s473_s23 + $0x20] sm:$0xff]  ;;  %v249_v22 = vmax.f32 %v215_v13, %v232_v18  ;;  %v233_v25 = vld [vmem:[%s468_s20 + $0x28] sm:$0xff] }
  0x17   : > { %v296_v26 = vmax.f32 %v279_v15, %v280_v16  ;;  %v234_v28 = vld [vmem:[%s468_s20 + $0x30] sm:$0xff]  ;;  %v250_v29 = vmax.f32 %v216_v23, %v233_v25  ;;  %v267_v30 = vld [vmem:[%s473_s23 + $0x28] sm:$0xff]  ;;  %v218_v34 = vld [vmem:[%s463_s17 + $0x38] sm:$0xff] }
  0x18   : > { %v282_v27 = vmax.f32 %v248_v19, %v265_v20  ;;  %v268_v31 = vld [vmem:[%s473_s23 + $0x30] sm:$0xff]  ;;  %v283_v32 = vmax.f32 %v249_v22, %v266_v21  ;;  %v251_v33 = vmax.f32 %v217_v24, %v234_v28  ;;  %v219_v35 = vld [vmem:[%s463_s17 + $0x40] sm:$0xff]  ;;  %v235_v36 = vld [vmem:[%s468_s20 + $0x38] sm:$0xff] }
  0x19   : > { %v304_v37 = vmax.f32 %v296_v26, %v281_v17  ;;  %v284_v39 = vmax.f32 %v250_v29, %v267_v30  ;;  %v236_v40 = vld [vmem:[%s468_s20 + $0x40] sm:$0xff]  ;;  %v252_v41 = vmax.f32 %v218_v34, %v235_v36  ;;  %v269_v42 = vld [vmem:[%s473_s23 + $0x38] sm:$0xff]  ;;  %v220_v46 = vld [vmem:[%s463_s17 + $0x48] sm:$0xff] }
  0x1a   : > { %v297_v38 = vmax.f32 %v281_v17, %v282_v27  ;;  %v270_v43 = vld [vmem:[%s473_s23 + $0x40] sm:$0xff]  ;;  %v285_v44 = vmax.f32 %v251_v33, %v268_v31  ;;  %v253_v45 = vmax.f32 %v219_v35, %v236_v40  ;;  %v221_v47 = vld [vmem:[%s463_s17 + $0x50] sm:$0xff]  ;;  %v237_v48 = vld [vmem:[%s468_s20 + $0x48] sm:$0xff] }
  0x1b   : > { %312 = vst [vmem:[%s500_s27] sm:$0xff] %v304_v37  ;;  %v298_v50 = vmax.f32 %v283_v32, %v284_v39  ;;  %v286_v51 = vmax.f32 %v252_v41, %v269_v42  ;;  %v238_v52 = vld [vmem:[%s468_s20 + $0x50] sm:$0xff]  ;;  %v254_v53 = vmax.f32 %v220_v46, %v237_v48  ;;  %v271_v54 = vld [vmem:[%s473_s23 + $0x48] sm:$0xff]  ;;  %v222_v58 = vld [vmem:[%s463_s17 + $0x58] sm:$0xff] }
  0x1c   : > { %v305_v49 = vmax.f32 %v297_v38, %v283_v32  ;;  %v272_v55 = vld [vmem:[%s473_s23 + $0x50] sm:$0xff]  ;;  %v287_v56 = vmax.f32 %v253_v45, %v270_v43  ;;  %v255_v57 = vmax.f32 %v221_v47, %v238_v52  ;;  %v223_v59 = vld [vmem:[%s463_s17 + $0x60] sm:$0xff]  ;;  %v239_v60 = vld [vmem:[%s468_s20 + $0x58] sm:$0xff] }
  0x1d   : > { %v306_v61 = vmax.f32 %v298_v50, %v285_v44  ;;  %v299_v62 = vmax.f32 %v285_v44, %v286_v51  ;;  %v288_v63 = vmax.f32 %v254_v53, %v271_v54  ;;  %v240_v0 = vld [vmem:[%s468_s20 + $0x60] sm:$0xff]  ;;  %v256_v1 = vmax.f32 %v222_v58, %v239_v60  ;;  %v273_v2 = vld [vmem:[%s473_s23 + $0x58] sm:$0xff]  ;;  %v224_v6 = vld [vmem:[%s463_s17 + $0x68] sm:$0xff] }
  0x1e   : > { %313 = vst [vmem:[%s500_s27 + $0x8] sm:$0xff] %v305_v49  ;;  %v274_v3 = vld [vmem:[%s473_s23 + $0x60] sm:$0xff]  ;;  %v289_v4 = vmax.f32 %v255_v57, %v272_v55  ;;  %v257_v5 = vmax.f32 %v223_v59, %v240_v0  ;;  %v225_v7 = vld [vmem:[%s463_s17 + $0x70] sm:$0xff]  ;;  %v241_v8 = vld [vmem:[%s468_s20 + $0x68] sm:$0xff] }
  0x1f   : > { %314 = vst [vmem:[%s500_s27 + $0x10] sm:$0xff] %v306_v61  ;;  %v307_v9 = vmax.f32 %v299_v62, %v287_v56  ;;  %v300_v10 = vmax.f32 %v287_v56, %v288_v63  ;;  %v290_v11 = vmax.f32 %v256_v1, %v273_v2  ;;  %v242_v12 = vld [vmem:[%s468_s20 + $0x70] sm:$0xff]  ;;  %v258_v13 = vmax.f32 %v224_v6, %v241_v8  ;;  %v275_v14 = vld [vmem:[%s473_s23 + $0x68] sm:$0xff]  ;;  %v226_v18 = vld [vmem:[%s463_s17 + $0x78] sm:$0xff] }
  0x20   : > { %v276_v15 = vld [vmem:[%s473_s23 + $0x70] sm:$0xff]  ;;  %v291_v16 = vmax.f32 %v257_v5, %v274_v3  ;;  %v259_v17 = vmax.f32 %v225_v7, %v242_v12  ;;  %v227_v19 = vld [vmem:[%s463_s17 + $0x80] sm:$0xff]  ;;  %v243_v20 = vld [vmem:[%s468_s20 + $0x78] sm:$0xff] }
  0x21   : > { %315 = vst [vmem:[%s500_s27 + $0x18] sm:$0xff] %v307_v9  ;;  %v308_v21 = vmax.f32 %v300_v10, %v289_v4  ;;  %v301_v22 = vmax.f32 %v289_v4, %v290_v11  ;;  %v292_v23 = vmax.f32 %v258_v13, %v275_v14  ;;  %v244_v24 = vld [vmem:[%s468_s20 + $0x80] sm:$0xff]  ;;  %v260_v25 = vmax.f32 %v226_v18, %v243_v20  ;;  %v277_v26 = vld [vmem:[%s473_s23 + $0x78] sm:$0xff] }
  0x22   : > { %v278_v27 = vld [vmem:[%s473_s23 + $0x80] sm:$0xff]  ;;  %v293_v28 = vmax.f32 %v259_v17, %v276_v15  ;;  %v261_v29 = vmax.f32 %v227_v19, %v244_v24 }
  0x23   : > { %316 = vst [vmem:[%s500_s27 + $0x20] sm:$0xff] %v308_v21  ;;  %v309_v30 = vmax.f32 %v301_v22, %v291_v16  ;;  %v302_v31 = vmax.f32 %v291_v16, %v292_v23  ;;  %v294_v32 = vmax.f32 %v260_v25, %v277_v26 }
  0x24   : > { %v295_v33 = vmax.f32 %v261_v29, %v278_v27 }
  0x25   : > { %317 = vst [vmem:[%s500_s27 + $0x28] sm:$0xff] %v309_v30  ;;  %v310_v34 = vmax.f32 %v302_v31, %v293_v28  ;;  %v303_v35 = vmax.f32 %v293_v28, %v294_v32 }
  0x27   : > { %318 = vst [vmem:[%s500_s27 + $0x30] sm:$0xff] %v310_v34  ;;  %v311_v36 = vmax.f32 %v303_v35, %v295_v33 }
  0x29   : > { %319 = vst [vmem:[%s500_s27 + $0x38] sm:$0xff] %v311_v36 }
  0x2a PF: > { %s13_s12 = sadd.s32 1, %s427_s12  }
  0x2b   : > { %p10_p4 = scmp.ge.s32.totalorder %s13_s12, 4  }
  0x2d   :  { %12 = sbr.rel (!%p10_p4) target bundleno = 1 (0x1), region = 68 }

// kernel: moco_resnet_classifier_forward.12
= control target key start
LH: loop header
LB: loop body
LE: loop exit
PB: predicated region body
PF: predicated region fallthrough
CT: control target
= control target key end

     0   :  { %s302_s1 = inlined_call_operand.vmem [shape: bf16[128,128], index: 1, kind: input, shape index: {}]   ;;  %s303_s0 = inlined_call_operand.vmem [shape: bf16[32,128], index: 0, kind: input, shape index: {}]   ;;  %s304_s2 = inlined_call_operand.vmem [shape: f32[1,128], index: 2, kind: input, shape index: {}]   ;;  %s305_s3 = inlined_call_operand.vmem [shape: f32[1,128], index: 3, kind: input, shape index: {}]   ;;  %s306_s4 = inlined_call_operand.vmem [shape: f32[32,128], index: 4, kind: output, shape index: {}]  }
   0x1   :  { %v219_v0 = vld [vmem:[%s302_s1] sm:$0xff]   ;;  %v220_v1 = vld [vmem:[%s302_s1 + $0x8] sm:$0xff]   ;;  %v221_v2 = vld [vmem:[%s302_s1 + $0x10] sm:$0xff]  }
   0x2   :  { %199 = vmatprep.subr.bf16.mxu0 %v219_v0  ;;  %v222_v3 = vld [vmem:[%s302_s1 + $0x18] sm:$0xff]   ;;  %v227_v4 = vld [vmem:[%s303_s0] sm:$0xff]   ;;  %v224_v6 = vld [vmem:[%s302_s1 + $0x28] sm:$0xff]  }
   0x3   :  { %200 = vmatpush3.bf16.msra.mxu0 %v219_v0  ;;  %215 = vmatprep.mubr.bf16.mxu0 %v227_v4  ;;  %v223_v5 = vld [vmem:[%s302_s1 + $0x20] sm:$0xff]   ;;  %v225_v7 = vld [vmem:[%s302_s1 + $0x30] sm:$0xff]   ;;  %v226_v8 = vld [vmem:[%s302_s1 + $0x38] sm:$0xff]  }
   0x4   :  { %201 = vmatprep.subr.bf16.mxu0 %v220_v1  ;;  %v228_v9 = vld [vmem:[%s303_s0 + $0x8] sm:$0xff]   ;;  %v187_v10 = vld [vmem:[%s304_s2] ss:$0 sm:$0xff] }
   0x5   :  { %v188_v12 = vld [vmem:[%s305_s3] ss:$0 sm:$0xff] }
   0x7   :  { %202 = vmatpush3.bf16.msra.mxu0 %v220_v1 }
   0x8   :  { %203 = vmatprep.subr.bf16.mxu0 %v221_v2 }
   0xb   :  { %204 = vmatpush3.bf16.msra.mxu0 %v221_v2 }
   0xc   :  { %205 = vmatprep.subr.bf16.mxu0 %v222_v3 }
   0xf   :  { %206 = vmatpush3.bf16.msra.mxu0 %v222_v3 }
  0x10   :  { %207 = vmatprep.subr.bf16.mxu0 %v223_v5 }
  0x13   :  { %208 = vmatpush3.bf16.msra.mxu0 %v223_v5 }
  0x14   :  { %209 = vmatprep.subr.bf16.mxu0 %v224_v6 }
  0x17   :  { %210 = vmatpush3.bf16.msra.mxu0 %v224_v6 }
  0x18   :  { %211 = vmatprep.subr.bf16.mxu0 %v225_v7 }
  0x1b   :  { %212 = vmatpush3.bf16.msra.mxu0 %v225_v7 }
  0x1c   :  { %213 = vmatprep.subr.bf16.mxu0 %v226_v8 }
  0x1f   :  { %214 = vmatpush3.bf16.msra.mxu0 %v226_v8 }
  0x22   :  { %216 = vmatmul.mubr.bf16.vlgmr.msra.gmra.mrb[0].mxu0 %v228_v9 }
  0xf5   :  { %v217_v11 = vpop.f32.mrb[0].mxu0 }
  0xf6   :  { %v156_v13 = vmul.f32 %v217_v11, %v187_v10  ;;  %v132_v14 = vpop.f32.mrb[1].mxu0 }
  0xf7   :  { %v154_v15 = vmul.f32 %v187_v10, %v132_v14  ;;  %v218_v16 = vpop.f32.mrb[2].mxu0 }
  0xf8   :  { %v167_v17 = vadd.f32 %v188_v12, %v156_v13  ;;  %v157_v18 = vmul.f32 %v218_v16, %v187_v10  ;;  %v135_v19 = vpop.f32.mrb[3].mxu0 }
  0xf9   :  { %v165_v20 = vadd.f32 %v188_v12, %v154_v15  ;;  %v155_v21 = vmul.f32 %v187_v10, %v135_v19 }
  0xfa   :  { %171 = vst [vmem:[%s306_s4 + $0x10] sm:$0xff] %v167_v17  ;;  %v168_v22 = vadd.f32 %v188_v12, %v157_v18 }
  0xfb   :  { %169 = vst [vmem:[%s306_s4] sm:$0xff] %v165_v20  ;;  %v166_v23 = vadd.f32 %v188_v12, %v155_v21 }
  0xfc   :  { %172 = vst [vmem:[%s306_s4 + $0x18] sm:$0xff] %v168_v22 }
  0xfd   :  { %170 = vst [vmem:[%s306_s4 + $0x8] sm:$0xff] %v166_v23 }

// kernel: moco_resnet_classifier_forward.10
= control target key start
LH: loop header
LB: loop body
LE: loop exit
PB: predicated region body
PF: predicated region fallthrough
CT: control target
= control target key end

     0   :  { %s2885_s1 = inlined_call_operand.vmem [shape: bf16[1152,128], index: 1, kind: input, shape index: {}]   ;;  %s2886_s0 = inlined_call_operand.vmem [shape: bf16[128,1152], index: 0, kind: input, shape index: {}]   ;;  %s2887_s2 = inlined_call_operand.vmem [shape: f32[1,128], index: 2, kind: input, shape index: {}]   ;;  %s2888_s3 = inlined_call_operand.vmem [shape: f32[1,128], index: 3, kind: input, shape index: {}]   ;;  %s2889_s4 = inlined_call_operand.vmem [shape: f32[128,128], index: 4, kind: output, shape index: {}]  }
   0x1   :  { %v2075_v0 = vld [vmem:[%s2885_s1 + $0x40] sm:$0xff]   ;;  %v2079_v4 = vld [vmem:[%s2885_s1 + $0x48] sm:$0xff]   ;;  %v2083_v8 = vld [vmem:[%s2885_s1 + $0x50] sm:$0xff]  }
   0x2   :  { %v2076_v1 = vld [vmem:[%s2885_s1 + $0xc0] sm:$0xff]   ;;  %1755 = vmatprep.subr.bf16.mxu0 %v2075_v0  ;;  %v2080_v5 = vld [vmem:[%s2885_s1 + $0xc8] sm:$0xff]   ;;  %v2084_v9 = vld [vmem:[%s2885_s1 + $0xd0] sm:$0xff]  }
   0x3   :  { %v2077_v2 = vld [vmem:[%s2885_s1] sm:$0xff]   ;;  %1819 = vmatprep.subr.bf16.mxu1 %v2076_v1  ;;  %v2081_v6 = vld [vmem:[%s2885_s1 + $0x8] sm:$0xff]   ;;  %v2085_v10 = vld [vmem:[%s2885_s1 + $0x10] sm:$0xff]  }
   0x4   :  { %v2078_v3 = vld [vmem:[%s2885_s1 + $0x80] sm:$0xff]   ;;  %1756 = vmatpush3.bf16.msra.mxu0 %v2077_v2  ;;  %v2082_v7 = vld [vmem:[%s2885_s1 + $0x88] sm:$0xff]   ;;  %v2086_v11 = vld [vmem:[%s2885_s1 + $0x90] sm:$0xff]  }
   0x5   :  { %1820 = vmatpush3.bf16.msra.mxu1 %v2078_v3  ;;  %1757 = vmatprep.subr.bf16.mxu0 %v2079_v4  ;;  %v2087_v12 = vld [vmem:[%s2885_s1 + $0x58] sm:$0xff]   ;;  %v2091_v16 = vld [vmem:[%s2885_s1 + $0x60] sm:$0xff]   ;;  %v2095_v20 = vld [vmem:[%s2885_s1 + $0x68] sm:$0xff]  }
   0x6   :  { %1821 = vmatprep.subr.bf16.mxu1 %v2080_v5  ;;  %v2088_v13 = vld [vmem:[%s2885_s1 + $0xd8] sm:$0xff]   ;;  %v2092_v17 = vld [vmem:[%s2885_s1 + $0xe0] sm:$0xff]   ;;  %v2096_v21 = vld [vmem:[%s2885_s1 + $0xe8] sm:$0xff]  }
   0x7   :  { %v2089_v14 = vld [vmem:[%s2885_s1 + $0x18] sm:$0xff]   ;;  %v2093_v18 = vld [vmem:[%s2885_s1 + $0x20] sm:$0xff]   ;;  %v2097_v22 = vld [vmem:[%s2885_s1 + $0x28] sm:$0xff]  }
   0x8   :  { %1758 = vmatpush3.bf16.msra.mxu0 %v2081_v6  ;;  %v2090_v15 = vld [vmem:[%s2885_s1 + $0x98] sm:$0xff]   ;;  %v2094_v19 = vld [vmem:[%s2885_s1 + $0xa0] sm:$0xff]   ;;  %v2098_v23 = vld [vmem:[%s2885_s1 + $0xa8] sm:$0xff]  }
   0x9   :  { %1822 = vmatpush3.bf16.msra.mxu1 %v2082_v7  ;;  %1759 = vmatprep.subr.bf16.mxu0 %v2083_v8  ;;  %v2099_v24 = vld [vmem:[%s2885_s1 + $0x70] sm:$0xff]   ;;  %v2103_v28 = vld [vmem:[%s2885_s1 + $0x78] sm:$0xff]   ;;  %v2107_v32 = vld [vmem:[%s2886_s0] ss:$36 sps:$4 sm:$0xff]  }
   0xa   :  { %1823 = vmatprep.subr.bf16.mxu1 %v2084_v9  ;;  %v2100_v25 = vld [vmem:[%s2885_s1 + $0xf0] sm:$0xff]   ;;  %v2104_v29 = vld [vmem:[%s2885_s1 + $0xf8] sm:$0xff]   ;;  %v2109_v33 = vld [vmem:[%s2886_s0 + $0x4] ss:$36 sps:$4 sm:$0xff]  }
   0xb   :  { %v2101_v26 = vld [vmem:[%s2885_s1 + $0x30] sm:$0xff]   ;;  %v2105_v30 = vld [vmem:[%s2885_s1 + $0x38] sm:$0xff]   ;;  %v2110_v34 = vld [vmem:[%s2886_s0 + $0x8] ss:$36 sps:$4 sm:$0xff]   ;;  %1074 = vmatprep.mubr.bf16.mxu0 %v2109_v33 }
   0xc   :  { %1760 = vmatpush3.bf16.msra.mxu0 %v2085_v10  ;;  %v2102_v27 = vld [vmem:[%s2885_s1 + $0xb0] sm:$0xff]   ;;  %v2106_v31 = vld [vmem:[%s2885_s1 + $0xb8] sm:$0xff]   ;;  %v2113_v36 = vld [vmem:[%s2885_s1 + $0x140] sm:$0xff]  }
   0xd   :  { %1824 = vmatpush3.bf16.msra.mxu1 %v2086_v11  ;;  %1761 = vmatprep.subr.bf16.mxu0 %v2087_v12  ;;  %v2112_v35 = vld [vmem:[%s2886_s0 + $0xc] ss:$36 sps:$4 sm:$0xff]   ;;  %v2114_v37 = vld [vmem:[%s2885_s1 + $0x1c0] sm:$0xff]   ;;  %v2119_v41 = vld [vmem:[%s2886_s0 + $0x54] ss:$36 sps:$4 sm:$0xff]  }
   0xe   :  { %1825 = vmatprep.subr.bf16.mxu1 %v2088_v13  ;;  %1171 = vmatprep.mubr.bf16.mxu1 %v2112_v35  ;;  %v2115_v38 = vld [vmem:[%s2885_s1 + $0x100] sm:$0xff]   ;;  %v2117_v40 = vld [vmem:[%s2886_s0 + $0x4c] ss:$36 sps:$4 sm:$0xff]   ;;  %v2127_v48 = vld [vmem:[%s2886_s0 + $0x94] ss:$36 sps:$4 sm:$0xff]  }
   0xf   :  { %v2116_v39 = vld [vmem:[%s2885_s1 + $0x180] sm:$0xff]   ;;  %v2121_v42 = vld [vmem:[%s2886_s0 + $0x48] ss:$36 sps:$4 sm:$0xff]   ;;  %v2122_v43 = vld [vmem:[%s2886_s0 + $0x50] ss:$36 sps:$4 sm:$0xff]  }
  0x10   :  { %1762 = vmatpush3.bf16.msra.mxu0 %v2089_v14  ;;  %v2123_v44 = vld [vmem:[%s2885_s1 + $0x148] sm:$0xff]   ;;  %v2129_v49 = vld [vmem:[%s2886_s0 + $0x9c] ss:$36 sps:$4 sm:$0xff]   ;;  %v2131_v50 = vld [vmem:[%s2886_s0 + $0x90] ss:$36 sps:$4 sm:$0xff]  }
  0x11   :  { %1826 = vmatpush3.bf16.msra.mxu1 %v2090_v15  ;;  %1763 = vmatprep.subr.bf16.mxu0 %v2091_v16  ;;  %v2124_v45 = vld [vmem:[%s2885_s1 + $0x1c8] sm:$0xff]   ;;  %v2132_v51 = vld [vmem:[%s2886_s0 + $0x98] ss:$36 sps:$4 sm:$0xff]   ;;  %v2133_v52 = vld [vmem:[%s2885_s1 + $0x150] sm:$0xff]  }
  0x12   :  { %1827 = vmatprep.subr.bf16.mxu1 %v2092_v17  ;;  %v2125_v46 = vld [vmem:[%s2885_s1 + $0x108] sm:$0xff]   ;;  %v2134_v53 = vld [vmem:[%s2885_s1 + $0x1d0] sm:$0xff]   ;;  %v2137_v56 = vld [vmem:[%s2886_s0 + $0xdc] ss:$36 sps:$4 sm:$0xff]  }
  0x13   :  { %v2126_v47 = vld [vmem:[%s2885_s1 + $0x188] sm:$0xff]   ;;  %v2135_v54 = vld [vmem:[%s2885_s1 + $0x110] sm:$0xff]   ;;  %v2141_v58 = vld [vmem:[%s2886_s0 + $0xd8] ss:$36 sps:$4 sm:$0xff]  }
  0x14   :  { %1764 = vmatpush3.bf16.msra.mxu0 %v2093_v18  ;;  %v2136_v55 = vld [vmem:[%s2885_s1 + $0x190] sm:$0xff]   ;;  %v2139_v57 = vld [vmem:[%s2886_s0 + $0xe4] ss:$36 sps:$4 sm:$0xff]   ;;  %v2143_v60 = vld [vmem:[%s2885_s1 + $0x158] sm:$0xff]  }
  0x15   :  { %1828 = vmatpush3.bf16.msra.mxu1 %v2094_v19  ;;  %1765 = vmatprep.subr.bf16.mxu0 %v2095_v20  ;;  %v2142_v59 = vld [vmem:[%s2886_s0 + $0xe0] ss:$36 sps:$4 sm:$0xff]   ;;  %v2144_v61 = vld [vmem:[%s2885_s1 + $0x1d8] sm:$0xff]   ;;  %v2149_v1 = vld [vmem:[%s2886_s0 + $0x12c] ss:$36 sps:$4 sm:$0xff]  }
  0x16   :  { %1829 = vmatprep.subr.bf16.mxu1 %v2096_v21  ;;  %v2145_v62 = vld [vmem:[%s2885_s1 + $0x118] sm:$0xff]   ;;  %v2147_v0 = vld [vmem:[%s2886_s0 + $0x124] ss:$36 sps:$4 sm:$0xff]   ;;  %v2157_v8 = vld [vmem:[%s2886_s0 + $0x16c] ss:$36 sps:$4 sm:$0xff]  }
  0x17   :  { %v2146_v63 = vld [vmem:[%s2885_s1 + $0x198] sm:$0xff]   ;;  %v2151_v2 = vld [vmem:[%s2886_s0 + $0x120] ss:$36 sps:$4 sm:$0xff]   ;;  %v2152_v4 = vld [vmem:[%s2886_s0 + $0x128] ss:$36 sps:$4 sm:$0xff]  }
  0x18   :  { %1766 = vmatpush3.bf16.msra.mxu0 %v2097_v22  ;;  %v2153_v3 = vld [vmem:[%s2885_s1 + $0x160] sm:$0xff]   ;;  %v2159_v9 = vld [vmem:[%s2886_s0 + $0x174] ss:$36 sps:$4 sm:$0xff]   ;;  %v2163_v10 = vld [vmem:[%s2885_s1 + $0x168] sm:$0xff]  }
  0x19   :  { %1830 = vmatpush3.bf16.msra.mxu1 %v2098_v23  ;;  %1767 = vmatprep.subr.bf16.mxu0 %v2099_v24  ;;  %v2154_v5 = vld [vmem:[%s2885_s1 + $0x1e0] sm:$0xff]   ;;  %v2164_v11 = vld [vmem:[%s2885_s1 + $0x1e8] sm:$0xff]   ;;  %v2162_v15 = vld [vmem:[%s2886_s0 + $0x170] ss:$36 sps:$4 sm:$0xff]  }
  0x1a   :  { %1831 = vmatprep.subr.bf16.mxu1 %v2100_v25  ;;  %v2155_v6 = vld [vmem:[%s2885_s1 + $0x120] sm:$0xff]   ;;  %v2161_v12 = vld [vmem:[%s2886_s0 + $0x168] ss:$36 sps:$4 sm:$0xff]   ;;  %v2167_v16 = vld [vmem:[%s2886_s0 + $0x1b4] ss:$36 sps:$4 sm:$0xff]  }
  0x1b   :  { %v2156_v7 = vld [vmem:[%s2885_s1 + $0x1a0] sm:$0xff]   ;;  %v2165_v13 = vld [vmem:[%s2885_s1 + $0x128] sm:$0xff]   ;;  %v2173_v18 = vld [vmem:[%s2885_s1 + $0x170] sm:$0xff]  }
  0x1c   :  { %1768 = vmatpush3.bf16.msra.mxu0 %v2101_v26  ;;  %v2166_v14 = vld [vmem:[%s2885_s1 + $0x1a8] sm:$0xff]   ;;  %v2169_v17 = vld [vmem:[%s2886_s0 + $0x1bc] ss:$36 sps:$4 sm:$0xff]   ;;  %v2174_v19 = vld [vmem:[%s2885_s1 + $0x1f0] sm:$0xff]  }
  0x1d   :  { %1832 = vmatpush3.bf16.msra.mxu1 %v2102_v27  ;;  %1769 = vmatprep.subr.bf16.mxu0 %v2103_v28  ;;  %v2175_v20 = vld [vmem:[%s2885_s1 + $0x130] sm:$0xff]   ;;  %v2172_v23 = vld [vmem:[%s2886_s0 + $0x1b8] ss:$36 sps:$4 sm:$0xff]   ;;  %v2179_v25 = vld [vmem:[%s2886_s0 + $0x204] ss:$36 sps:$4 sm:$0xff]  }
  0x1e   :  { %1833 = vmatprep.subr.bf16.mxu1 %v2104_v29  ;;  %v2176_v21 = vld [vmem:[%s2885_s1 + $0x1b0] sm:$0xff]   ;;  %v2177_v24 = vld [vmem:[%s2886_s0 + $0x1fc] ss:$36 sps:$4 sm:$0xff]  }
  0x1f   :  { %v2171_v22 = vld [vmem:[%s2886_s0 + $0x1b0] ss:$36 sps:$4 sm:$0xff]   ;;  %v2183_v26 = vld [vmem:[%s2885_s1 + $0x178] sm:$0xff]  }
  0x20   :  { %1770 = vmatpush3.bf16.msra.mxu0 %v2105_v30  ;;  %v2184_v27 = vld [vmem:[%s2885_s1 + $0x1f8] sm:$0xff]   ;;  %v2187_v35 = vld [vmem:[%s2886_s0 + $0x10] ss:$36 sps:$4 sm:$0xff]  }
  0x21   :  { %1834 = vmatpush3.bf16.msra.mxu1 %v2106_v31  ;;  %1883 = vmatprep.subr.bf16.mxu0 %v2113_v36  ;;  %v2185_v28 = vld [vmem:[%s2885_s1 + $0x138] sm:$0xff]   ;;  %v2182_v31 = vld [vmem:[%s2886_s0 + $0x200] ss:$36 sps:$4 sm:$0xff]  }
  0x22   :  { %1947 = vmatprep.subr.bf16.mxu1 %v2114_v37  ;;  %v2186_v29 = vld [vmem:[%s2885_s1 + $0x1b8] sm:$0xff]  }
  0x23   :  { %1075 = vmatmul.mubr.bf16.vlgmr.msra.gmra.mrb[0].mxu0 %v2107_v32  ;;  %v2181_v30 = vld [vmem:[%s2886_s0 + $0x1f8] ss:$36 sps:$4 sm:$0xff]   ;;  %v2193_v32 = vld [vmem:[%s2885_s1 + $0x200] sm:$0xff]  }
  0x24   :  { %1172 = vmatmul.mubr.bf16.vlgmr.msra.gmra.mrb[0].mxu1 %v2110_v34  ;;  %1884 = vmatpush3.bf16.msra.mxu0 %v2115_v38  ;;  %v2189_v33 = vld [vmem:[%s2886_s0 + $0x14] ss:$36 sps:$4 sm:$0xff]   ;;  %v2192_v34 = vld [vmem:[%s2886_s0 + $0x1c] ss:$36 sps:$4 sm:$0xff]   ;;  %v2196_v38 = vld [vmem:[%s2886_s0 + $0x64] ss:$36 sps:$4 sm:$0xff]  }
  0x25   :  { %1948 = vmatpush3.bf16.msra.mxu1 %v2116_v39  ;;  %1082 = vmatprep.mubr.bf16.mxu0 %v2117_v40  ;;  %v2190_v36 = vld [vmem:[%s2886_s0 + $0x18] ss:$36 sps:$4 sm:$0xff]   ;;  %v2200_v39 = vld [vmem:[%s2885_s1 + $0x208] sm:$0xff]   ;;  %v2207_v40 = vld [vmem:[%s2885_s1 + $0x210] sm:$0xff]  }
  0x26   :  { %1179 = vmatprep.mubr.bf16.mxu1 %v2119_v41  ;;  %1885 = vmatprep.subr.bf16.mxu0 %v2123_v44  ;;  %v2194_v37 = vld [vmem:[%s2886_s0 + $0x5c] ss:$36 sps:$4 sm:$0xff]   ;;  %v2203_v44 = vld [vmem:[%s2886_s0 + $0xac] ss:$36 sps:$4 sm:$0xff]  }
  0x27   :  { %1949 = vmatprep.subr.bf16.mxu1 %v2124_v45  ;;  %v2198_v41 = vld [vmem:[%s2886_s0 + $0x58] ss:$36 sps:$4 sm:$0xff]  }
  0x28   :  { %1886 = vmatpush3.bf16.msra.mxu0 %v2125_v46  ;;  %v2214_v45 = vld [vmem:[%s2885_s1 + $0x218] sm:$0xff]   ;;  %v2221_v46 = vld [vmem:[%s2885_s1 + $0x220] sm:$0xff]  }
  0x29   :  { %1950 = vmatpush3.bf16.msra.mxu1 %v2126_v47  ;;  %1887 = vmatprep.subr.bf16.mxu0 %v2133_v52  ;;  %v2205_v47 = vld [vmem:[%s2886_s0 + $0xa0] ss:$36 sps:$4 sm:$0xff]   ;;  %v2212_v52 = vld [vmem:[%s2886_s0 + $0xe8] ss:$36 sps:$4 sm:$0xff]  }
  0x2a   :  { %1951 = vmatprep.subr.bf16.mxu1 %v2134_v53  ;;  %v2235_v53 = vld [vmem:[%s2885_s1 + $0x230] sm:$0xff]  }
  0x2b   :  { %1083 = vmatmul.mubr.bf16.gmra.mrb[4].mxu0 %v2121_v42  ;;  %v2199_v42 = vld [vmem:[%s2886_s0 + $0x60] ss:$36 sps:$4 sm:$0xff]  }
  0x2c   :  { %1180 = vmatmul.mubr.bf16.gmra.mrb[4].mxu1 %v2122_v43  ;;  %1090 = vmatprep.mubr.bf16.mxu0 %v2127_v48  ;;  %v2201_v43 = vld [vmem:[%s2886_s0 + $0xa4] ss:$36 sps:$4 sm:$0xff]  }
  0x2d   :  { %1187 = vmatprep.mubr.bf16.mxu1 %v2129_v49  ;;  %1888 = vmatpush3.bf16.msra.mxu0 %v2135_v54  ;;  %v2206_v48 = vld [vmem:[%s2886_s0 + $0xa8] ss:$36 sps:$4 sm:$0xff]   ;;  %v2213_v54 = vld [vmem:[%s2886_s0 + $0xf0] ss:$36 sps:$4 sm:$0xff]  }
  0x2e   :  { %1952 = vmatpush3.bf16.msra.mxu1 %v2136_v55  ;;  %1889 = vmatprep.subr.bf16.mxu0 %v2143_v60  ;;  %v2208_v49 = vld [vmem:[%s2886_s0 + $0xec] ss:$36 sps:$4 sm:$0xff]   ;;  %v2215_v55 = vld [vmem:[%s2886_s0 + $0x134] ss:$36 sps:$4 sm:$0xff]   ;;  %v2222_v60 = vld [vmem:[%s2886_s0 + $0x17c] ss:$36 sps:$4 sm:$0xff]  }
  0x2f   :  { %1953 = vmatprep.subr.bf16.mxu1 %v2144_v61  ;;  %v2224_v61 = vld [vmem:[%s2886_s0 + $0x184] ss:$36 sps:$4 sm:$0xff]  }
  0x31   :  { %1890 = vmatpush3.bf16.msra.mxu0 %v2145_v62  ;;  %v2226_v62 = vld [vmem:[%s2886_s0 + $0x178] ss:$36 sps:$4 sm:$0xff]  }
  0x32   :  { %1954 = vmatpush3.bf16.msra.mxu1 %v2146_v63  ;;  %1891 = vmatprep.subr.bf16.mxu0 %v2153_v3  ;;  %v2227_v63 = vld [vmem:[%s2886_s0 + $0x180] ss:$36 sps:$4 sm:$0xff]   ;;  %v2234_v3 = vld [vmem:[%s2886_s0 + $0x1c8] ss:$36 sps:$4 sm:$0xff]  }
  0x33   :  { %1091 = vmatmul.mubr.bf16.gmra.mrb[8].mxu0 %v2131_v50  ;;  %1955 = vmatprep.subr.bf16.mxu1 %v2154_v5  ;;  %v2210_v50 = vld [vmem:[%s2886_s0 + $0xf4] ss:$36 sps:$4 sm:$0xff]  }
  0x34   :  { %1188 = vmatmul.mubr.bf16.gmra.mrb[8].mxu1 %v2132_v51  ;;  %1098 = vmatprep.mubr.bf16.mxu0 %v2137_v56  ;;  %v2228_v51 = vld [vmem:[%s2885_s1 + $0x228] sm:$0xff]   ;;  %v2217_v56 = vld [vmem:[%s2886_s0 + $0x13c] ss:$36 sps:$4 sm:$0xff]   ;;  %v2238_v5 = vld [vmem:[%s2886_s0 + $0x214] ss:$36 sps:$4 sm:$0xff]  }
  0x35   :  { %1195 = vmatprep.mubr.bf16.mxu1 %v2139_v57  ;;  %1892 = vmatpush3.bf16.msra.mxu0 %v2155_v6  ;;  %v2242_v57 = vld [vmem:[%s2885_s1 + $0x238] sm:$0xff]   ;;  %v2240_v6 = vld [vmem:[%s2886_s0 + $0x208] ss:$36 sps:$4 sm:$0xff]  }
  0x36   :  { %1956 = vmatpush3.bf16.msra.mxu1 %v2156_v7  ;;  %1893 = vmatprep.subr.bf16.mxu0 %v2163_v10  ;;  %v2241_v7 = vld [vmem:[%s2886_s0 + $0x210] ss:$36 sps:$4 sm:$0xff]   ;;  %v2245_v10 = vld [vmem:[%s2886_s0 + $0x68] ss:$36 sps:$4 sm:$0xff]  }
  0x37   :  { %1957 = vmatprep.subr.bf16.mxu1 %v2164_v11  ;;  %v2246_v11 = vld [vmem:[%s2886_s0 + $0x188] ss:$36 sps:$4 sm:$0xff]  }
  0x39   :  { %1894 = vmatpush3.bf16.msra.mxu0 %v2165_v13  ;;  %v2248_v13 = vld [vmem:[%s2886_s0 + $0x1d0] ss:$36 sps:$4 sm:$0xff]  }
  0x3a   :  { %1958 = vmatpush3.bf16.msra.mxu1 %v2166_v14  ;;  %1895 = vmatprep.subr.bf16.mxu0 %v2173_v18  ;;  %v2249_v14 = vld [vmem:[%s2886_s0 + $0xf8] ss:$36 sps:$4 sm:$0xff]  }
  0x3b   :  { %1099 = vmatmul.mubr.bf16.gmra.mrb[12].mxu0 %v2141_v58  ;;  %1959 = vmatprep.subr.bf16.mxu1 %v2174_v19  ;;  %v2219_v58 = vld [vmem:[%s2886_s0 + $0x130] ss:$36 sps:$4 sm:$0xff]  }
  0x3c   :  { %1196 = vmatmul.mubr.bf16.gmra.mrb[12].mxu1 %v2142_v59  ;;  %1106 = vmatprep.mubr.bf16.mxu0 %v2147_v0  ;;  %v2220_v59 = vld [vmem:[%s2886_s0 + $0x138] ss:$36 sps:$4 sm:$0xff]   ;;  %v2229_v0 = vld [vmem:[%s2886_s0 + $0x1c4] ss:$36 sps:$4 sm:$0xff]  }
  0x3d   :  { %1203 = vmatprep.mubr.bf16.mxu1 %v2149_v1  ;;  %1896 = vmatpush3.bf16.msra.mxu0 %v2175_v20  ;;  %v2231_v1 = vld [vmem:[%s2886_s0 + $0x1cc] ss:$36 sps:$4 sm:$0xff]  }
  0x3e   :  { %1960 = vmatpush3.bf16.msra.mxu1 %v2176_v21  ;;  %1897 = vmatprep.subr.bf16.mxu0 %v2183_v26 }
  0x3f   :  { %1961 = vmatprep.subr.bf16.mxu1 %v2184_v27 }
  0x41   :  { %1898 = vmatpush3.bf16.msra.mxu0 %v2185_v28 }
  0x42   :  { %1962 = vmatpush3.bf16.msra.mxu1 %v2186_v29  ;;  %2027 = vmatprep.subr.bf16.mxu0 %v2193_v32 }
  0x43   :  { %1107 = vmatmul.mubr.bf16.gmra.mrb[16].mxu0 %v2151_v2  ;;  %2059 = vmatprep.subr.bf16.mxu1 %v2193_v32  ;;  %v2233_v2 = vld [vmem:[%s2886_s0 + $0x1c0] ss:$36 sps:$4 sm:$0xff]  }
  0x44   :  { %1204 = vmatmul.mubr.bf16.gmra.mrb[16].mxu1 %v2152_v4  ;;  %1114 = vmatprep.mubr.bf16.mxu0 %v2157_v8  ;;  %v2236_v4 = vld [vmem:[%s2886_s0 + $0x20c] ss:$36 sps:$4 sm:$0xff]   ;;  %v2243_v8 = vld [vmem:[%s2886_s0 + $0x20] ss:$36 sps:$4 sm:$0xff]  }
  0x45   :  { %1211 = vmatprep.mubr.bf16.mxu1 %v2159_v9  ;;  %v2244_v9 = vld [vmem:[%s2886_s0 + $0x140] ss:$36 sps:$4 sm:$0xff]  }
  0x4b   :  { %1115 = vmatmul.mubr.bf16.gmra.mrb[20].mxu0 %v2161_v12  ;;  %v2247_v12 = vld [vmem:[%s2886_s0 + $0xb0] ss:$36 sps:$4 sm:$0xff]  }
  0x4c   :  { %1212 = vmatmul.mubr.bf16.gmra.mrb[20].mxu1 %v2162_v15  ;;  %1122 = vmatprep.mubr.bf16.mxu0 %v2167_v16  ;;  %v2250_v15 = vld [vmem:[%s2886_s0 + $0x218] ss:$36 sps:$4 sm:$0xff]  }
  0x4d   :  { %1219 = vmatprep.mubr.bf16.mxu1 %v2169_v17 }
  0x53   :  { %1123 = vmatmul.mubr.bf16.gmra.mrb[24].mxu0 %v2171_v22 }
  0x54   :  { %1220 = vmatmul.mubr.bf16.gmra.mrb[24].mxu1 %v2172_v23  ;;  %1130 = vmatprep.mubr.bf16.mxu0 %v2177_v24 }
  0x55   :  { %1227 = vmatprep.mubr.bf16.mxu1 %v2179_v25 }
  0x5b   :  { %1131 = vmatmul.mubr.bf16.gmra.mrb[28].mxu0 %v2181_v30 }
  0x5c   :  { %1228 = vmatmul.mubr.bf16.gmra.mrb[28].mxu1 %v2182_v31  ;;  %1268 = vmatprep.mubr.bf16.mxu0 %v2189_v33 }
  0x5d   :  { %1365 = vmatprep.mubr.bf16.mxu1 %v2192_v34 }
  0x63   :  { %1269 = vmatmul.mubr.bf16.vlgmr.msra.gmra.mrb[32].mxu0 %v2187_v35 }
  0x64   :  { %1366 = vmatmul.mubr.bf16.vlgmr.msra.gmra.mrb[32].mxu1 %v2190_v36  ;;  %2028 = vmatpush3.bf16.msra.mxu0 %v2193_v32 }
  0x65   :  { %2067 = vmatpush3.bf16.msra.mxu1 %v2193_v32  ;;  %1276 = vmatprep.mubr.bf16.mxu0 %v2194_v37 }
  0x66   :  { %1373 = vmatprep.mubr.bf16.mxu1 %v2196_v38  ;;  %2029 = vmatprep.subr.bf16.mxu0 %v2200_v39 }
  0x67   :  { %2060 = vmatprep.subr.bf16.mxu1 %v2200_v39 }
  0x68   :  { %2030 = vmatpush3.bf16.msra.mxu0 %v2200_v39 }
  0x69   :  { %2068 = vmatpush3.bf16.msra.mxu1 %v2200_v39  ;;  %2031 = vmatprep.subr.bf16.mxu0 %v2207_v40 }
  0x6a   :  { %2061 = vmatprep.subr.bf16.mxu1 %v2207_v40 }
  0x6b   :  { %1277 = vmatmul.mubr.bf16.gmra.mrb[36].mxu0 %v2198_v41 }
  0x6c   :  { %1374 = vmatmul.mubr.bf16.gmra.mrb[36].mxu1 %v2199_v42  ;;  %1284 = vmatprep.mubr.bf16.mxu0 %v2201_v43 }
  0x6d   :  { %1381 = vmatprep.mubr.bf16.mxu1 %v2203_v44  ;;  %2032 = vmatpush3.bf16.msra.mxu0 %v2207_v40 }
  0x6e   :  { %2069 = vmatpush3.bf16.msra.mxu1 %v2207_v40  ;;  %2033 = vmatprep.subr.bf16.mxu0 %v2214_v45 }
  0x6f   :  { %2062 = vmatprep.subr.bf16.mxu1 %v2214_v45 }
  0x71   :  { %2034 = vmatpush3.bf16.msra.mxu0 %v2214_v45 }
  0x72   :  { %2070 = vmatpush3.bf16.msra.mxu1 %v2214_v45  ;;  %2035 = vmatprep.subr.bf16.mxu0 %v2221_v46 }
  0x73   :  { %1285 = vmatmul.mubr.bf16.gmra.mrb[40].mxu0 %v2205_v47  ;;  %2063 = vmatprep.subr.bf16.mxu1 %v2221_v46 }
  0x74   :  { %1382 = vmatmul.mubr.bf16.gmra.mrb[40].mxu1 %v2206_v48  ;;  %1292 = vmatprep.mubr.bf16.mxu0 %v2208_v49 }
  0x75   :  { %1389 = vmatprep.mubr.bf16.mxu1 %v2210_v50  ;;  %2036 = vmatpush3.bf16.msra.mxu0 %v2221_v46 }
  0x76   :  { %2071 = vmatpush3.bf16.msra.mxu1 %v2221_v46  ;;  %2037 = vmatprep.subr.bf16.mxu0 %v2228_v51 }
  0x77   :  { %2064 = vmatprep.subr.bf16.mxu1 %v2228_v51 }
  0x79   :  { %2038 = vmatpush3.bf16.msra.mxu0 %v2228_v51 }
  0x7a   :  { %2072 = vmatpush3.bf16.msra.mxu1 %v2228_v51  ;;  %2039 = vmatprep.subr.bf16.mxu0 %v2235_v53 }
  0x7b   :  { %1293 = vmatmul.mubr.bf16.gmra.mrb[44].mxu0 %v2212_v52  ;;  %2065 = vmatprep.subr.bf16.mxu1 %v2235_v53 }
  0x7c   :  { %1390 = vmatmul.mubr.bf16.gmra.mrb[44].mxu1 %v2213_v54  ;;  %1300 = vmatprep.mubr.bf16.mxu0 %v2215_v55 }
  0x7d   :  { %1397 = vmatprep.mubr.bf16.mxu1 %v2217_v56  ;;  %2040 = vmatpush3.bf16.msra.mxu0 %v2235_v53 }
  0x7e   :  { %2073 = vmatpush3.bf16.msra.mxu1 %v2235_v53  ;;  %2041 = vmatprep.subr.bf16.mxu0 %v2242_v57 }
  0x7f   :  { %2066 = vmatprep.subr.bf16.mxu1 %v2242_v57 }
  0x81   :  { %2042 = vmatpush3.bf16.msra.mxu0 %v2242_v57 }
  0x82   :  { %2074 = vmatpush3.bf16.msra.mxu1 %v2242_v57 }
  0x83   :  { %1301 = vmatmul.mubr.bf16.gmra.mrb[48].mxu0 %v2219_v58 }
  0x84   :  { %1398 = vmatmul.mubr.bf16.gmra.mrb[48].mxu1 %v2220_v59  ;;  %1308 = vmatprep.mubr.bf16.mxu0 %v2222_v60 }
  0x85   :  { %1405 = vmatprep.mubr.bf16.mxu1 %v2224_v61 }
  0x8b   :  { %1309 = vmatmul.mubr.bf16.gmra.mrb[52].mxu0 %v2226_v62 }
  0x8c   :  { %1406 = vmatmul.mubr.bf16.gmra.mrb[52].mxu1 %v2227_v63  ;;  %1316 = vmatprep.mubr.bf16.mxu0 %v2229_v0 }
  0x8d   :  { %1413 = vmatprep.mubr.bf16.mxu1 %v2231_v1 }
  0x93   :  { %1317 = vmatmul.mubr.bf16.gmra.mrb[56].mxu0 %v2233_v2 }
  0x94   :  { %1414 = vmatmul.mubr.bf16.gmra.mrb[56].mxu1 %v2234_v3  ;;  %1324 = vmatprep.mubr.bf16.mxu0 %v2236_v4 }
  0x95   :  { %1421 = vmatprep.mubr.bf16.mxu1 %v2238_v5 }
  0x9b   :  { %1325 = vmatmul.mubr.bf16.gmra.mrb[60].mxu0 %v2240_v6 }
  0x9c   :  { %1422 = vmatmul.mubr.bf16.gmra.mrb[60].mxu1 %v2241_v7  ;;  %2043 = vmatprep.mubr.bf16.mxu0 %v2243_v8 }
  0x9d   :  { %2051 = vmatprep.mubr.bf16.mxu1 %v2244_v9 }
  0xa3   :  { %2044 = vmatmul.mubr.bf16.vlgmr.msra.gmra.mrb[64].mxu0 %v2245_v10 }
  0xa4   :  { %2052 = vmatmul.mubr.bf16.vlgmr.msra.gmra.mrb[64].mxu1 %v2246_v11  ;;  %2047 = vmatprep.mubr.bf16.mxu0 %v2247_v12 }
  0xa5   :  { %2055 = vmatprep.mubr.bf16.mxu1 %v2248_v13 }
  0xab   :  { %2048 = vmatmul.mubr.bf16.gmra.mrb[68].mxu0 %v2249_v14 }
  0xac   :  { %2056 = vmatmul.mubr.bf16.gmra.mrb[68].mxu1 %v2250_v15 }
  0xf6   :  { %v1771_v16 = vpop.f32.mrb[0].mxu0 }
  0xf7   :  { %v1835_v17 = vpop.f32.mrb[0].mxu1  ;;  %v1772_v18 = vpop.f32.mrb[1].mxu0 }
  0xf8   :  { %v1773_v19 = vadd.f32 %v1772_v18, %v1771_v16  ;;  %v1836_v20 = vpop.f32.mrb[1].mxu1  ;;  %v1774_v21 = vpop.f32.mrb[2].mxu0 }
  0xf9   :  { %v1837_v22 = vadd.f32 %v1836_v20, %v1835_v17  ;;  %v1838_v23 = vpop.f32.mrb[2].mxu1  ;;  %v1775_v24 = vpop.f32.mrb[3].mxu0 }
  0xfa   :  { %v1776_v25 = vadd.f32 %v1775_v24, %v1774_v21  ;;  %v1839_v26 = vpop.f32.mrb[3].mxu1 }
  0xfb   :  { %v2708_v27 = vadd.f32 %v1837_v22, %v1773_v19  ;;  %v1840_v28 = vadd.f32 %v1839_v26, %v1838_v23 }
  0xfd   :  { %v2710_v29 = vadd.f32 %v1840_v28, %v1776_v25 }
  0xfe   :  { %v1777_v30 = vpop.f32.mrb[4].mxu0 }
  0xff   :  { %v1841_v31 = vpop.f32.mrb[4].mxu1  ;;  %v1778_v32 = vpop.f32.mrb[5].mxu0 }
 0x100   :  { %v1779_v33 = vadd.f32 %v1778_v32, %v1777_v30  ;;  %v1842_v34 = vpop.f32.mrb[5].mxu1  ;;  %v1780_v35 = vpop.f32.mrb[6].mxu0 }
 0x101   :  { %v1843_v36 = vadd.f32 %v1842_v34, %v1841_v31  ;;  %v1844_v37 = vpop.f32.mrb[6].mxu1  ;;  %v1781_v38 = vpop.f32.mrb[7].mxu0 }
 0x102   :  { %v1782_v39 = vadd.f32 %v1781_v38, %v1780_v35  ;;  %v1845_v40 = vpop.f32.mrb[7].mxu1 }
 0x103   :  { %v2712_v41 = vadd.f32 %v1843_v36, %v1779_v33  ;;  %v1846_v42 = vadd.f32 %v1845_v40, %v1844_v37 }
 0x105   :  { %v2714_v43 = vadd.f32 %v1846_v42, %v1782_v39 }
 0x106   :  { %v1783_v44 = vpop.f32.mrb[8].mxu0 }
 0x107   :  { %v1847_v45 = vpop.f32.mrb[8].mxu1  ;;  %v1784_v46 = vpop.f32.mrb[9].mxu0 }
 0x108   :  { %v1785_v47 = vadd.f32 %v1784_v46, %v1783_v44  ;;  %v1848_v48 = vpop.f32.mrb[9].mxu1  ;;  %v1786_v49 = vpop.f32.mrb[10].mxu0 }
 0x109   :  { %v1849_v50 = vadd.f32 %v1848_v48, %v1847_v45  ;;  %v1850_v51 = vpop.f32.mrb[10].mxu1  ;;  %v1787_v52 = vpop.f32.mrb[11].mxu0 }
 0x10a   :  { %v1788_v53 = vadd.f32 %v1787_v52, %v1786_v49  ;;  %v1851_v54 = vpop.f32.mrb[11].mxu1 }
 0x10b   :  { %v2716_v55 = vadd.f32 %v1849_v50, %v1785_v47  ;;  %v1852_v56 = vadd.f32 %v1851_v54, %v1850_v51 }
 0x10d   :  { %v2718_v57 = vadd.f32 %v1852_v56, %v1788_v53 }
 0x10e   :  { %v1789_v58 = vpop.f32.mrb[12].mxu0 }
 0x10f   :  { %v1853_v59 = vpop.f32.mrb[12].mxu1  ;;  %v1790_v60 = vpop.f32.mrb[13].mxu0 }
 0x110   :  { %v1791_v61 = vadd.f32 %v1790_v60, %v1789_v58  ;;  %v1854_v62 = vpop.f32.mrb[13].mxu1  ;;  %v1792_v63 = vpop.f32.mrb[14].mxu0 }
 0x111   :  { %v1855_v0 = vadd.f32 %v1854_v62, %v1853_v59  ;;  %v1856_v1 = vpop.f32.mrb[14].mxu1  ;;  %v1793_v2 = vpop.f32.mrb[15].mxu0 }
 0x112   :  { %v1794_v3 = vadd.f32 %v1793_v2, %v1792_v63  ;;  %v1857_v4 = vpop.f32.mrb[15].mxu1 }
 0x113   :  { %v2720_v5 = vadd.f32 %v1855_v0, %v1791_v61  ;;  %v1858_v6 = vadd.f32 %v1857_v4, %v1856_v1 }
 0x115   :  { %v2722_v7 = vadd.f32 %v1858_v6, %v1794_v3 }
 0x116   :  { %v1795_v8 = vpop.f32.mrb[16].mxu0 }
 0x117   :  { %v1859_v9 = vpop.f32.mrb[16].mxu1  ;;  %v1796_v10 = vpop.f32.mrb[17].mxu0 }
 0x118   :  { %v1797_v11 = vadd.f32 %v1796_v10, %v1795_v8  ;;  %v1860_v12 = vpop.f32.mrb[17].mxu1  ;;  %v1798_v13 = vpop.f32.mrb[18].mxu0 }
 0x119   :  { %v1861_v14 = vadd.f32 %v1860_v12, %v1859_v9  ;;  %v1862_v15 = vpop.f32.mrb[18].mxu1  ;;  %v1799_v16 = vpop.f32.mrb[19].mxu0 }
 0x11a   :  { %v1800_v17 = vadd.f32 %v1799_v16, %v1798_v13  ;;  %v1863_v18 = vpop.f32.mrb[19].mxu1 }
 0x11b   :  { %v2724_v19 = vadd.f32 %v1861_v14, %v1797_v11  ;;  %v1864_v20 = vadd.f32 %v1863_v18, %v1862_v15 }
 0x11d   :  { %v2726_v21 = vadd.f32 %v1864_v20, %v1800_v17 }
 0x11e   :  { %v1801_v22 = vpop.f32.mrb[20].mxu0 }
 0x11f   :  { %v1865_v23 = vpop.f32.mrb[20].mxu1  ;;  %v1802_v24 = vpop.f32.mrb[21].mxu0 }
 0x120   :  { %v1803_v25 = vadd.f32 %v1802_v24, %v1801_v22  ;;  %v1866_v26 = vpop.f32.mrb[21].mxu1  ;;  %v1804_v28 = vpop.f32.mrb[22].mxu0 }
 0x121   :  { %v1867_v30 = vadd.f32 %v1866_v26, %v1865_v23  ;;  %v1868_v31 = vpop.f32.mrb[22].mxu1  ;;  %v1805_v32 = vpop.f32.mrb[23].mxu0 }
 0x122   :  { %v1806_v33 = vadd.f32 %v1805_v32, %v1804_v28  ;;  %v1869_v34 = vpop.f32.mrb[23].mxu1 }
 0x123   :  { %v2728_v35 = vadd.f32 %v1867_v30, %v1803_v25  ;;  %v1870_v36 = vadd.f32 %v1869_v34, %v1868_v31 }
 0x125   :  { %v2730_v37 = vadd.f32 %v1870_v36, %v1806_v33 }
 0x126   :  { %v1807_v38 = vpop.f32.mrb[24].mxu0 }
 0x127   :  { %v1871_v39 = vpop.f32.mrb[24].mxu1  ;;  %v1808_v40 = vpop.f32.mrb[25].mxu0 }
 0x128   :  { %v1809_v42 = vadd.f32 %v1808_v40, %v1807_v38  ;;  %v1872_v44 = vpop.f32.mrb[25].mxu1  ;;  %v1810_v45 = vpop.f32.mrb[26].mxu0 }
 0x129   :  { %v1873_v46 = vadd.f32 %v1872_v44, %v1871_v39  ;;  %v1874_v47 = vpop.f32.mrb[26].mxu1  ;;  %v1811_v48 = vpop.f32.mrb[27].mxu0 }
 0x12a   :  { %v1812_v49 = vadd.f32 %v1811_v48, %v1810_v45  ;;  %v1875_v50 = vpop.f32.mrb[27].mxu1 }
 0x12b   :  { %v2732_v51 = vadd.f32 %v1873_v46, %v1809_v42  ;;  %v1876_v52 = vadd.f32 %v1875_v50, %v1874_v47 }
 0x12d   :  { %v2734_v53 = vadd.f32 %v1876_v52, %v1812_v49 }
 0x12e   :  { %v1813_v54 = vpop.f32.mrb[28].mxu0 }
 0x12f   :  { %v1877_v56 = vpop.f32.mrb[28].mxu1  ;;  %v1814_v58 = vpop.f32.mrb[29].mxu0 }
 0x130   :  { %v1815_v59 = vadd.f32 %v1814_v58, %v1813_v54  ;;  %v1878_v60 = vpop.f32.mrb[29].mxu1  ;;  %v1816_v61 = vpop.f32.mrb[30].mxu0 }
 0x131   :  { %v1879_v62 = vadd.f32 %v1878_v60, %v1877_v56  ;;  %v1880_v63 = vpop.f32.mrb[30].mxu1  ;;  %v1817_v0 = vpop.f32.mrb[31].mxu0 }
 0x132   :  { %v1818_v1 = vadd.f32 %v1817_v0, %v1816_v61  ;;  %v1881_v2 = vpop.f32.mrb[31].mxu1 }
 0x133   :  { %v2736_v3 = vadd.f32 %v1879_v62, %v1815_v59  ;;  %v1882_v4 = vadd.f32 %v1881_v2, %v1880_v63 }
 0x135   :  { %v2738_v6 = vadd.f32 %v1882_v4, %v1818_v1 }
 0x136   :  { %v1899_v8 = vpop.f32.mrb[32].mxu0 }
 0x137   :  { %v1963_v9 = vpop.f32.mrb[32].mxu1  ;;  %v1900_v10 = vpop.f32.mrb[33].mxu0 }
 0x138   :  { %v1901_v11 = vadd.f32 %v1900_v10, %v1899_v8  ;;  %v1964_v12 = vpop.f32.mrb[33].mxu1  ;;  %v1902_v13 = vpop.f32.mrb[34].mxu0 }
 0x139   :  { %v1965_v14 = vadd.f32 %v1964_v12, %v1963_v9  ;;  %v1966_v15 = vpop.f32.mrb[34].mxu1  ;;  %v1903_v16 = vpop.f32.mrb[35].mxu0 }
 0x13a   :  { %v1271_v17 = vadd.f32 %v1901_v11, %v2708_v27  ;;  %v1904_v18 = vadd.f32 %v1903_v16, %v1902_v13  ;;  %v1967_v20 = vpop.f32.mrb[35].mxu1 }
 0x13b   :  { %v1968_v22 = vadd.f32 %v1967_v20, %v1966_v15 }
 0x13c   :  { %v1274_v23 = vadd.f32 %v1904_v18, %v2710_v29  ;;  %v2742_v24 = vadd.f32 %v1965_v14, %v1271_v17 }
 0x13e   :  { %v1905_v25 = vpop.f32.mrb[36].mxu0  ;;  %v2744_v26 = vadd.f32 %v1968_v22, %v1274_v23 }
 0x13f   :  { %v1969_v28 = vpop.f32.mrb[36].mxu1  ;;  %v1906_v30 = vpop.f32.mrb[37].mxu0 }
 0x140   :  { %v1907_v31 = vadd.f32 %v1906_v30, %v1905_v25  ;;  %v1970_v32 = vpop.f32.mrb[37].mxu1  ;;  %v1908_v33 = vpop.f32.mrb[38].mxu0 }
 0x141   :  { %v1971_v34 = vadd.f32 %v1970_v32, %v1969_v28  ;;  %v1972_v36 = vpop.f32.mrb[38].mxu1  ;;  %v1909_v38 = vpop.f32.mrb[39].mxu0 }
 0x142   :  { %v1279_v27 = vadd.f32 %v1907_v31, %v2712_v41  ;;  %v1910_v39 = vadd.f32 %v1909_v38, %v1908_v33  ;;  %v1973_v40 = vpop.f32.mrb[39].mxu1 }
 0x143   :  { %v1974_v42 = vadd.f32 %v1973_v40, %v1972_v36 }
 0x144   :  { %v1282_v29 = vadd.f32 %v1910_v39, %v2714_v43  ;;  %v2748_v44 = vadd.f32 %v1971_v34, %v1279_v27 }
 0x146   :  { %v1911_v45 = vpop.f32.mrb[40].mxu0  ;;  %v2750_v46 = vadd.f32 %v1974_v42, %v1282_v29 }
 0x147   :  { %v1975_v47 = vpop.f32.mrb[40].mxu1  ;;  %v1912_v48 = vpop.f32.mrb[41].mxu0 }
 0x148   :  { %v1913_v49 = vadd.f32 %v1912_v48, %v1911_v45  ;;  %v1976_v50 = vpop.f32.mrb[41].mxu1  ;;  %v1914_v52 = vpop.f32.mrb[42].mxu0 }
 0x149   :  { %v1977_v54 = vadd.f32 %v1976_v50, %v1975_v47  ;;  %v1978_v56 = vpop.f32.mrb[42].mxu1  ;;  %v1915_v58 = vpop.f32.mrb[43].mxu0 }
 0x14a   :  { %v1287_v41 = vadd.f32 %v1913_v49, %v2716_v55  ;;  %v1916_v59 = vadd.f32 %v1915_v58, %v1914_v52  ;;  %v1979_v60 = vpop.f32.mrb[43].mxu1 }
 0x14b   :  { %v1980_v61 = vadd.f32 %v1979_v60, %v1978_v56 }
 0x14c   :  { %v1290_v43 = vadd.f32 %v1916_v59, %v2718_v57  ;;  %v2754_v62 = vadd.f32 %v1977_v54, %v1287_v41 }
 0x14e   :  { %v1917_v63 = vpop.f32.mrb[44].mxu0  ;;  %v2756_v0 = vadd.f32 %v1980_v61, %v1290_v43 }
 0x14f   :  { %v1981_v1 = vpop.f32.mrb[44].mxu1  ;;  %v1918_v2 = vpop.f32.mrb[45].mxu0 }
 0x150   :  { %v1919_v4 = vadd.f32 %v1918_v2, %v1917_v63  ;;  %v1982_v8 = vpop.f32.mrb[45].mxu1  ;;  %v1920_v9 = vpop.f32.mrb[46].mxu0 }
 0x151   :  { %v1983_v10 = vadd.f32 %v1982_v8, %v1981_v1  ;;  %v1984_v11 = vpop.f32.mrb[46].mxu1  ;;  %v1921_v12 = vpop.f32.mrb[47].mxu0 }
 0x152   :  { %v1295_v55 = vadd.f32 %v1919_v4, %v2720_v5  ;;  %v1922_v13 = vadd.f32 %v1921_v12, %v1920_v9  ;;  %v1985_v14 = vpop.f32.mrb[47].mxu1 }
 0x153   :  { %v1986_v15 = vadd.f32 %v1985_v14, %v1984_v11 }
 0x154   :  { %v1298_v57 = vadd.f32 %v1922_v13, %v2722_v7  ;;  %v2760_v16 = vadd.f32 %v1983_v10, %v1295_v55 }
 0x156   :  { %v1923_v17 = vpop.f32.mrb[48].mxu0  ;;  %v2762_v18 = vadd.f32 %v1986_v15, %v1298_v57 }
 0x157   :  { %v1987_v20 = vpop.f32.mrb[48].mxu1  ;;  %v1924_v22 = vpop.f32.mrb[49].mxu0 }
 0x158   :  { %v1925_v23 = vadd.f32 %v1924_v22, %v1923_v17  ;;  %v1988_v25 = vpop.f32.mrb[49].mxu1  ;;  %v1926_v28 = vpop.f32.mrb[50].mxu0 }
 0x159   :  { %v1989_v30 = vadd.f32 %v1988_v25, %v1987_v20  ;;  %v1990_v31 = vpop.f32.mrb[50].mxu1  ;;  %v1927_v32 = vpop.f32.mrb[51].mxu0 }
 0x15a   :  { %v1303_v5 = vadd.f32 %v1925_v23, %v2724_v19  ;;  %v1928_v33 = vadd.f32 %v1927_v32, %v1926_v28  ;;  %v1991_v34 = vpop.f32.mrb[51].mxu1 }
 0x15b   :  { %v1992_v36 = vadd.f32 %v1991_v34, %v1990_v31 }
 0x15c   :  { %v1306_v7 = vadd.f32 %v1928_v33, %v2726_v21  ;;  %v2766_v38 = vadd.f32 %v1989_v30, %v1303_v5  ;;  %v2783_v33 = vld [vmem:[%s2887_s2] ss:$0 sm:$0xff] }
 0x15e   :  { %v1929_v27 = vpop.f32.mrb[52].mxu0  ;;  %v2768_v39 = vadd.f32 %v1992_v36, %v1306_v7 }
 0x15f   :  { %v1993_v40 = vpop.f32.mrb[52].mxu1  ;;  %v1930_v42 = vpop.f32.mrb[53].mxu0 }
 0x160   :  { %v1931_v29 = vadd.f32 %v1930_v42, %v1929_v27  ;;  %v1994_v45 = vpop.f32.mrb[53].mxu1  ;;  %v1932_v47 = vpop.f32.mrb[54].mxu0 }
 0x161   :  { %v1995_v48 = vadd.f32 %v1994_v45, %v1993_v40  ;;  %v1996_v49 = vpop.f32.mrb[54].mxu1  ;;  %v1933_v50 = vpop.f32.mrb[55].mxu0 }
 0x162   :  { %v1311_v19 = vadd.f32 %v1931_v29, %v2728_v35  ;;  %v1934_v52 = vadd.f32 %v1933_v50, %v1932_v47  ;;  %v1997_v54 = vpop.f32.mrb[55].mxu1 }
 0x163   :  { %v1998_v56 = vadd.f32 %v1997_v54, %v1996_v49 }
 0x164   :  { %v1314_v21 = vadd.f32 %v1934_v52, %v2730_v37  ;;  %v1408_v58 = vadd.f32 %v1995_v48, %v1311_v19 }
 0x166   :  { %v1935_v41 = vpop.f32.mrb[56].mxu0  ;;  %v1411_v59 = vadd.f32 %v1998_v56, %v1314_v21 }
 0x167   :  { %v1999_v60 = vpop.f32.mrb[56].mxu1  ;;  %v1936_v61 = vpop.f32.mrb[57].mxu0 }
 0x168   :  { %v1937_v43 = vadd.f32 %v1936_v61, %v1935_v41  ;;  %v2000_v63 = vpop.f32.mrb[57].mxu1  ;;  %v1938_v1 = vpop.f32.mrb[58].mxu0 }
 0x169   :  { %v2001_v2 = vadd.f32 %v2000_v63, %v1999_v60  ;;  %v2002_v4 = vpop.f32.mrb[58].mxu1  ;;  %v1939_v8 = vpop.f32.mrb[59].mxu0 }
 0x16a   :  { %v1319_v9 = vadd.f32 %v1937_v43, %v2732_v51  ;;  %v1940_v10 = vadd.f32 %v1939_v8, %v1938_v1  ;;  %v2003_v35 = vpop.f32.mrb[59].mxu1 }
 0x16b   :  { %v2004_v11 = vadd.f32 %v2003_v35, %v2002_v4 }
 0x16c   :  { %v1322_v12 = vadd.f32 %v1940_v10, %v2734_v53  ;;  %v2774_v55 = vadd.f32 %v2001_v2, %v1319_v9 }
 0x16e   :  { %v1941_v37 = vpop.f32.mrb[60].mxu0  ;;  %v2776_v13 = vadd.f32 %v2004_v11, %v1322_v12 }
 0x16f   :  { %v2005_v14 = vpop.f32.mrb[60].mxu1  ;;  %v1942_v15 = vpop.f32.mrb[61].mxu0 }
 0x170   :  { %v1943_v57 = vadd.f32 %v1942_v15, %v1941_v37  ;;  %v2006_v17 = vpop.f32.mrb[61].mxu1  ;;  %v1944_v20 = vpop.f32.mrb[62].mxu0 }
 0x171   :  { %v2007_v22 = vadd.f32 %v2006_v17, %v2005_v14  ;;  %v2008_v23 = vpop.f32.mrb[62].mxu1  ;;  %v1945_v25 = vpop.f32.mrb[63].mxu0 }
 0x172   :  { %v1327_v51 = vadd.f32 %v1943_v57, %v2736_v3  ;;  %v1946_v28 = vadd.f32 %v1945_v25, %v1944_v20  ;;  %v2009_v30 = vpop.f32.mrb[63].mxu1  ;;  %v2791_v3 = vld [vmem:[%s2888_s3] ss:$0 sm:$0xff] }
 0x173   :  { %v2010_v31 = vadd.f32 %v2009_v30, %v2008_v23 }
 0x174   :  { %v1330_v53 = vadd.f32 %v1946_v28, %v2738_v6  ;;  %v1424_v32 = vadd.f32 %v2007_v22, %v1327_v51 }
 0x176   :  { %v2045_v5 = vpop.f32.mrb[64].mxu0  ;;  %v2785_v34 = vadd.f32 %v2010_v31, %v1330_v53 }
 0x177   :  { %v1473_v36 = vadd.f32 %v2045_v5, %v2748_v44  ;;  %v2053_v7 = vpop.f32.mrb[64].mxu1  ;;  %v1464_v27 = vpop.f32.mrb[65].mxu0 }
 0x178   :  { %v1505_v40 = vadd.f32 %v2053_v7, %v1408_v58  ;;  %v1465_v6 = vadd.f32 %v1464_v27, %v2742_v24  ;;  %v1496_v42 = vpop.f32.mrb[65].mxu1  ;;  %v2046_v29 = vpop.f32.mrb[66].mxu0 }
 0x179   :  { %v1536_v45 = vmul.f32 %v2783_v33, %v1473_v36  ;;  %v1497_v47 = vadd.f32 %v1496_v42, %v2766_v38  ;;  %v1476_v48 = vadd.f32 %v2046_v29, %v2750_v46  ;;  %v2054_v49 = vpop.f32.mrb[66].mxu1  ;;  %v1467_v44 = vpop.f32.mrb[67].mxu0 }
 0x17a   :  { %v1544_v50 = vmul.f32 %v2783_v33, %v1505_v40  ;;  %v1534_v19 = vmul.f32 %v2783_v33, %v1465_v6  ;;  %v1508_v52 = vadd.f32 %v2054_v49, %v1411_v59  ;;  %v1468_v54 = vadd.f32 %v1467_v44, %v2744_v26  ;;  %v1499_v56 = vpop.f32.mrb[67].mxu1 }
 0x17b   :  { %v1559_v24 = vadd.f32 %v2791_v3, %v1536_v45  ;;  %v1542_v21 = vmul.f32 %v2783_v33, %v1497_v47  ;;  %v1537_v58 = vmul.f32 %v2783_v33, %v1476_v48  ;;  %v1500_v38 = vadd.f32 %v1499_v56, %v2768_v39 }
 0x17c   :  { %v1567_v46 = vadd.f32 %v2791_v3, %v1544_v50  ;;  %v1557_v41 = vadd.f32 %v2791_v3, %v1534_v19  ;;  %v1545_v60 = vmul.f32 %v2783_v33, %v1508_v52  ;;  %v1535_v61 = vmul.f32 %v2783_v33, %v1468_v54 }
 0x17d   :  { %v1575_v59 = vmax.f32 %v1559_v24, 0.0  ;;  %v1565_v26 = vadd.f32 %v2791_v3, %v1542_v21  ;;  %v1560_v43 = vadd.f32 %v2791_v3, %v1537_v58  ;;  %v1543_v63 = vmul.f32 %v2783_v33, %v1500_v38 }
 0x17e   :  { %v1583_v1 = vmax.f32 %v1567_v46, 0.0  ;;  %v1573_v2 = vmax.f32 %v1557_v41, 0.0  ;;  %v1568_v4 = vadd.f32 %v2791_v3, %v1545_v60  ;;  %v1558_v39 = vadd.f32 %v2791_v3, %v1535_v61  ;;  %v2049_v8 = vpop.f32.mrb[68].mxu0 }
 0x17f   :  { %1591 = vst [vmem:[%s2889_s4 + $0x10] sm:$0xff] %v1575_v59  ;;  %v1581_v9 = vmax.f32 %v1565_v26, 0.0  ;;  %v1576_v10 = vmax.f32 %v1560_v43, 0.0  ;;  %v1566_v35 = vadd.f32 %v2791_v3, %v1543_v63  ;;  %v1489_v11 = vadd.f32 %v2049_v8, %v2760_v16  ;;  %v2057_v12 = vpop.f32.mrb[68].mxu1  ;;  %v1480_v37 = vpop.f32.mrb[69].mxu0 }
 0x180   :  { %1599 = vst [vmem:[%s2889_s4 + $0x50] sm:$0xff] %v1583_v1  ;;  %1589 = vst [vmem:[%s2889_s4] sm:$0xff] %v1573_v2  ;;  %v1584_v14 = vmax.f32 %v1568_v4, 0.0  ;;  %v1574_v15 = vmax.f32 %v1558_v39, 0.0  ;;  %v1521_v57 = vadd.f32 %v2057_v12, %v1424_v32  ;;  %v1481_v17 = vadd.f32 %v1480_v37, %v2754_v62  ;;  %v1512_v20 = vpop.f32.mrb[69].mxu1  ;;  %v2050_v22 = vpop.f32.mrb[70].mxu0 }
 0x181   :  { %1597 = vst [vmem:[%s2889_s4 + $0x40] sm:$0xff] %v1581_v9  ;;  %1592 = vst [vmem:[%s2889_s4 + $0x18] sm:$0xff] %v1576_v10  ;;  %v1582_v16 = vmax.f32 %v1566_v35, 0.0  ;;  %v1540_v23 = vmul.f32 %v2783_v33, %v1489_v11  ;;  %v1513_v25 = vadd.f32 %v1512_v20, %v2774_v55  ;;  %v1492_v51 = vadd.f32 %v2050_v22, %v2762_v18  ;;  %v2058_v28 = vpop.f32.mrb[70].mxu1  ;;  %v1483_v30 = vpop.f32.mrb[71].mxu0 }
 0x182   :  { %1600 = vst [vmem:[%s2889_s4 + $0x58] sm:$0xff] %v1584_v14  ;;  %1590 = vst [vmem:[%s2889_s4 + $0x8] sm:$0xff] %v1574_v15  ;;  %v1548_v62 = vmul.f32 %v2783_v33, %v1521_v57  ;;  %v1538_v31 = vmul.f32 %v2783_v33, %v1481_v17  ;;  %v1524_v53 = vadd.f32 %v2058_v28, %v2785_v34  ;;  %v1515_v32 = vpop.f32.mrb[71].mxu1 }
 0x183   :  { %v1484_v55 = vadd.f32 %v1483_v30, %v2756_v0  ;;  %1598 = vst [vmem:[%s2889_s4 + $0x48] sm:$0xff] %v1582_v16  ;;  %v1563_v18 = vadd.f32 %v2791_v3, %v1540_v23  ;;  %v1546_v5 = vmul.f32 %v2783_v33, %v1513_v25  ;;  %v1541_v36 = vmul.f32 %v2783_v33, %v1492_v51 }
 0x184   :  { %v1516_v7 = vadd.f32 %v1515_v32, %v2776_v13  ;;  %v1571_v27 = vadd.f32 %v2791_v3, %v1548_v62  ;;  %v1561_v40 = vadd.f32 %v2791_v3, %v1538_v31  ;;  %v1549_v34 = vmul.f32 %v2783_v33, %v1524_v53 }
 0x185   :  { %v1539_v0 = vmul.f32 %v2783_v33, %v1484_v55  ;;  %v1579_v6 = vmax.f32 %v1563_v18, 0.0  ;;  %v1569_v42 = vadd.f32 %v2791_v3, %v1546_v5  ;;  %v1564_v29 = vadd.f32 %v2791_v3, %v1541_v36 }
 0x186   :  { %v1547_v45 = vmul.f32 %v2783_v33, %v1516_v7  ;;  %v1587_v47 = vmax.f32 %v1571_v27, 0.0  ;;  %v1577_v48 = vmax.f32 %v1561_v40, 0.0  ;;  %v1572_v49 = vadd.f32 %v2791_v3, %v1549_v34 }
 0x187   :  { %v1562_v13 = vadd.f32 %v2791_v3, %v1539_v0  ;;  %1595 = vst [vmem:[%s2889_s4 + $0x30] sm:$0xff] %v1579_v6  ;;  %v1585_v44 = vmax.f32 %v1569_v42, 0.0  ;;  %v1580_v50 = vmax.f32 %v1564_v29, 0.0 }
 0x188   :  { %v1570_v19 = vadd.f32 %v2791_v3, %v1547_v45  ;;  %1603 = vst [vmem:[%s2889_s4 + $0x70] sm:$0xff] %v1587_v47  ;;  %1593 = vst [vmem:[%s2889_s4 + $0x20] sm:$0xff] %v1577_v48  ;;  %v1588_v33 = vmax.f32 %v1572_v49, 0.0 }
 0x189   :  { %v1578_v52 = vmax.f32 %v1562_v13, 0.0  ;;  %1601 = vst [vmem:[%s2889_s4 + $0x60] sm:$0xff] %v1585_v44  ;;  %1596 = vst [vmem:[%s2889_s4 + $0x38] sm:$0xff] %v1580_v50 }
 0x18a   :  { %v1586_v54 = vmax.f32 %v1570_v19, 0.0  ;;  %1604 = vst [vmem:[%s2889_s4 + $0x78] sm:$0xff] %v1588_v33 }
 0x18b   :  { %1594 = vst [vmem:[%s2889_s4 + $0x28] sm:$0xff] %v1578_v52 }
 0x18c   :  { %1602 = vst [vmem:[%s2889_s4 + $0x68] sm:$0xff] %v1586_v54 }

// kernel: moco_resnet_classifier_forward.11
= control target key start
LH: loop header
LB: loop body
LE: loop exit
PB: predicated region body
PF: predicated region fallthrough
CT: control target
= control target key end

     0   :  { %s2976_s1 = inlined_call_operand.vmem [shape: bf16[1152,128], index: 1, kind: input, shape index: {}]   ;;  %s2977_s0 = inlined_call_operand.vmem [shape: bf16[128,1152], index: 0, kind: input, shape index: {}]   ;;  %s2978_s2 = inlined_call_operand.vmem [shape: f32[1,128], index: 2, kind: input, shape index: {}]   ;;  %s2979_s3 = inlined_call_operand.vmem [shape: f32[1,128], index: 3, kind: input, shape index: {}]   ;;  %s2980_s4 = inlined_call_operand.vmem [shape: f32[128,128], index: 4, kind: input, shape index: {}]   ;;  %s2981_s5 = inlined_call_operand.vmem [shape: f32[128,128], index: 5, kind: output, shape index: {}]  }
   0x1   :  { %v2110_v0 = vld [vmem:[%s2976_s1 + $0x40] sm:$0xff]   ;;  %v2114_v4 = vld [vmem:[%s2976_s1 + $0x48] sm:$0xff]   ;;  %v2118_v8 = vld [vmem:[%s2976_s1 + $0x50] sm:$0xff]  }
   0x2   :  { %v2111_v1 = vld [vmem:[%s2976_s1 + $0xc0] sm:$0xff]   ;;  %1790 = vmatprep.subr.bf16.mxu0 %v2110_v0  ;;  %v2115_v5 = vld [vmem:[%s2976_s1 + $0xc8] sm:$0xff]   ;;  %v2119_v9 = vld [vmem:[%s2976_s1 + $0xd0] sm:$0xff]  }
   0x3   :  { %v2112_v2 = vld [vmem:[%s2976_s1] sm:$0xff]   ;;  %1854 = vmatprep.subr.bf16.mxu1 %v2111_v1  ;;  %v2116_v6 = vld [vmem:[%s2976_s1 + $0x8] sm:$0xff]   ;;  %v2120_v10 = vld [vmem:[%s2976_s1 + $0x10] sm:$0xff]  }
   0x4   :  { %v2113_v3 = vld [vmem:[%s2976_s1 + $0x80] sm:$0xff]   ;;  %1791 = vmatpush3.bf16.msra.mxu0 %v2112_v2  ;;  %v2117_v7 = vld [vmem:[%s2976_s1 + $0x88] sm:$0xff]   ;;  %v2121_v11 = vld [vmem:[%s2976_s1 + $0x90] sm:$0xff]  }
   0x5   :  { %1855 = vmatpush3.bf16.msra.mxu1 %v2113_v3  ;;  %1792 = vmatprep.subr.bf16.mxu0 %v2114_v4  ;;  %v2122_v12 = vld [vmem:[%s2976_s1 + $0x58] sm:$0xff]   ;;  %v2126_v16 = vld [vmem:[%s2976_s1 + $0x60] sm:$0xff]   ;;  %v2130_v20 = vld [vmem:[%s2976_s1 + $0x68] sm:$0xff]  }
   0x6   :  { %1856 = vmatprep.subr.bf16.mxu1 %v2115_v5  ;;  %v2123_v13 = vld [vmem:[%s2976_s1 + $0xd8] sm:$0xff]   ;;  %v2127_v17 = vld [vmem:[%s2976_s1 + $0xe0] sm:$0xff]   ;;  %v2131_v21 = vld [vmem:[%s2976_s1 + $0xe8] sm:$0xff]  }
   0x7   :  { %v2124_v14 = vld [vmem:[%s2976_s1 + $0x18] sm:$0xff]   ;;  %v2128_v18 = vld [vmem:[%s2976_s1 + $0x20] sm:$0xff]   ;;  %v2132_v22 = vld [vmem:[%s2976_s1 + $0x28] sm:$0xff]  }
   0x8   :  { %1793 = vmatpush3.bf16.msra.mxu0 %v2116_v6  ;;  %v2125_v15 = vld [vmem:[%s2976_s1 + $0x98] sm:$0xff]   ;;  %v2129_v19 = vld [vmem:[%s2976_s1 + $0xa0] sm:$0xff]   ;;  %v2133_v23 = vld [vmem:[%s2976_s1 + $0xa8] sm:$0xff]  }
   0x9   :  { %1857 = vmatpush3.bf16.msra.mxu1 %v2117_v7  ;;  %1794 = vmatprep.subr.bf16.mxu0 %v2118_v8  ;;  %v2134_v24 = vld [vmem:[%s2976_s1 + $0x70] sm:$0xff]   ;;  %v2138_v28 = vld [vmem:[%s2976_s1 + $0x78] sm:$0xff]   ;;  %v2142_v32 = vld [vmem:[%s2977_s0] ss:$36 sps:$4 sm:$0xff]  }
   0xa   :  { %1858 = vmatprep.subr.bf16.mxu1 %v2119_v9  ;;  %v2135_v25 = vld [vmem:[%s2976_s1 + $0xf0] sm:$0xff]   ;;  %v2139_v29 = vld [vmem:[%s2976_s1 + $0xf8] sm:$0xff]   ;;  %v2144_v33 = vld [vmem:[%s2977_s0 + $0x4] ss:$36 sps:$4 sm:$0xff]  }
   0xb   :  { %v2136_v26 = vld [vmem:[%s2976_s1 + $0x30] sm:$0xff]   ;;  %v2140_v30 = vld [vmem:[%s2976_s1 + $0x38] sm:$0xff]   ;;  %v2145_v34 = vld [vmem:[%s2977_s0 + $0x8] ss:$36 sps:$4 sm:$0xff]   ;;  %1077 = vmatprep.mubr.bf16.mxu0 %v2144_v33 }
   0xc   :  { %1795 = vmatpush3.bf16.msra.mxu0 %v2120_v10  ;;  %v2137_v27 = vld [vmem:[%s2976_s1 + $0xb0] sm:$0xff]   ;;  %v2141_v31 = vld [vmem:[%s2976_s1 + $0xb8] sm:$0xff]   ;;  %v2148_v36 = vld [vmem:[%s2976_s1 + $0x140] sm:$0xff]  }
   0xd   :  { %1859 = vmatpush3.bf16.msra.mxu1 %v2121_v11  ;;  %1796 = vmatprep.subr.bf16.mxu0 %v2122_v12  ;;  %v2147_v35 = vld [vmem:[%s2977_s0 + $0xc] ss:$36 sps:$4 sm:$0xff]   ;;  %v2149_v37 = vld [vmem:[%s2976_s1 + $0x1c0] sm:$0xff]   ;;  %v2154_v41 = vld [vmem:[%s2977_s0 + $0x54] ss:$36 sps:$4 sm:$0xff]  }
   0xe   :  { %1860 = vmatprep.subr.bf16.mxu1 %v2123_v13  ;;  %1174 = vmatprep.mubr.bf16.mxu1 %v2147_v35  ;;  %v2150_v38 = vld [vmem:[%s2976_s1 + $0x100] sm:$0xff]   ;;  %v2152_v40 = vld [vmem:[%s2977_s0 + $0x4c] ss:$36 sps:$4 sm:$0xff]   ;;  %v2162_v48 = vld [vmem:[%s2977_s0 + $0x94] ss:$36 sps:$4 sm:$0xff]  }
   0xf   :  { %v2151_v39 = vld [vmem:[%s2976_s1 + $0x180] sm:$0xff]   ;;  %v2156_v42 = vld [vmem:[%s2977_s0 + $0x48] ss:$36 sps:$4 sm:$0xff]   ;;  %v2157_v43 = vld [vmem:[%s2977_s0 + $0x50] ss:$36 sps:$4 sm:$0xff]  }
  0x10   :  { %1797 = vmatpush3.bf16.msra.mxu0 %v2124_v14  ;;  %v2158_v44 = vld [vmem:[%s2976_s1 + $0x148] sm:$0xff]   ;;  %v2164_v49 = vld [vmem:[%s2977_s0 + $0x9c] ss:$36 sps:$4 sm:$0xff]   ;;  %v2166_v50 = vld [vmem:[%s2977_s0 + $0x90] ss:$36 sps:$4 sm:$0xff]  }
  0x11   :  { %1861 = vmatpush3.bf16.msra.mxu1 %v2125_v15  ;;  %1798 = vmatprep.subr.bf16.mxu0 %v2126_v16  ;;  %v2159_v45 = vld [vmem:[%s2976_s1 + $0x1c8] sm:$0xff]   ;;  %v2167_v51 = vld [vmem:[%s2977_s0 + $0x98] ss:$36 sps:$4 sm:$0xff]   ;;  %v2168_v52 = vld [vmem:[%s2976_s1 + $0x150] sm:$0xff]  }
  0x12   :  { %1862 = vmatprep.subr.bf16.mxu1 %v2127_v17  ;;  %v2160_v46 = vld [vmem:[%s2976_s1 + $0x108] sm:$0xff]   ;;  %v2169_v53 = vld [vmem:[%s2976_s1 + $0x1d0] sm:$0xff]   ;;  %v2172_v56 = vld [vmem:[%s2977_s0 + $0xdc] ss:$36 sps:$4 sm:$0xff]  }
  0x13   :  { %v2161_v47 = vld [vmem:[%s2976_s1 + $0x188] sm:$0xff]   ;;  %v2170_v54 = vld [vmem:[%s2976_s1 + $0x110] sm:$0xff]   ;;  %v2176_v58 = vld [vmem:[%s2977_s0 + $0xd8] ss:$36 sps:$4 sm:$0xff]  }
  0x14   :  { %1799 = vmatpush3.bf16.msra.mxu0 %v2128_v18  ;;  %v2171_v55 = vld [vmem:[%s2976_s1 + $0x190] sm:$0xff]   ;;  %v2174_v57 = vld [vmem:[%s2977_s0 + $0xe4] ss:$36 sps:$4 sm:$0xff]   ;;  %v2178_v60 = vld [vmem:[%s2976_s1 + $0x158] sm:$0xff]  }
  0x15   :  { %1863 = vmatpush3.bf16.msra.mxu1 %v2129_v19  ;;  %1800 = vmatprep.subr.bf16.mxu0 %v2130_v20  ;;  %v2177_v59 = vld [vmem:[%s2977_s0 + $0xe0] ss:$36 sps:$4 sm:$0xff]   ;;  %v2179_v61 = vld [vmem:[%s2976_s1 + $0x1d8] sm:$0xff]   ;;  %v2184_v1 = vld [vmem:[%s2977_s0 + $0x12c] ss:$36 sps:$4 sm:$0xff]  }
  0x16   :  { %1864 = vmatprep.subr.bf16.mxu1 %v2131_v21  ;;  %v2180_v62 = vld [vmem:[%s2976_s1 + $0x118] sm:$0xff]   ;;  %v2182_v0 = vld [vmem:[%s2977_s0 + $0x124] ss:$36 sps:$4 sm:$0xff]   ;;  %v2192_v8 = vld [vmem:[%s2977_s0 + $0x16c] ss:$36 sps:$4 sm:$0xff]  }
  0x17   :  { %v2181_v63 = vld [vmem:[%s2976_s1 + $0x198] sm:$0xff]   ;;  %v2186_v2 = vld [vmem:[%s2977_s0 + $0x120] ss:$36 sps:$4 sm:$0xff]   ;;  %v2187_v4 = vld [vmem:[%s2977_s0 + $0x128] ss:$36 sps:$4 sm:$0xff]  }
  0x18   :  { %1801 = vmatpush3.bf16.msra.mxu0 %v2132_v22  ;;  %v2188_v3 = vld [vmem:[%s2976_s1 + $0x160] sm:$0xff]   ;;  %v2194_v9 = vld [vmem:[%s2977_s0 + $0x174] ss:$36 sps:$4 sm:$0xff]   ;;  %v2198_v10 = vld [vmem:[%s2976_s1 + $0x168] sm:$0xff]  }
  0x19   :  { %1865 = vmatpush3.bf16.msra.mxu1 %v2133_v23  ;;  %1802 = vmatprep.subr.bf16.mxu0 %v2134_v24  ;;  %v2189_v5 = vld [vmem:[%s2976_s1 + $0x1e0] sm:$0xff]   ;;  %v2199_v11 = vld [vmem:[%s2976_s1 + $0x1e8] sm:$0xff]   ;;  %v2197_v15 = vld [vmem:[%s2977_s0 + $0x170] ss:$36 sps:$4 sm:$0xff]  }
  0x1a   :  { %1866 = vmatprep.subr.bf16.mxu1 %v2135_v25  ;;  %v2190_v6 = vld [vmem:[%s2976_s1 + $0x120] sm:$0xff]   ;;  %v2196_v12 = vld [vmem:[%s2977_s0 + $0x168] ss:$36 sps:$4 sm:$0xff]   ;;  %v2202_v16 = vld [vmem:[%s2977_s0 + $0x1b4] ss:$36 sps:$4 sm:$0xff]  }
  0x1b   :  { %v2191_v7 = vld [vmem:[%s2976_s1 + $0x1a0] sm:$0xff]   ;;  %v2200_v13 = vld [vmem:[%s2976_s1 + $0x128] sm:$0xff]   ;;  %v2208_v18 = vld [vmem:[%s2976_s1 + $0x170] sm:$0xff]  }
  0x1c   :  { %1803 = vmatpush3.bf16.msra.mxu0 %v2136_v26  ;;  %v2201_v14 = vld [vmem:[%s2976_s1 + $0x1a8] sm:$0xff]   ;;  %v2204_v17 = vld [vmem:[%s2977_s0 + $0x1bc] ss:$36 sps:$4 sm:$0xff]   ;;  %v2209_v19 = vld [vmem:[%s2976_s1 + $0x1f0] sm:$0xff]  }
  0x1d   :  { %1867 = vmatpush3.bf16.msra.mxu1 %v2137_v27  ;;  %1804 = vmatprep.subr.bf16.mxu0 %v2138_v28  ;;  %v2210_v20 = vld [vmem:[%s2976_s1 + $0x130] sm:$0xff]   ;;  %v2207_v23 = vld [vmem:[%s2977_s0 + $0x1b8] ss:$36 sps:$4 sm:$0xff]   ;;  %v2214_v25 = vld [vmem:[%s2977_s0 + $0x204] ss:$36 sps:$4 sm:$0xff]  }
  0x1e   :  { %1868 = vmatprep.subr.bf16.mxu1 %v2139_v29  ;;  %v2211_v21 = vld [vmem:[%s2976_s1 + $0x1b0] sm:$0xff]   ;;  %v2212_v24 = vld [vmem:[%s2977_s0 + $0x1fc] ss:$36 sps:$4 sm:$0xff]  }
  0x1f   :  { %v2206_v22 = vld [vmem:[%s2977_s0 + $0x1b0] ss:$36 sps:$4 sm:$0xff]   ;;  %v2218_v26 = vld [vmem:[%s2976_s1 + $0x178] sm:$0xff]  }
  0x20   :  { %1805 = vmatpush3.bf16.msra.mxu0 %v2140_v30  ;;  %v2219_v27 = vld [vmem:[%s2976_s1 + $0x1f8] sm:$0xff]   ;;  %v2222_v35 = vld [vmem:[%s2977_s0 + $0x10] ss:$36 sps:$4 sm:$0xff]  }
  0x21   :  { %1869 = vmatpush3.bf16.msra.mxu1 %v2141_v31  ;;  %1918 = vmatprep.subr.bf16.mxu0 %v2148_v36  ;;  %v2220_v28 = vld [vmem:[%s2976_s1 + $0x138] sm:$0xff]   ;;  %v2217_v31 = vld [vmem:[%s2977_s0 + $0x200] ss:$36 sps:$4 sm:$0xff]  }
  0x22   :  { %1982 = vmatprep.subr.bf16.mxu1 %v2149_v37  ;;  %v2221_v29 = vld [vmem:[%s2976_s1 + $0x1b8] sm:$0xff]  }
  0x23   :  { %1078 = vmatmul.mubr.bf16.vlgmr.msra.gmra.mrb[0].mxu0 %v2142_v32  ;;  %v2216_v30 = vld [vmem:[%s2977_s0 + $0x1f8] ss:$36 sps:$4 sm:$0xff]   ;;  %v2228_v32 = vld [vmem:[%s2976_s1 + $0x200] sm:$0xff]  }
  0x24   :  { %1175 = vmatmul.mubr.bf16.vlgmr.msra.gmra.mrb[0].mxu1 %v2145_v34  ;;  %1919 = vmatpush3.bf16.msra.mxu0 %v2150_v38  ;;  %v2224_v33 = vld [vmem:[%s2977_s0 + $0x14] ss:$36 sps:$4 sm:$0xff]   ;;  %v2227_v34 = vld [vmem:[%s2977_s0 + $0x1c] ss:$36 sps:$4 sm:$0xff]   ;;  %v2231_v38 = vld [vmem:[%s2977_s0 + $0x64] ss:$36 sps:$4 sm:$0xff]  }
  0x25   :  { %1983 = vmatpush3.bf16.msra.mxu1 %v2151_v39  ;;  %1085 = vmatprep.mubr.bf16.mxu0 %v2152_v40  ;;  %v2225_v36 = vld [vmem:[%s2977_s0 + $0x18] ss:$36 sps:$4 sm:$0xff]   ;;  %v2235_v39 = vld [vmem:[%s2976_s1 + $0x208] sm:$0xff]   ;;  %v2242_v40 = vld [vmem:[%s2976_s1 + $0x210] sm:$0xff]  }
  0x26   :  { %1182 = vmatprep.mubr.bf16.mxu1 %v2154_v41  ;;  %1920 = vmatprep.subr.bf16.mxu0 %v2158_v44  ;;  %v2229_v37 = vld [vmem:[%s2977_s0 + $0x5c] ss:$36 sps:$4 sm:$0xff]   ;;  %v2238_v44 = vld [vmem:[%s2977_s0 + $0xac] ss:$36 sps:$4 sm:$0xff]  }
  0x27   :  { %1984 = vmatprep.subr.bf16.mxu1 %v2159_v45  ;;  %v2233_v41 = vld [vmem:[%s2977_s0 + $0x58] ss:$36 sps:$4 sm:$0xff]  }
  0x28   :  { %1921 = vmatpush3.bf16.msra.mxu0 %v2160_v46  ;;  %v2249_v45 = vld [vmem:[%s2976_s1 + $0x218] sm:$0xff]   ;;  %v2256_v46 = vld [vmem:[%s2976_s1 + $0x220] sm:$0xff]  }
  0x29   :  { %1985 = vmatpush3.bf16.msra.mxu1 %v2161_v47  ;;  %1922 = vmatprep.subr.bf16.mxu0 %v2168_v52  ;;  %v2240_v47 = vld [vmem:[%s2977_s0 + $0xa0] ss:$36 sps:$4 sm:$0xff]   ;;  %v2247_v52 = vld [vmem:[%s2977_s0 + $0xe8] ss:$36 sps:$4 sm:$0xff]  }
  0x2a   :  { %1986 = vmatprep.subr.bf16.mxu1 %v2169_v53  ;;  %v2270_v53 = vld [vmem:[%s2976_s1 + $0x230] sm:$0xff]  }
  0x2b   :  { %1086 = vmatmul.mubr.bf16.gmra.mrb[4].mxu0 %v2156_v42  ;;  %v2234_v42 = vld [vmem:[%s2977_s0 + $0x60] ss:$36 sps:$4 sm:$0xff]  }
  0x2c   :  { %1183 = vmatmul.mubr.bf16.gmra.mrb[4].mxu1 %v2157_v43  ;;  %1093 = vmatprep.mubr.bf16.mxu0 %v2162_v48  ;;  %v2236_v43 = vld [vmem:[%s2977_s0 + $0xa4] ss:$36 sps:$4 sm:$0xff]  }
  0x2d   :  { %1190 = vmatprep.mubr.bf16.mxu1 %v2164_v49  ;;  %1923 = vmatpush3.bf16.msra.mxu0 %v2170_v54  ;;  %v2241_v48 = vld [vmem:[%s2977_s0 + $0xa8] ss:$36 sps:$4 sm:$0xff]   ;;  %v2248_v54 = vld [vmem:[%s2977_s0 + $0xf0] ss:$36 sps:$4 sm:$0xff]  }
  0x2e   :  { %1987 = vmatpush3.bf16.msra.mxu1 %v2171_v55  ;;  %1924 = vmatprep.subr.bf16.mxu0 %v2178_v60  ;;  %v2243_v49 = vld [vmem:[%s2977_s0 + $0xec] ss:$36 sps:$4 sm:$0xff]   ;;  %v2250_v55 = vld [vmem:[%s2977_s0 + $0x134] ss:$36 sps:$4 sm:$0xff]   ;;  %v2257_v60 = vld [vmem:[%s2977_s0 + $0x17c] ss:$36 sps:$4 sm:$0xff]  }
  0x2f   :  { %1988 = vmatprep.subr.bf16.mxu1 %v2179_v61  ;;  %v2259_v61 = vld [vmem:[%s2977_s0 + $0x184] ss:$36 sps:$4 sm:$0xff]  }
  0x31   :  { %1925 = vmatpush3.bf16.msra.mxu0 %v2180_v62  ;;  %v2261_v62 = vld [vmem:[%s2977_s0 + $0x178] ss:$36 sps:$4 sm:$0xff]  }
  0x32   :  { %1989 = vmatpush3.bf16.msra.mxu1 %v2181_v63  ;;  %1926 = vmatprep.subr.bf16.mxu0 %v2188_v3  ;;  %v2262_v63 = vld [vmem:[%s2977_s0 + $0x180] ss:$36 sps:$4 sm:$0xff]   ;;  %v2269_v3 = vld [vmem:[%s2977_s0 + $0x1c8] ss:$36 sps:$4 sm:$0xff]  }
  0x33   :  { %1094 = vmatmul.mubr.bf16.gmra.mrb[8].mxu0 %v2166_v50  ;;  %1990 = vmatprep.subr.bf16.mxu1 %v2189_v5  ;;  %v2245_v50 = vld [vmem:[%s2977_s0 + $0xf4] ss:$36 sps:$4 sm:$0xff]  }
  0x34   :  { %1191 = vmatmul.mubr.bf16.gmra.mrb[8].mxu1 %v2167_v51  ;;  %1101 = vmatprep.mubr.bf16.mxu0 %v2172_v56  ;;  %v2263_v51 = vld [vmem:[%s2976_s1 + $0x228] sm:$0xff]   ;;  %v2252_v56 = vld [vmem:[%s2977_s0 + $0x13c] ss:$36 sps:$4 sm:$0xff]   ;;  %v2273_v5 = vld [vmem:[%s2977_s0 + $0x214] ss:$36 sps:$4 sm:$0xff]  }
  0x35   :  { %1198 = vmatprep.mubr.bf16.mxu1 %v2174_v57  ;;  %1927 = vmatpush3.bf16.msra.mxu0 %v2190_v6  ;;  %v2277_v57 = vld [vmem:[%s2976_s1 + $0x238] sm:$0xff]   ;;  %v2275_v6 = vld [vmem:[%s2977_s0 + $0x208] ss:$36 sps:$4 sm:$0xff]  }
  0x36   :  { %1991 = vmatpush3.bf16.msra.mxu1 %v2191_v7  ;;  %1928 = vmatprep.subr.bf16.mxu0 %v2198_v10  ;;  %v2276_v7 = vld [vmem:[%s2977_s0 + $0x210] ss:$36 sps:$4 sm:$0xff]   ;;  %v2280_v10 = vld [vmem:[%s2977_s0 + $0x68] ss:$36 sps:$4 sm:$0xff]  }
  0x37   :  { %1992 = vmatprep.subr.bf16.mxu1 %v2199_v11  ;;  %v2281_v11 = vld [vmem:[%s2977_s0 + $0x188] ss:$36 sps:$4 sm:$0xff]  }
  0x39   :  { %1929 = vmatpush3.bf16.msra.mxu0 %v2200_v13  ;;  %v2283_v13 = vld [vmem:[%s2977_s0 + $0x1d0] ss:$36 sps:$4 sm:$0xff]  }
  0x3a   :  { %1993 = vmatpush3.bf16.msra.mxu1 %v2201_v14  ;;  %1930 = vmatprep.subr.bf16.mxu0 %v2208_v18  ;;  %v2284_v14 = vld [vmem:[%s2977_s0 + $0xf8] ss:$36 sps:$4 sm:$0xff]  }
  0x3b   :  { %1102 = vmatmul.mubr.bf16.gmra.mrb[12].mxu0 %v2176_v58  ;;  %1994 = vmatprep.subr.bf16.mxu1 %v2209_v19  ;;  %v2254_v58 = vld [vmem:[%s2977_s0 + $0x130] ss:$36 sps:$4 sm:$0xff]  }
  0x3c   :  { %1199 = vmatmul.mubr.bf16.gmra.mrb[12].mxu1 %v2177_v59  ;;  %1109 = vmatprep.mubr.bf16.mxu0 %v2182_v0  ;;  %v2255_v59 = vld [vmem:[%s2977_s0 + $0x138] ss:$36 sps:$4 sm:$0xff]   ;;  %v2264_v0 = vld [vmem:[%s2977_s0 + $0x1c4] ss:$36 sps:$4 sm:$0xff]  }
  0x3d   :  { %1206 = vmatprep.mubr.bf16.mxu1 %v2184_v1  ;;  %1931 = vmatpush3.bf16.msra.mxu0 %v2210_v20  ;;  %v2266_v1 = vld [vmem:[%s2977_s0 + $0x1cc] ss:$36 sps:$4 sm:$0xff]  }
  0x3e   :  { %1995 = vmatpush3.bf16.msra.mxu1 %v2211_v21  ;;  %1932 = vmatprep.subr.bf16.mxu0 %v2218_v26 }
  0x3f   :  { %1996 = vmatprep.subr.bf16.mxu1 %v2219_v27 }
  0x41   :  { %1933 = vmatpush3.bf16.msra.mxu0 %v2220_v28 }
  0x42   :  { %1997 = vmatpush3.bf16.msra.mxu1 %v2221_v29  ;;  %2062 = vmatprep.subr.bf16.mxu0 %v2228_v32 }
  0x43   :  { %1110 = vmatmul.mubr.bf16.gmra.mrb[16].mxu0 %v2186_v2  ;;  %2094 = vmatprep.subr.bf16.mxu1 %v2228_v32  ;;  %v2268_v2 = vld [vmem:[%s2977_s0 + $0x1c0] ss:$36 sps:$4 sm:$0xff]  }
  0x44   :  { %1207 = vmatmul.mubr.bf16.gmra.mrb[16].mxu1 %v2187_v4  ;;  %1117 = vmatprep.mubr.bf16.mxu0 %v2192_v8  ;;  %v2271_v4 = vld [vmem:[%s2977_s0 + $0x20c] ss:$36 sps:$4 sm:$0xff]   ;;  %v2278_v8 = vld [vmem:[%s2977_s0 + $0x20] ss:$36 sps:$4 sm:$0xff]  }
  0x45   :  { %1214 = vmatprep.mubr.bf16.mxu1 %v2194_v9  ;;  %v2279_v9 = vld [vmem:[%s2977_s0 + $0x140] ss:$36 sps:$4 sm:$0xff]  }
  0x4b   :  { %1118 = vmatmul.mubr.bf16.gmra.mrb[20].mxu0 %v2196_v12  ;;  %v2282_v12 = vld [vmem:[%s2977_s0 + $0xb0] ss:$36 sps:$4 sm:$0xff]  }
  0x4c   :  { %1215 = vmatmul.mubr.bf16.gmra.mrb[20].mxu1 %v2197_v15  ;;  %1125 = vmatprep.mubr.bf16.mxu0 %v2202_v16  ;;  %v2285_v15 = vld [vmem:[%s2977_s0 + $0x218] ss:$36 sps:$4 sm:$0xff]  }
  0x4d   :  { %1222 = vmatprep.mubr.bf16.mxu1 %v2204_v17 }
  0x53   :  { %1126 = vmatmul.mubr.bf16.gmra.mrb[24].mxu0 %v2206_v22 }
  0x54   :  { %1223 = vmatmul.mubr.bf16.gmra.mrb[24].mxu1 %v2207_v23  ;;  %1133 = vmatprep.mubr.bf16.mxu0 %v2212_v24 }
  0x55   :  { %1230 = vmatprep.mubr.bf16.mxu1 %v2214_v25 }
  0x5b   :  { %1134 = vmatmul.mubr.bf16.gmra.mrb[28].mxu0 %v2216_v30 }
  0x5c   :  { %1231 = vmatmul.mubr.bf16.gmra.mrb[28].mxu1 %v2217_v31  ;;  %1271 = vmatprep.mubr.bf16.mxu0 %v2224_v33 }
  0x5d   :  { %1368 = vmatprep.mubr.bf16.mxu1 %v2227_v34 }
  0x63   :  { %1272 = vmatmul.mubr.bf16.vlgmr.msra.gmra.mrb[32].mxu0 %v2222_v35 }
  0x64   :  { %1369 = vmatmul.mubr.bf16.vlgmr.msra.gmra.mrb[32].mxu1 %v2225_v36  ;;  %2063 = vmatpush3.bf16.msra.mxu0 %v2228_v32 }
  0x65   :  { %2102 = vmatpush3.bf16.msra.mxu1 %v2228_v32  ;;  %1279 = vmatprep.mubr.bf16.mxu0 %v2229_v37 }
  0x66   :  { %1376 = vmatprep.mubr.bf16.mxu1 %v2231_v38  ;;  %2064 = vmatprep.subr.bf16.mxu0 %v2235_v39 }
  0x67   :  { %2095 = vmatprep.subr.bf16.mxu1 %v2235_v39 }
  0x68   :  { %2065 = vmatpush3.bf16.msra.mxu0 %v2235_v39 }
  0x69   :  { %2103 = vmatpush3.bf16.msra.mxu1 %v2235_v39  ;;  %2066 = vmatprep.subr.bf16.mxu0 %v2242_v40 }
  0x6a   :  { %2096 = vmatprep.subr.bf16.mxu1 %v2242_v40 }
  0x6b   :  { %1280 = vmatmul.mubr.bf16.gmra.mrb[36].mxu0 %v2233_v41 }
  0x6c   :  { %1377 = vmatmul.mubr.bf16.gmra.mrb[36].mxu1 %v2234_v42  ;;  %1287 = vmatprep.mubr.bf16.mxu0 %v2236_v43 }
  0x6d   :  { %1384 = vmatprep.mubr.bf16.mxu1 %v2238_v44  ;;  %2067 = vmatpush3.bf16.msra.mxu0 %v2242_v40 }
  0x6e   :  { %2104 = vmatpush3.bf16.msra.mxu1 %v2242_v40  ;;  %2068 = vmatprep.subr.bf16.mxu0 %v2249_v45 }
  0x6f   :  { %2097 = vmatprep.subr.bf16.mxu1 %v2249_v45 }
  0x71   :  { %2069 = vmatpush3.bf16.msra.mxu0 %v2249_v45 }
  0x72   :  { %2105 = vmatpush3.bf16.msra.mxu1 %v2249_v45  ;;  %2070 = vmatprep.subr.bf16.mxu0 %v2256_v46 }
  0x73   :  { %1288 = vmatmul.mubr.bf16.gmra.mrb[40].mxu0 %v2240_v47  ;;  %2098 = vmatprep.subr.bf16.mxu1 %v2256_v46 }
  0x74   :  { %1385 = vmatmul.mubr.bf16.gmra.mrb[40].mxu1 %v2241_v48  ;;  %1295 = vmatprep.mubr.bf16.mxu0 %v2243_v49 }
  0x75   :  { %1392 = vmatprep.mubr.bf16.mxu1 %v2245_v50  ;;  %2071 = vmatpush3.bf16.msra.mxu0 %v2256_v46 }
  0x76   :  { %2106 = vmatpush3.bf16.msra.mxu1 %v2256_v46  ;;  %2072 = vmatprep.subr.bf16.mxu0 %v2263_v51 }
  0x77   :  { %2099 = vmatprep.subr.bf16.mxu1 %v2263_v51 }
  0x79   :  { %2073 = vmatpush3.bf16.msra.mxu0 %v2263_v51 }
  0x7a   :  { %2107 = vmatpush3.bf16.msra.mxu1 %v2263_v51  ;;  %2074 = vmatprep.subr.bf16.mxu0 %v2270_v53 }
  0x7b   :  { %1296 = vmatmul.mubr.bf16.gmra.mrb[44].mxu0 %v2247_v52  ;;  %2100 = vmatprep.subr.bf16.mxu1 %v2270_v53 }
  0x7c   :  { %1393 = vmatmul.mubr.bf16.gmra.mrb[44].mxu1 %v2248_v54  ;;  %1303 = vmatprep.mubr.bf16.mxu0 %v2250_v55 }
  0x7d   :  { %1400 = vmatprep.mubr.bf16.mxu1 %v2252_v56  ;;  %2075 = vmatpush3.bf16.msra.mxu0 %v2270_v53 }
  0x7e   :  { %2108 = vmatpush3.bf16.msra.mxu1 %v2270_v53  ;;  %2076 = vmatprep.subr.bf16.mxu0 %v2277_v57 }
  0x7f   :  { %2101 = vmatprep.subr.bf16.mxu1 %v2277_v57 }
  0x81   :  { %2077 = vmatpush3.bf16.msra.mxu0 %v2277_v57 }
  0x82   :  { %2109 = vmatpush3.bf16.msra.mxu1 %v2277_v57 }
  0x83   :  { %1304 = vmatmul.mubr.bf16.gmra.mrb[48].mxu0 %v2254_v58 }
  0x84   :  { %1401 = vmatmul.mubr.bf16.gmra.mrb[48].mxu1 %v2255_v59  ;;  %1311 = vmatprep.mubr.bf16.mxu0 %v2257_v60 }
  0x85   :  { %1408 = vmatprep.mubr.bf16.mxu1 %v2259_v61 }
  0x8b   :  { %1312 = vmatmul.mubr.bf16.gmra.mrb[52].mxu0 %v2261_v62 }
  0x8c   :  { %1409 = vmatmul.mubr.bf16.gmra.mrb[52].mxu1 %v2262_v63  ;;  %1319 = vmatprep.mubr.bf16.mxu0 %v2264_v0 }
  0x8d   :  { %1416 = vmatprep.mubr.bf16.mxu1 %v2266_v1 }
  0x93   :  { %1320 = vmatmul.mubr.bf16.gmra.mrb[56].mxu0 %v2268_v2 }
  0x94   :  { %1417 = vmatmul.mubr.bf16.gmra.mrb[56].mxu1 %v2269_v3  ;;  %1327 = vmatprep.mubr.bf16.mxu0 %v2271_v4 }
  0x95   :  { %1424 = vmatprep.mubr.bf16.mxu1 %v2273_v5 }
  0x9b   :  { %1328 = vmatmul.mubr.bf16.gmra.mrb[60].mxu0 %v2275_v6 }
  0x9c   :  { %1425 = vmatmul.mubr.bf16.gmra.mrb[60].mxu1 %v2276_v7  ;;  %2078 = vmatprep.mubr.bf16.mxu0 %v2278_v8 }
  0x9d   :  { %2086 = vmatprep.mubr.bf16.mxu1 %v2279_v9 }
  0xa3   :  { %2079 = vmatmul.mubr.bf16.vlgmr.msra.gmra.mrb[64].mxu0 %v2280_v10 }
  0xa4   :  { %2087 = vmatmul.mubr.bf16.vlgmr.msra.gmra.mrb[64].mxu1 %v2281_v11  ;;  %2082 = vmatprep.mubr.bf16.mxu0 %v2282_v12 }
  0xa5   :  { %2090 = vmatprep.mubr.bf16.mxu1 %v2283_v13 }
  0xab   :  { %2083 = vmatmul.mubr.bf16.gmra.mrb[68].mxu0 %v2284_v14 }
  0xac   :  { %2091 = vmatmul.mubr.bf16.gmra.mrb[68].mxu1 %v2285_v15 }
  0xf6   :  { %v1806_v16 = vpop.f32.mrb[0].mxu0 }
  0xf7   :  { %v1870_v17 = vpop.f32.mrb[0].mxu1  ;;  %v1807_v18 = vpop.f32.mrb[1].mxu0 }
  0xf8   :  { %v1808_v19 = vadd.f32 %v1807_v18, %v1806_v16  ;;  %v1871_v20 = vpop.f32.mrb[1].mxu1  ;;  %v1809_v21 = vpop.f32.mrb[2].mxu0 }
  0xf9   :  { %v1872_v22 = vadd.f32 %v1871_v20, %v1870_v17  ;;  %v1873_v23 = vpop.f32.mrb[2].mxu1  ;;  %v1810_v24 = vpop.f32.mrb[3].mxu0 }
  0xfa   :  { %v1811_v25 = vadd.f32 %v1810_v24, %v1809_v21  ;;  %v1874_v26 = vpop.f32.mrb[3].mxu1 }
  0xfb   :  { %v2748_v27 = vadd.f32 %v1872_v22, %v1808_v19  ;;  %v1875_v28 = vadd.f32 %v1874_v26, %v1873_v23 }
  0xfd   :  { %v2750_v29 = vadd.f32 %v1875_v28, %v1811_v25 }
  0xfe   :  { %v1812_v30 = vpop.f32.mrb[4].mxu0 }
  0xff   :  { %v1876_v31 = vpop.f32.mrb[4].mxu1  ;;  %v1813_v32 = vpop.f32.mrb[5].mxu0 }
 0x100   :  { %v1814_v33 = vadd.f32 %v1813_v32, %v1812_v30  ;;  %v1877_v34 = vpop.f32.mrb[5].mxu1  ;;  %v1815_v35 = vpop.f32.mrb[6].mxu0 }
 0x101   :  { %v1878_v36 = vadd.f32 %v1877_v34, %v1876_v31  ;;  %v1879_v37 = vpop.f32.mrb[6].mxu1  ;;  %v1816_v38 = vpop.f32.mrb[7].mxu0 }
 0x102   :  { %v1817_v39 = vadd.f32 %v1816_v38, %v1815_v35  ;;  %v1880_v40 = vpop.f32.mrb[7].mxu1 }
 0x103   :  { %v2752_v41 = vadd.f32 %v1878_v36, %v1814_v33  ;;  %v1881_v42 = vadd.f32 %v1880_v40, %v1879_v37 }
 0x105   :  { %v2754_v43 = vadd.f32 %v1881_v42, %v1817_v39 }
 0x106   :  { %v1818_v44 = vpop.f32.mrb[8].mxu0 }
 0x107   :  { %v1882_v45 = vpop.f32.mrb[8].mxu1  ;;  %v1819_v46 = vpop.f32.mrb[9].mxu0 }
 0x108   :  { %v1820_v47 = vadd.f32 %v1819_v46, %v1818_v44  ;;  %v1883_v48 = vpop.f32.mrb[9].mxu1  ;;  %v1821_v49 = vpop.f32.mrb[10].mxu0 }
 0x109   :  { %v1884_v50 = vadd.f32 %v1883_v48, %v1882_v45  ;;  %v1885_v51 = vpop.f32.mrb[10].mxu1  ;;  %v1822_v52 = vpop.f32.mrb[11].mxu0 }
 0x10a   :  { %v1823_v53 = vadd.f32 %v1822_v52, %v1821_v49  ;;  %v1886_v54 = vpop.f32.mrb[11].mxu1 }
 0x10b   :  { %v2756_v55 = vadd.f32 %v1884_v50, %v1820_v47  ;;  %v1887_v56 = vadd.f32 %v1886_v54, %v1885_v51 }
 0x10d   :  { %v2758_v57 = vadd.f32 %v1887_v56, %v1823_v53 }
 0x10e   :  { %v1824_v58 = vpop.f32.mrb[12].mxu0 }
 0x10f   :  { %v1888_v59 = vpop.f32.mrb[12].mxu1  ;;  %v1825_v60 = vpop.f32.mrb[13].mxu0 }
 0x110   :  { %v1826_v61 = vadd.f32 %v1825_v60, %v1824_v58  ;;  %v1889_v62 = vpop.f32.mrb[13].mxu1  ;;  %v1827_v63 = vpop.f32.mrb[14].mxu0 }
 0x111   :  { %v1890_v0 = vadd.f32 %v1889_v62, %v1888_v59  ;;  %v1891_v1 = vpop.f32.mrb[14].mxu1  ;;  %v1828_v2 = vpop.f32.mrb[15].mxu0 }
 0x112   :  { %v1829_v3 = vadd.f32 %v1828_v2, %v1827_v63  ;;  %v1892_v4 = vpop.f32.mrb[15].mxu1 }
 0x113   :  { %v2760_v5 = vadd.f32 %v1890_v0, %v1826_v61  ;;  %v1893_v6 = vadd.f32 %v1892_v4, %v1891_v1 }
 0x115   :  { %v2762_v7 = vadd.f32 %v1893_v6, %v1829_v3 }
 0x116   :  { %v1830_v8 = vpop.f32.mrb[16].mxu0 }
 0x117   :  { %v1894_v9 = vpop.f32.mrb[16].mxu1  ;;  %v1831_v10 = vpop.f32.mrb[17].mxu0 }
 0x118   :  { %v1832_v11 = vadd.f32 %v1831_v10, %v1830_v8  ;;  %v1895_v12 = vpop.f32.mrb[17].mxu1  ;;  %v1833_v13 = vpop.f32.mrb[18].mxu0 }
 0x119   :  { %v1896_v14 = vadd.f32 %v1895_v12, %v1894_v9  ;;  %v1897_v15 = vpop.f32.mrb[18].mxu1  ;;  %v1834_v16 = vpop.f32.mrb[19].mxu0 }
 0x11a   :  { %v1835_v17 = vadd.f32 %v1834_v16, %v1833_v13  ;;  %v1898_v18 = vpop.f32.mrb[19].mxu1 }
 0x11b   :  { %v2764_v19 = vadd.f32 %v1896_v14, %v1832_v11  ;;  %v1899_v20 = vadd.f32 %v1898_v18, %v1897_v15 }
 0x11d   :  { %v2766_v21 = vadd.f32 %v1899_v20, %v1835_v17 }
 0x11e   :  { %v1836_v22 = vpop.f32.mrb[20].mxu0 }
 0x11f   :  { %v1900_v23 = vpop.f32.mrb[20].mxu1  ;;  %v1837_v24 = vpop.f32.mrb[21].mxu0 }
 0x120   :  { %v1838_v25 = vadd.f32 %v1837_v24, %v1836_v22  ;;  %v1901_v26 = vpop.f32.mrb[21].mxu1  ;;  %v1839_v28 = vpop.f32.mrb[22].mxu0 }
 0x121   :  { %v1902_v30 = vadd.f32 %v1901_v26, %v1900_v23  ;;  %v1903_v31 = vpop.f32.mrb[22].mxu1  ;;  %v1840_v32 = vpop.f32.mrb[23].mxu0 }
 0x122   :  { %v1841_v33 = vadd.f32 %v1840_v32, %v1839_v28  ;;  %v1904_v34 = vpop.f32.mrb[23].mxu1 }
 0x123   :  { %v2768_v35 = vadd.f32 %v1902_v30, %v1838_v25  ;;  %v1905_v36 = vadd.f32 %v1904_v34, %v1903_v31 }
 0x125   :  { %v2770_v37 = vadd.f32 %v1905_v36, %v1841_v33 }
 0x126   :  { %v1842_v38 = vpop.f32.mrb[24].mxu0 }
 0x127   :  { %v1906_v39 = vpop.f32.mrb[24].mxu1  ;;  %v1843_v40 = vpop.f32.mrb[25].mxu0 }
 0x128   :  { %v1844_v42 = vadd.f32 %v1843_v40, %v1842_v38  ;;  %v1907_v44 = vpop.f32.mrb[25].mxu1  ;;  %v1845_v45 = vpop.f32.mrb[26].mxu0 }
 0x129   :  { %v1908_v46 = vadd.f32 %v1907_v44, %v1906_v39  ;;  %v1909_v47 = vpop.f32.mrb[26].mxu1  ;;  %v1846_v48 = vpop.f32.mrb[27].mxu0 }
 0x12a   :  { %v1847_v49 = vadd.f32 %v1846_v48, %v1845_v45  ;;  %v1910_v50 = vpop.f32.mrb[27].mxu1 }
 0x12b   :  { %v2772_v51 = vadd.f32 %v1908_v46, %v1844_v42  ;;  %v1911_v52 = vadd.f32 %v1910_v50, %v1909_v47 }
 0x12d   :  { %v2774_v53 = vadd.f32 %v1911_v52, %v1847_v49 }
 0x12e   :  { %v1848_v54 = vpop.f32.mrb[28].mxu0 }
 0x12f   :  { %v1912_v56 = vpop.f32.mrb[28].mxu1  ;;  %v1849_v58 = vpop.f32.mrb[29].mxu0 }
 0x130   :  { %v1850_v59 = vadd.f32 %v1849_v58, %v1848_v54  ;;  %v1913_v60 = vpop.f32.mrb[29].mxu1  ;;  %v1851_v61 = vpop.f32.mrb[30].mxu0 }
 0x131   :  { %v1914_v62 = vadd.f32 %v1913_v60, %v1912_v56  ;;  %v1915_v63 = vpop.f32.mrb[30].mxu1  ;;  %v1852_v0 = vpop.f32.mrb[31].mxu0 }
 0x132   :  { %v1853_v1 = vadd.f32 %v1852_v0, %v1851_v61  ;;  %v1916_v2 = vpop.f32.mrb[31].mxu1 }
 0x133   :  { %v2776_v3 = vadd.f32 %v1914_v62, %v1850_v59  ;;  %v1917_v4 = vadd.f32 %v1916_v2, %v1915_v63 }
 0x135   :  { %v2778_v6 = vadd.f32 %v1917_v4, %v1853_v1 }
 0x136   :  { %v1934_v8 = vpop.f32.mrb[32].mxu0 }
 0x137   :  { %v1998_v9 = vpop.f32.mrb[32].mxu1  ;;  %v1935_v10 = vpop.f32.mrb[33].mxu0 }
 0x138   :  { %v1936_v11 = vadd.f32 %v1935_v10, %v1934_v8  ;;  %v1999_v12 = vpop.f32.mrb[33].mxu1  ;;  %v1937_v13 = vpop.f32.mrb[34].mxu0 }
 0x139   :  { %v2000_v14 = vadd.f32 %v1999_v12, %v1998_v9  ;;  %v2001_v15 = vpop.f32.mrb[34].mxu1  ;;  %v1938_v16 = vpop.f32.mrb[35].mxu0 }
 0x13a   :  { %v1274_v17 = vadd.f32 %v1936_v11, %v2748_v27  ;;  %v1939_v18 = vadd.f32 %v1938_v16, %v1937_v13  ;;  %v2002_v20 = vpop.f32.mrb[35].mxu1 }
 0x13b   :  { %v2003_v22 = vadd.f32 %v2002_v20, %v2001_v15 }
 0x13c   :  { %v1277_v23 = vadd.f32 %v1939_v18, %v2750_v29  ;;  %v2782_v24 = vadd.f32 %v2000_v14, %v1274_v17 }
 0x13e   :  { %v1940_v25 = vpop.f32.mrb[36].mxu0  ;;  %v2784_v26 = vadd.f32 %v2003_v22, %v1277_v23 }
 0x13f   :  { %v2004_v28 = vpop.f32.mrb[36].mxu1  ;;  %v1941_v30 = vpop.f32.mrb[37].mxu0 }
 0x140   :  { %v1942_v31 = vadd.f32 %v1941_v30, %v1940_v25  ;;  %v2005_v32 = vpop.f32.mrb[37].mxu1  ;;  %v1943_v33 = vpop.f32.mrb[38].mxu0 }
 0x141   :  { %v2006_v34 = vadd.f32 %v2005_v32, %v2004_v28  ;;  %v2007_v36 = vpop.f32.mrb[38].mxu1  ;;  %v1944_v38 = vpop.f32.mrb[39].mxu0 }
 0x142   :  { %v1282_v27 = vadd.f32 %v1942_v31, %v2752_v41  ;;  %v1945_v39 = vadd.f32 %v1944_v38, %v1943_v33  ;;  %v2008_v40 = vpop.f32.mrb[39].mxu1 }
 0x143   :  { %v2009_v42 = vadd.f32 %v2008_v40, %v2007_v36 }
 0x144   :  { %v1285_v29 = vadd.f32 %v1945_v39, %v2754_v43  ;;  %v2788_v44 = vadd.f32 %v2006_v34, %v1282_v27 }
 0x146   :  { %v1946_v45 = vpop.f32.mrb[40].mxu0  ;;  %v2790_v46 = vadd.f32 %v2009_v42, %v1285_v29 }
 0x147   :  { %v2010_v47 = vpop.f32.mrb[40].mxu1  ;;  %v1947_v48 = vpop.f32.mrb[41].mxu0 }
 0x148   :  { %v1948_v49 = vadd.f32 %v1947_v48, %v1946_v45  ;;  %v2011_v50 = vpop.f32.mrb[41].mxu1  ;;  %v1949_v52 = vpop.f32.mrb[42].mxu0 }
 0x149   :  { %v2012_v54 = vadd.f32 %v2011_v50, %v2010_v47  ;;  %v2013_v56 = vpop.f32.mrb[42].mxu1  ;;  %v1950_v58 = vpop.f32.mrb[43].mxu0 }
 0x14a   :  { %v1290_v41 = vadd.f32 %v1948_v49, %v2756_v55  ;;  %v1951_v59 = vadd.f32 %v1950_v58, %v1949_v52  ;;  %v2014_v60 = vpop.f32.mrb[43].mxu1 }
 0x14b   :  { %v2015_v61 = vadd.f32 %v2014_v60, %v2013_v56 }
 0x14c   :  { %v1293_v43 = vadd.f32 %v1951_v59, %v2758_v57  ;;  %v2794_v62 = vadd.f32 %v2012_v54, %v1290_v41 }
 0x14e   :  { %v1952_v63 = vpop.f32.mrb[44].mxu0  ;;  %v2796_v0 = vadd.f32 %v2015_v61, %v1293_v43 }
 0x14f   :  { %v2016_v1 = vpop.f32.mrb[44].mxu1  ;;  %v1953_v2 = vpop.f32.mrb[45].mxu0 }
 0x150   :  { %v1954_v4 = vadd.f32 %v1953_v2, %v1952_v63  ;;  %v2017_v8 = vpop.f32.mrb[45].mxu1  ;;  %v1955_v9 = vpop.f32.mrb[46].mxu0 }
 0x151   :  { %v2018_v10 = vadd.f32 %v2017_v8, %v2016_v1  ;;  %v2019_v11 = vpop.f32.mrb[46].mxu1  ;;  %v1956_v12 = vpop.f32.mrb[47].mxu0 }
 0x152   :  { %v1298_v55 = vadd.f32 %v1954_v4, %v2760_v5  ;;  %v1957_v13 = vadd.f32 %v1956_v12, %v1955_v9  ;;  %v2020_v14 = vpop.f32.mrb[47].mxu1 }
 0x153   :  { %v2021_v15 = vadd.f32 %v2020_v14, %v2019_v11 }
 0x154   :  { %v1301_v57 = vadd.f32 %v1957_v13, %v2762_v7  ;;  %v2800_v16 = vadd.f32 %v2018_v10, %v1298_v55 }
 0x156   :  { %v1958_v17 = vpop.f32.mrb[48].mxu0  ;;  %v2802_v18 = vadd.f32 %v2021_v15, %v1301_v57 }
 0x157   :  { %v2022_v20 = vpop.f32.mrb[48].mxu1  ;;  %v1959_v22 = vpop.f32.mrb[49].mxu0 }
 0x158   :  { %v1960_v23 = vadd.f32 %v1959_v22, %v1958_v17  ;;  %v2023_v25 = vpop.f32.mrb[49].mxu1  ;;  %v1961_v28 = vpop.f32.mrb[50].mxu0 }
 0x159   :  { %v2024_v30 = vadd.f32 %v2023_v25, %v2022_v20  ;;  %v2025_v31 = vpop.f32.mrb[50].mxu1  ;;  %v1962_v32 = vpop.f32.mrb[51].mxu0 }
 0x15a   :  { %v1306_v5 = vadd.f32 %v1960_v23, %v2764_v19  ;;  %v1963_v33 = vadd.f32 %v1962_v32, %v1961_v28  ;;  %v2026_v34 = vpop.f32.mrb[51].mxu1 }
 0x15b   :  { %v2027_v36 = vadd.f32 %v2026_v34, %v2025_v31 }
 0x15c   :  { %v1309_v7 = vadd.f32 %v1963_v33, %v2766_v21  ;;  %v2806_v38 = vadd.f32 %v2024_v30, %v1306_v5  ;;  %v2825_v33 = vld [vmem:[%s2978_s2] ss:$0 sm:$0xff] }
 0x15e   :  { %v1964_v27 = vpop.f32.mrb[52].mxu0  ;;  %v2808_v39 = vadd.f32 %v2027_v36, %v1309_v7 }
 0x15f   :  { %v2028_v40 = vpop.f32.mrb[52].mxu1  ;;  %v1965_v42 = vpop.f32.mrb[53].mxu0 }
 0x160   :  { %v1966_v29 = vadd.f32 %v1965_v42, %v1964_v27  ;;  %v2029_v45 = vpop.f32.mrb[53].mxu1  ;;  %v1967_v47 = vpop.f32.mrb[54].mxu0 }
 0x161   :  { %v2030_v48 = vadd.f32 %v2029_v45, %v2028_v40  ;;  %v2031_v49 = vpop.f32.mrb[54].mxu1  ;;  %v1968_v50 = vpop.f32.mrb[55].mxu0 }
 0x162   :  { %v1314_v19 = vadd.f32 %v1966_v29, %v2768_v35  ;;  %v1969_v52 = vadd.f32 %v1968_v50, %v1967_v47  ;;  %v2032_v54 = vpop.f32.mrb[55].mxu1  ;;  %v1578_v50 = vld [vmem:[%s2980_s4 + $0x10] sm:$0xff] }
 0x163   :  { %v2033_v56 = vadd.f32 %v2032_v54, %v2031_v49 }
 0x164   :  { %v1317_v21 = vadd.f32 %v1969_v52, %v2770_v37  ;;  %v1411_v58 = vadd.f32 %v2030_v48, %v1314_v19 }
 0x166   :  { %v1970_v41 = vpop.f32.mrb[56].mxu0  ;;  %v1414_v59 = vadd.f32 %v2033_v56, %v1317_v21 }
 0x167   :  { %v2034_v60 = vpop.f32.mrb[56].mxu1  ;;  %v1971_v61 = vpop.f32.mrb[57].mxu0 }
 0x168   :  { %v1972_v43 = vadd.f32 %v1971_v61, %v1970_v41  ;;  %v2035_v63 = vpop.f32.mrb[57].mxu1  ;;  %v1973_v1 = vpop.f32.mrb[58].mxu0  ;;  %v1584_v61 = vld [vmem:[%s2980_s4 + $0x40] sm:$0xff] }
 0x169   :  { %v2036_v2 = vadd.f32 %v2035_v63, %v2034_v60  ;;  %v2037_v4 = vpop.f32.mrb[58].mxu1  ;;  %v1974_v8 = vpop.f32.mrb[59].mxu0 }
 0x16a   :  { %v1322_v9 = vadd.f32 %v1972_v43, %v2772_v51  ;;  %v1975_v10 = vadd.f32 %v1974_v8, %v1973_v1  ;;  %v2038_v35 = vpop.f32.mrb[59].mxu1  ;;  %v1579_v43 = vld [vmem:[%s2980_s4 + $0x18] sm:$0xff] }
 0x16b   :  { %v2039_v11 = vadd.f32 %v2038_v35, %v2037_v4  ;;  %v1587_v8 = vld [vmem:[%s2980_s4 + $0x58] sm:$0xff] }
 0x16c   :  { %v1325_v12 = vadd.f32 %v1975_v10, %v2774_v53  ;;  %v2814_v55 = vadd.f32 %v2036_v2, %v1322_v9  ;;  %v1577_v9 = vld [vmem:[%s2980_s4 + $0x8] sm:$0xff] }
 0x16e   :  { %v1976_v37 = vpop.f32.mrb[60].mxu0  ;;  %v2816_v13 = vadd.f32 %v2039_v11, %v1325_v12 }
 0x16f   :  { %v2040_v14 = vpop.f32.mrb[60].mxu1  ;;  %v1977_v15 = vpop.f32.mrb[61].mxu0 }
 0x170   :  { %v1978_v57 = vadd.f32 %v1977_v15, %v1976_v37  ;;  %v2041_v17 = vpop.f32.mrb[61].mxu1  ;;  %v1979_v20 = vpop.f32.mrb[62].mxu0 }
 0x171   :  { %v2042_v22 = vadd.f32 %v2041_v17, %v2040_v14  ;;  %v2043_v23 = vpop.f32.mrb[62].mxu1  ;;  %v1980_v25 = vpop.f32.mrb[63].mxu0  ;;  %v1585_v14 = vld [vmem:[%s2980_s4 + $0x48] sm:$0xff] }
 0x172   :  { %v1330_v51 = vadd.f32 %v1978_v57, %v2776_v3  ;;  %v1981_v28 = vadd.f32 %v1980_v25, %v1979_v20  ;;  %v2044_v30 = vpop.f32.mrb[63].mxu1  ;;  %v2833_v3 = vld [vmem:[%s2979_s3] ss:$0 sm:$0xff] }
 0x173   :  { %v2045_v31 = vadd.f32 %v2044_v30, %v2043_v23 }
 0x174   :  { %v1333_v53 = vadd.f32 %v1981_v28, %v2778_v6  ;;  %v2820_v32 = vadd.f32 %v2042_v22, %v1330_v51 }
 0x176   :  { %v2080_v5 = vpop.f32.mrb[64].mxu0  ;;  %v2827_v34 = vadd.f32 %v2045_v31, %v1333_v53 }
 0x177   :  { %v1476_v36 = vadd.f32 %v2080_v5, %v2788_v44  ;;  %v2088_v7 = vpop.f32.mrb[64].mxu1  ;;  %v1467_v27 = vpop.f32.mrb[65].mxu0 }
 0x178   :  { %v1508_v6 = vadd.f32 %v2088_v7, %v1411_v58  ;;  %v1468_v40 = vadd.f32 %v1467_v27, %v2782_v24  ;;  %v1499_v42 = vpop.f32.mrb[65].mxu1  ;;  %v2081_v29 = vpop.f32.mrb[66].mxu0 }
 0x179   :  { %v1539_v45 = vmul.f32 %v2825_v33, %v1476_v36  ;;  %v1500_v47 = vadd.f32 %v1499_v42, %v2806_v38  ;;  %v1479_v48 = vadd.f32 %v2081_v29, %v2790_v46  ;;  %v2089_v49 = vpop.f32.mrb[66].mxu1  ;;  %v1470_v44 = vpop.f32.mrb[67].mxu0  ;;  %v1586_v46 = vld [vmem:[%s2980_s4 + $0x50] sm:$0xff]  ;;  %v1576_v38 = vld [vmem:[%s2980_s4] sm:$0xff] }
 0x17a   :  { %v1547_v19 = vmul.f32 %v2825_v33, %v1508_v6  ;;  %v1537_v52 = vmul.f32 %v2825_v33, %v1468_v40  ;;  %v1511_v54 = vadd.f32 %v2089_v49, %v1414_v59  ;;  %v1471_v24 = vadd.f32 %v1470_v44, %v2784_v26  ;;  %v1502_v56 = vpop.f32.mrb[67].mxu1 }
 0x17b   :  { %v1562_v21 = vadd.f32 %v2833_v3, %v1539_v45  ;;  %v1545_v58 = vmul.f32 %v2825_v33, %v1500_v47  ;;  %v1540_v41 = vmul.f32 %v2825_v33, %v1479_v48  ;;  %v1503_v60 = vadd.f32 %v1502_v56, %v2808_v39  ;;  %v1580_v56 = vld [vmem:[%s2980_s4 + $0x20] sm:$0xff] }
 0x17c   :  { %v1570_v59 = vadd.f32 %v2833_v3, %v1547_v19  ;;  %v1560_v26 = vadd.f32 %v2833_v3, %v1537_v52  ;;  %v1548_v63 = vmul.f32 %v2825_v33, %v1511_v54  ;;  %v1538_v1 = vmul.f32 %v2825_v33, %v1471_v24  ;;  %v1590_v24 = vld [vmem:[%s2980_s4 + $0x70] sm:$0xff] }
 0x17d   :  { %v1594_v2 = vadd.f32 %v1578_v50, %v1562_v21  ;;  %v1568_v4 = vadd.f32 %v2833_v3, %v1545_v58  ;;  %v1563_v39 = vadd.f32 %v2833_v3, %v1540_v41  ;;  %v1546_v10 = vmul.f32 %v2825_v33, %v1503_v60  ;;  %v1588_v58 = vld [vmem:[%s2980_s4 + $0x60] sm:$0xff]  ;;  %v1583_v41 = vld [vmem:[%s2980_s4 + $0x38] sm:$0xff] }
 0x17e   :  { %v1602_v35 = vadd.f32 %v1586_v46, %v1570_v59  ;;  %v1592_v11 = vadd.f32 %v1576_v38, %v1560_v26  ;;  %v1571_v12 = vadd.f32 %v2833_v3, %v1548_v63  ;;  %v1561_v37 = vadd.f32 %v2833_v3, %v1538_v1  ;;  %v2084_v15 = vpop.f32.mrb[68].mxu0  ;;  %v1581_v63 = vld [vmem:[%s2980_s4 + $0x28] sm:$0xff] }
 0x17f   :  { %v1610_v57 = vmax.f32 %v1594_v2, 0.0  ;;  %v1600_v17 = vadd.f32 %v1584_v61, %v1568_v4  ;;  %v1595_v20 = vadd.f32 %v1579_v43, %v1563_v39  ;;  %v1569_v22 = vadd.f32 %v2833_v3, %v1546_v10  ;;  %v2092_v23 = vpop.f32.mrb[68].mxu1  ;;  %v1483_v25 = vpop.f32.mrb[69].mxu0  ;;  %v1591_v43 = vld [vmem:[%s2980_s4 + $0x78] sm:$0xff] }
 0x180   :  { %v1618_v51 = vmax.f32 %v1602_v35, 0.0  ;;  %v1608_v28 = vmax.f32 %v1592_v11, 0.0  ;;  %v1603_v30 = vadd.f32 %v1587_v8, %v1571_v12  ;;  %v1593_v31 = vadd.f32 %v1577_v9, %v1561_v37  ;;  %v1515_v53 = vpop.f32.mrb[69].mxu1  ;;  %v2085_v5 = vpop.f32.mrb[70].mxu0  ;;  %v1589_v9 = vld [vmem:[%s2980_s4 + $0x68] sm:$0xff] }
 0x181   :  { %1626 = vst [vmem:[%s2981_s5 + $0x10] sm:$0xff] %v1610_v57  ;;  %v1616_v36 = vmax.f32 %v1600_v17, 0.0  ;;  %v1611_v7 = vmax.f32 %v1595_v20, 0.0  ;;  %v1601_v27 = vadd.f32 %v1585_v14, %v1569_v22  ;;  %v1492_v6 = vadd.f32 %v2084_v15, %v2800_v16  ;;  %v2093_v40 = vpop.f32.mrb[70].mxu1  ;;  %v1486_v42 = vpop.f32.mrb[71].mxu0 }
 0x182   :  { %1634 = vst [vmem:[%s2981_s5 + $0x50] sm:$0xff] %v1618_v51  ;;  %1624 = vst [vmem:[%s2981_s5] sm:$0xff] %v1608_v28  ;;  %v1619_v29 = vmax.f32 %v1603_v30, 0.0  ;;  %v1609_v45 = vmax.f32 %v1593_v31, 0.0  ;;  %v1524_v47 = vadd.f32 %v2092_v23, %v2820_v32  ;;  %v1484_v48 = vadd.f32 %v1483_v25, %v2794_v62  ;;  %v1518_v49 = vpop.f32.mrb[71].mxu1  ;;  %v1582_v62 = vld [vmem:[%s2980_s4 + $0x30] sm:$0xff] }
 0x183   :  { %1632 = vst [vmem:[%s2981_s5 + $0x40] sm:$0xff] %v1616_v36  ;;  %1627 = vst [vmem:[%s2981_s5 + $0x18] sm:$0xff] %v1611_v7  ;;  %v1617_v16 = vmax.f32 %v1601_v27, 0.0  ;;  %v1543_v44 = vmul.f32 %v2825_v33, %v1492_v6  ;;  %v1516_v50 = vadd.f32 %v1515_v53, %v2814_v55  ;;  %v1495_v19 = vadd.f32 %v2085_v5, %v2802_v18 }
 0x184   :  { %1635 = vst [vmem:[%s2981_s5 + $0x58] sm:$0xff] %v1619_v29  ;;  %1625 = vst [vmem:[%s2981_s5 + $0x8] sm:$0xff] %v1609_v45  ;;  %v1551_v32 = vmul.f32 %v2825_v33, %v1524_v47  ;;  %v1541_v52 = vmul.f32 %v2825_v33, %v1484_v48  ;;  %v1527_v55 = vadd.f32 %v2093_v40, %v2827_v34 }
 0x185   :  { %v1487_v18 = vadd.f32 %v1486_v42, %v2796_v0  ;;  %1633 = vst [vmem:[%s2981_s5 + $0x48] sm:$0xff] %v1617_v16  ;;  %v1566_v54 = vadd.f32 %v2833_v3, %v1543_v44  ;;  %v1549_v21 = vmul.f32 %v2825_v33, %v1516_v50  ;;  %v1544_v34 = vmul.f32 %v2825_v33, %v1495_v19 }
 0x186   :  { %v1519_v0 = vadd.f32 %v1518_v49, %v2816_v13  ;;  %v1574_v46 = vadd.f32 %v2833_v3, %v1551_v32  ;;  %v1564_v38 = vadd.f32 %v2833_v3, %v1541_v52  ;;  %v1552_v60 = vmul.f32 %v2825_v33, %v1527_v55 }
 0x187   :  { %v1542_v59 = vmul.f32 %v2825_v33, %v1487_v18  ;;  %v1598_v26 = vadd.f32 %v1582_v62, %v1566_v54  ;;  %v1572_v61 = vadd.f32 %v2833_v3, %v1549_v21  ;;  %v1567_v13 = vadd.f32 %v2833_v3, %v1544_v34 }
 0x188   :  { %v1550_v1 = vmul.f32 %v2825_v33, %v1519_v0  ;;  %v1606_v2 = vadd.f32 %v1590_v24, %v1574_v46  ;;  %v1596_v4 = vadd.f32 %v1580_v56, %v1564_v38  ;;  %v1575_v39 = vadd.f32 %v2833_v3, %v1552_v60 }
 0x189   :  { %v1565_v8 = vadd.f32 %v2833_v3, %v1542_v59  ;;  %v1614_v10 = vmax.f32 %v1598_v26, 0.0  ;;  %v1604_v35 = vadd.f32 %v1588_v58, %v1572_v61  ;;  %v1599_v11 = vadd.f32 %v1583_v41, %v1567_v13 }
 0x18a   :  { %v1573_v12 = vadd.f32 %v2833_v3, %v1550_v1  ;;  %v1622_v37 = vmax.f32 %v1606_v2, 0.0  ;;  %v1612_v14 = vmax.f32 %v1596_v4, 0.0  ;;  %v1607_v15 = vadd.f32 %v1591_v43, %v1575_v39 }
 0x18b   :  { %v1597_v57 = vadd.f32 %v1581_v63, %v1565_v8  ;;  %1630 = vst [vmem:[%s2981_s5 + $0x30] sm:$0xff] %v1614_v10  ;;  %v1620_v33 = vmax.f32 %v1604_v35, 0.0  ;;  %v1615_v17 = vmax.f32 %v1599_v11, 0.0 }
 0x18c   :  { %v1605_v20 = vadd.f32 %v1589_v9, %v1573_v12  ;;  %1638 = vst [vmem:[%s2981_s5 + $0x70] sm:$0xff] %v1622_v37  ;;  %1628 = vst [vmem:[%s2981_s5 + $0x20] sm:$0xff] %v1612_v14  ;;  %v1623_v3 = vmax.f32 %v1607_v15, 0.0 }
 0x18d   :  { %v1613_v22 = vmax.f32 %v1597_v57, 0.0  ;;  %1636 = vst [vmem:[%s2981_s5 + $0x60] sm:$0xff] %v1620_v33  ;;  %1631 = vst [vmem:[%s2981_s5 + $0x38] sm:$0xff] %v1615_v17 }
 0x18e   :  { %v1621_v23 = vmax.f32 %v1605_v20, 0.0  ;;  %1639 = vst [vmem:[%s2981_s5 + $0x78] sm:$0xff] %v1623_v3 }
 0x18f   :  { %1629 = vst [vmem:[%s2981_s5 + $0x28] sm:$0xff] %v1613_v22 }
 0x190   :  { %1637 = vst [vmem:[%s2981_s5 + $0x68] sm:$0xff] %v1621_v23 }

// kernel: moco_resnet_classifier_forward.15
= control target key start
LH: loop header
LB: loop body
LE: loop exit
PB: predicated region body
PF: predicated region fallthrough
CT: control target
= control target key end

     0   :  { %v254_v3 = vmov 0.0|0.0   ;;  %vm255_vm0 = vmmov 0   ;;  %v256_v6 = vmov 0.0   ;;  %s353_s0 = inlined_call_operand.vmem [shape: f32[2,16,128], index: 0, kind: input, shape index: {}]   ;;  %s354_s1 = inlined_call_operand.vmem [shape: f32[128,128], index: 1, kind: input, shape index: {}]   ;;  %s355_s2 = inlined_call_operand.vmem [shape: f32[1,128], index: 2, kind: input, shape index: {}]   ;;  %s356_s3 = inlined_call_operand.hbm [shape: f32[2,128], index: 3, kind: output, shape index: {}]  }
   0x1   :  { %v36_v0 = vld [vmem:[%s354_s1] sm:$0xff]  ;;  %v37_v1 = vld [vmem:[%s354_s1 + $0x8] sm:$0xff]  ;;  %v38_v2 = vld [vmem:[%s354_s1 + $0x10] sm:$0xff]  ;;  %202 = vmatprep.subr.bf16.mxu0 %v254_v3  ;;  %199 = vmatprep.mubr.msk.f32.mxu0 %vm255_vm0, %v256_v6 }
   0x2   :  { %v203_v4 = vpack.c.bf16 %v37_v1, %v36_v0  ;;  %v39_v5 = vld [vmem:[%s354_s1 + $0x18] sm:$0xff]  ;;  %v40_v8 = vld [vmem:[%s354_s1 + $0x20] sm:$0xff]  ;;  %v41_v9 = vld [vmem:[%s354_s1 + $0x28] sm:$0xff] }
   0x3   :  { %v206_v7 = vpack.c.bf16 %v39_v5, %v38_v2  ;;  %v15_v10 = vld [vmem:[%s353_s0] sm:$0xff]  ;;  %v16_v11 = vld [vmem:[%s353_s0 + $0x8] sm:$0xff]  ;;  %v17_v12 = vld [vmem:[%s353_s0 + $0x10] sm:$0xff]  ;;  %v209_v15 = vpack.c.bf16 %v41_v9, %v40_v8 }
   0x4   :  { %204 = vmatpush3.bf16.msra.mxu0 %v203_v4  ;;  %v18_v13 = vld [vmem:[%s353_s0 + $0x18] sm:$0xff]  ;;  %v19_v14 = vadd.f32 %v16_v11, %v15_v10 }
   0x5   :  { %205 = vmatprep.subr.bf16.mxu0 %v254_v3  ;;  %v26_v16 = vadd.f32 %v18_v13, %v17_v12 }
   0x8   :  { %207 = vmatpush3.bf16.msra.mxu0 %v206_v7 }
   0x9   :  { %8 = vsyncpa [#allocation3], 0  ;;  %208 = vmatprep.subr.bf16.mxu0 %v254_v3  ;;  %v42_v17 = vld [vmem:[%s354_s1 + $0x30] sm:$0xff]  ;;  %v43_v18 = vld [vmem:[%s354_s1 + $0x38] sm:$0xff]  ;;  %v20_v19 = vrot.slane %v19_v14, 4  ;;  %v27_v20 = vrot.slane %v26_v16, 4 }
   0xa   :  { %v212_v22 = vpack.c.bf16 %v43_v18, %v42_v17  ;;  %v44_v24 = vld [vmem:[%s354_s1 + $0x40] sm:$0xff]  ;;  %v45_v25 = vld [vmem:[%s354_s1 + $0x48] sm:$0xff]  ;;  %v46_v31 = vld [vmem:[%s354_s1 + $0x50] sm:$0xff]  ;;  %vm61_vm1 = vcmask 1041409   ;;  %s257_s26 = smov [#allocation2]  }
   0xb   :  { %v21_v21 = vadd.f32 %v20_v19, %v19_v14  ;;  %v28_v23 = vadd.f32 %v27_v20, %v26_v16  ;;  %v215_v28 = vpack.c.bf16 %v45_v25, %v44_v24  ;;  %v47_v32 = vld [vmem:[%s354_s1 + $0x58] sm:$0xff]  ;;  %v48_v36 = vld [vmem:[%s354_s1 + $0x60] sm:$0xff]  ;;  %v49_v37 = vld [vmem:[%s354_s1 + $0x68] sm:$0xff]  ;;  %s141_s27 = sshll.u32 %s257_s26, 4  ;;  %s142_s27 = int_to_ptr.vmem [resolvable:$true] %s141_s27 }
   0xc   :  { %210 = vmatpush3.bf16.msra.mxu0 %v209_v15  ;;  %v218_v33 = vpack.c.bf16 %v47_v32, %v46_v31  ;;  %v221_v38 = vpack.c.bf16 %v49_v37, %v48_v36  ;;  %v50_v41 = vld [vmem:[%s354_s1 + $0x70] sm:$0xff]  ;;  %v51_v42 = vld [vmem:[%s354_s1 + $0x78] sm:$0xff]  ;;  %v149_v47 = vld [vmem:[%s355_s2] ss:$0 sm:$0xff]  ;;  %s230_s1 = scalar_lea.vmem %s142_s27, 32  ;;  %p235_p1 = scmp.lt.s32.totalorder %s142_s27, %s142_s27 }
   0xd   :  { %211 = vmatprep.subr.bf16.mxu0 %v254_v3  ;;  %v22_v26 = vrot.slane %v21_v21, 2  ;;  %v29_v27 = vrot.slane %v28_v23, 2  ;;  %v224_v43 = vpack.c.bf16 %v51_v42, %v50_v41  ;;  %p231_p0 = scmp.ne.s32.totalorder %s142_s27, %s230_s1  ;;  %p236_p2 = scmp.lt.s32.totalorder %s230_s1, %s230_s1 }
   0xf   :  { %v23_v29 = vadd.f32 %v22_v26, %v21_v21  ;;  %v30_v30 = vadd.f32 %v29_v27, %v28_v23  ;;  %p237_p3 = por %p236_p2, %p235_p1 }
  0x10   :  { %213 = vmatpush3.bf16.msra.mxu0 %v212_v22 }
  0x11   :  { %214 = vmatprep.subr.bf16.mxu0 %v254_v3  ;;  %v24_v34 = vrot.slane %v23_v29, 1  ;;  %v31_v35 = vrot.slane %v30_v30, 1  ;;  %p238_p4 = pnand %p237_p3, %p231_p0 }
  0x13   :  { %v25_v39 = vadd.f32 %v24_v34, %v23_v29  ;;  %v32_v40 = vadd.f32 %v31_v35, %v30_v30 }
  0x14   :  { %216 = vmatpush3.bf16.msra.mxu0 %v215_v28 }
  0x15   :  { %217 = vmatprep.subr.bf16.mxu0 %v254_v3  ;;  %v34_v44 = vmul.f32 0.0625, %v25_v39  ;;  %v35_v45 = vmul.f32 0.0625, %v32_v40 }
  0x17   :  { %v62_v46 = vsel %vm61_vm1, %v35_v45, %v34_v44 }
  0x18   :  { %219 = vmatpush3.bf16.msra.mxu0 %v218_v33 }
  0x19   :  { %220 = vmatprep.subr.bf16.mxu0 %v254_v3 }
  0x1c   :  { %222 = vmatpush3.bf16.msra.mxu0 %v221_v38 }
  0x1d   :  { %223 = vmatprep.subr.bf16.mxu0 %v254_v3 }
  0x20   :  { %225 = vmatpush3.bf16.msra.mxu0 %v224_v43 }
  0x23   :  { %200 = vmatmul.mubr.f32.vlgmr.msra.gmra.mrb[0].mxu0 %v62_v46 }
  0xf6   :  { %v130_v48 = vpop.f32.mrb[0].mxu0 }
  0xf7   :  { %v131_v49 = vadd.f32 %v149_v47, %v130_v48  ;;  %v201_v50 = vpop.f32.mrb[1].mxu0 }
  0xf9   :  { %134 = vst [vmem:[#allocation2] sm:$0x3] %v131_v49 }
  0xfa   :  { %241 = shalt.err (!%p238_p4)
}
  0xfb   :  { %s242_s30 = scalar_lea.hbm %s356_s3, 32 }
  0xfc   :  { %p243_p5 = scmp.ne.s32.totalorder %s356_s3, %s242_s30  ;;  %p246_p6 = scmp.lt.u32.totalorder %s242_s30, %s356_s3 }
  0xfe   :  { %p248_p7 = pnand %p246_p6, %p243_p5 }
 0x100   :  { %251 = shalt.err (!%p248_p7)
}
 0x101   :  { %144 = dma.vmem_to_hbm [thread:$0]  %s142_s27, 32, %s356_s3, [#allocation3]  }
 0x102   :  { %252 = dma.done.wait [#allocation3], 32  }
 0x103   :  { %253 = vsyncadd [#allocation3], 4294967264 }
 0x104   :  { %148 = vsyncpa [#allocation3], 1 }

// kernel: moco_resnet_classifier_forward.14
= control target key start
LH: loop header
LB: loop body
LE: loop exit
PB: predicated region body
PF: predicated region fallthrough
CT: control target
= control target key end

     0   :  { %s1658_s1 = inlined_call_operand.vmem [shape: bf16[1152,128], index: 1, kind: input, shape index: {}]   ;;  %s1659_s0 = inlined_call_operand.vmem [shape: bf16[32,1152], index: 0, kind: input, shape index: {}]   ;;  %s1660_s2 = inlined_call_operand.vmem [shape: f32[1,128], index: 2, kind: input, shape index: {}]   ;;  %s1661_s3 = inlined_call_operand.vmem [shape: f32[1,128], index: 3, kind: input, shape index: {}]   ;;  %s1662_s4 = inlined_call_operand.vmem [shape: f32[32,128], index: 4, kind: input, shape index: {}]   ;;  %s1663_s5 = inlined_call_operand.vmem [shape: f32[32,128], index: 5, kind: output, shape index: {}]  }
   0x1   :  { %v1230_v0 = vld [vmem:[%s1658_s1 + $0x40] sm:$0xff]   ;;  %v1234_v4 = vld [vmem:[%s1658_s1 + $0x48] sm:$0xff]   ;;  %v1238_v8 = vld [vmem:[%s1658_s1 + $0x50] sm:$0xff]  }
   0x2   :  { %v1231_v1 = vld [vmem:[%s1658_s1 + $0xc0] sm:$0xff]   ;;  %1088 = vmatprep.subr.bf16.mxu0 %v1230_v0  ;;  %v1235_v5 = vld [vmem:[%s1658_s1 + $0xc8] sm:$0xff]   ;;  %v1239_v9 = vld [vmem:[%s1658_s1 + $0xd0] sm:$0xff]  }
   0x3   :  { %v1232_v2 = vld [vmem:[%s1658_s1] sm:$0xff]   ;;  %1116 = vmatprep.subr.bf16.mxu1 %v1231_v1  ;;  %v1236_v6 = vld [vmem:[%s1658_s1 + $0x8] sm:$0xff]   ;;  %v1240_v10 = vld [vmem:[%s1658_s1 + $0x10] sm:$0xff]  }
   0x4   :  { %v1233_v3 = vld [vmem:[%s1658_s1 + $0x80] sm:$0xff]   ;;  %1089 = vmatpush3.bf16.msra.mxu0 %v1232_v2  ;;  %v1237_v7 = vld [vmem:[%s1658_s1 + $0x88] sm:$0xff]   ;;  %v1241_v11 = vld [vmem:[%s1658_s1 + $0x90] sm:$0xff]  }
   0x5   :  { %1117 = vmatpush3.bf16.msra.mxu1 %v1233_v3  ;;  %1090 = vmatprep.subr.bf16.mxu0 %v1234_v4  ;;  %v1242_v12 = vld [vmem:[%s1658_s1 + $0x58] sm:$0xff]   ;;  %v1246_v16 = vld [vmem:[%s1658_s1 + $0x60] sm:$0xff]   ;;  %v1250_v20 = vld [vmem:[%s1658_s1 + $0x68] sm:$0xff]  }
   0x6   :  { %1118 = vmatprep.subr.bf16.mxu1 %v1235_v5  ;;  %v1243_v13 = vld [vmem:[%s1658_s1 + $0xd8] sm:$0xff]   ;;  %v1247_v17 = vld [vmem:[%s1658_s1 + $0xe0] sm:$0xff]   ;;  %v1251_v21 = vld [vmem:[%s1658_s1 + $0xe8] sm:$0xff]  }
   0x7   :  { %v1244_v14 = vld [vmem:[%s1658_s1 + $0x18] sm:$0xff]   ;;  %v1248_v18 = vld [vmem:[%s1658_s1 + $0x20] sm:$0xff]   ;;  %v1252_v22 = vld [vmem:[%s1658_s1 + $0x28] sm:$0xff]  }
   0x8   :  { %1091 = vmatpush3.bf16.msra.mxu0 %v1236_v6  ;;  %v1245_v15 = vld [vmem:[%s1658_s1 + $0x98] sm:$0xff]   ;;  %v1249_v19 = vld [vmem:[%s1658_s1 + $0xa0] sm:$0xff]   ;;  %v1253_v23 = vld [vmem:[%s1658_s1 + $0xa8] sm:$0xff]  }
   0x9   :  { %1119 = vmatpush3.bf16.msra.mxu1 %v1237_v7  ;;  %1092 = vmatprep.subr.bf16.mxu0 %v1238_v8  ;;  %v1254_v24 = vld [vmem:[%s1658_s1 + $0x70] sm:$0xff]   ;;  %v1258_v28 = vld [vmem:[%s1658_s1 + $0x78] sm:$0xff]   ;;  %v1262_v32 = vld [vmem:[%s1659_s0] ss:$36 sps:$4 sm:$0xff]  }
   0xa   :  { %1120 = vmatprep.subr.bf16.mxu1 %v1239_v9  ;;  %v1255_v25 = vld [vmem:[%s1658_s1 + $0xf0] sm:$0xff]   ;;  %v1259_v29 = vld [vmem:[%s1658_s1 + $0xf8] sm:$0xff]   ;;  %v1264_v33 = vld [vmem:[%s1659_s0 + $0x4] ss:$36 sps:$4 sm:$0xff]  }
   0xb   :  { %v1256_v26 = vld [vmem:[%s1658_s1 + $0x30] sm:$0xff]   ;;  %v1260_v30 = vld [vmem:[%s1658_s1 + $0x38] sm:$0xff]   ;;  %v1265_v34 = vld [vmem:[%s1659_s0 + $0x8] ss:$36 sps:$4 sm:$0xff]   ;;  %741 = vmatprep.mubr.bf16.mxu0 %v1264_v33 }
   0xc   :  { %1093 = vmatpush3.bf16.msra.mxu0 %v1240_v10  ;;  %v1257_v27 = vld [vmem:[%s1658_s1 + $0xb0] sm:$0xff]   ;;  %v1261_v31 = vld [vmem:[%s1658_s1 + $0xb8] sm:$0xff]   ;;  %v1268_v36 = vld [vmem:[%s1658_s1 + $0x140] sm:$0xff]  }
   0xd   :  { %1121 = vmatpush3.bf16.msra.mxu1 %v1241_v11  ;;  %1094 = vmatprep.subr.bf16.mxu0 %v1242_v12  ;;  %v1267_v35 = vld [vmem:[%s1659_s0 + $0xc] ss:$36 sps:$4 sm:$0xff]   ;;  %v1269_v37 = vld [vmem:[%s1658_s1 + $0x100] sm:$0xff]   ;;  %v1280_v48 = vld [vmem:[%s1658_s1 + $0x158] sm:$0xff]  }
   0xe   :  { %1122 = vmatprep.subr.bf16.mxu1 %v1243_v13  ;;  %790 = vmatprep.mubr.bf16.mxu1 %v1267_v35  ;;  %v1270_v38 = vld [vmem:[%s1658_s1 + $0x1c0] sm:$0xff]   ;;  %v1272_v40 = vld [vmem:[%s1658_s1 + $0x148] sm:$0xff]   ;;  %v1276_v44 = vld [vmem:[%s1658_s1 + $0x150] sm:$0xff]  }
   0xf   :  { %v1271_v39 = vld [vmem:[%s1658_s1 + $0x180] sm:$0xff]   ;;  %v1273_v41 = vld [vmem:[%s1658_s1 + $0x108] sm:$0xff]   ;;  %v1277_v45 = vld [vmem:[%s1658_s1 + $0x110] sm:$0xff]  }
  0x10   :  { %1095 = vmatpush3.bf16.msra.mxu0 %v1244_v14  ;;  %v1274_v42 = vld [vmem:[%s1658_s1 + $0x1c8] sm:$0xff]   ;;  %v1278_v46 = vld [vmem:[%s1658_s1 + $0x1d0] sm:$0xff]   ;;  %v1281_v49 = vld [vmem:[%s1658_s1 + $0x118] sm:$0xff]  }
  0x11   :  { %1123 = vmatpush3.bf16.msra.mxu1 %v1245_v15  ;;  %1096 = vmatprep.subr.bf16.mxu0 %v1246_v16  ;;  %v1275_v43 = vld [vmem:[%s1658_s1 + $0x188] sm:$0xff]   ;;  %v1279_v47 = vld [vmem:[%s1658_s1 + $0x190] sm:$0xff]   ;;  %v1282_v50 = vld [vmem:[%s1658_s1 + $0x1d8] sm:$0xff]  }
  0x12   :  { %1124 = vmatprep.subr.bf16.mxu1 %v1247_v17  ;;  %v1283_v51 = vld [vmem:[%s1658_s1 + $0x198] sm:$0xff]   ;;  %v1284_v52 = vld [vmem:[%s1658_s1 + $0x160] sm:$0xff]   ;;  %v1288_v56 = vld [vmem:[%s1658_s1 + $0x168] sm:$0xff]  }
  0x13   :  { %v1285_v53 = vld [vmem:[%s1658_s1 + $0x120] sm:$0xff]   ;;  %v1289_v57 = vld [vmem:[%s1659_s0 + $0x4c] ss:$36 sps:$4 sm:$0xff]   ;;  %v1291_v58 = vld [vmem:[%s1659_s0 + $0x54] ss:$36 sps:$4 sm:$0xff]  }
  0x14   :  { %1097 = vmatpush3.bf16.msra.mxu0 %v1248_v18  ;;  %v1286_v54 = vld [vmem:[%s1658_s1 + $0x1e0] sm:$0xff]   ;;  %v1293_v59 = vld [vmem:[%s1658_s1 + $0x128] sm:$0xff]   ;;  %v1295_v61 = vld [vmem:[%s1659_s0 + $0x50] ss:$36 sps:$4 sm:$0xff]  }
  0x15   :  { %1125 = vmatpush3.bf16.msra.mxu1 %v1249_v19  ;;  %1098 = vmatprep.subr.bf16.mxu0 %v1250_v20  ;;  %v1287_v55 = vld [vmem:[%s1658_s1 + $0x1a0] sm:$0xff]   ;;  %v1294_v60 = vld [vmem:[%s1659_s0 + $0x48] ss:$36 sps:$4 sm:$0xff]   ;;  %v1298_v0 = vld [vmem:[%s1658_s1 + $0x170] sm:$0xff]  }
  0x16   :  { %1126 = vmatprep.subr.bf16.mxu1 %v1251_v21  ;;  %v1296_v62 = vld [vmem:[%s1658_s1 + $0x1e8] sm:$0xff]   ;;  %v1299_v1 = vld [vmem:[%s1658_s1 + $0x130] sm:$0xff]   ;;  %v1302_v4 = vld [vmem:[%s1658_s1 + $0x178] sm:$0xff]  }
  0x17   :  { %v1297_v63 = vld [vmem:[%s1658_s1 + $0x1a8] sm:$0xff]   ;;  %v1300_v2 = vld [vmem:[%s1658_s1 + $0x1f0] sm:$0xff]   ;;  %v1303_v5 = vld [vmem:[%s1658_s1 + $0x138] sm:$0xff]  }
  0x18   :  { %1099 = vmatpush3.bf16.msra.mxu0 %v1252_v22  ;;  %v1301_v3 = vld [vmem:[%s1658_s1 + $0x1b0] sm:$0xff]   ;;  %v1304_v6 = vld [vmem:[%s1658_s1 + $0x1f8] sm:$0xff]   ;;  %v1309_v10 = vld [vmem:[%s1658_s1 + $0x200] sm:$0xff]  }
  0x19   :  { %1127 = vmatpush3.bf16.msra.mxu1 %v1253_v23  ;;  %1100 = vmatprep.subr.bf16.mxu0 %v1254_v24  ;;  %v1305_v7 = vld [vmem:[%s1659_s0 + $0x10] ss:$36 sps:$4 sm:$0xff]   ;;  %v1308_v9 = vld [vmem:[%s1658_s1 + $0x1b8] sm:$0xff]   ;;  %v1313_v13 = vld [vmem:[%s1658_s1 + $0x208] sm:$0xff]  }
  0x1a   :  { %1128 = vmatprep.subr.bf16.mxu1 %v1255_v25  ;;  %v1307_v8 = vld [vmem:[%s1659_s0 + $0x14] ss:$36 sps:$4 sm:$0xff]   ;;  %v1312_v12 = vld [vmem:[%s1659_s0 + $0x1c] ss:$36 sps:$4 sm:$0xff]   ;;  %v1318_v17 = vld [vmem:[%s1659_s0 + $0x64] ss:$36 sps:$4 sm:$0xff]  }
  0x1b   :  { %v1310_v11 = vld [vmem:[%s1659_s0 + $0x18] ss:$36 sps:$4 sm:$0xff]   ;;  %v1317_v16 = vld [vmem:[%s1658_s1 + $0x210] sm:$0xff]   ;;  %v1320_v18 = vld [vmem:[%s1659_s0 + $0x60] ss:$36 sps:$4 sm:$0xff]  }
  0x1c   :  { %1101 = vmatpush3.bf16.msra.mxu0 %v1256_v26  ;;  %v1314_v14 = vld [vmem:[%s1659_s0 + $0x5c] ss:$36 sps:$4 sm:$0xff]   ;;  %v1323_v22 = vld [vmem:[%s1658_s1 + $0x228] sm:$0xff]   ;;  %v1324_v23 = vld [vmem:[%s1658_s1 + $0x230] sm:$0xff]  }
  0x1d   :  { %1129 = vmatpush3.bf16.msra.mxu1 %v1257_v27  ;;  %1102 = vmatprep.subr.bf16.mxu0 %v1258_v28  ;;  %v1316_v15 = vld [vmem:[%s1659_s0 + $0x58] ss:$36 sps:$4 sm:$0xff]   ;;  %v1322_v20 = vld [vmem:[%s1658_s1 + $0x220] sm:$0xff]   ;;  %v1327_v25 = vld [vmem:[%s1659_s0 + $0x68] ss:$36 sps:$4 sm:$0xff]  }
  0x1e   :  { %1130 = vmatprep.subr.bf16.mxu1 %v1259_v29  ;;  %v1321_v19 = vld [vmem:[%s1658_s1 + $0x218] sm:$0xff]   ;;  %v1326_v21 = vld [vmem:[%s1659_s0 + $0x20] ss:$36 sps:$4 sm:$0xff]  }
  0x1f   :  { %v1325_v24 = vld [vmem:[%s1658_s1 + $0x238] sm:$0xff]  }
  0x20   :  { %1103 = vmatpush3.bf16.msra.mxu0 %v1260_v30 }
  0x21   :  { %1131 = vmatpush3.bf16.msra.mxu1 %v1261_v31  ;;  %1144 = vmatprep.subr.bf16.mxu0 %v1268_v36 }
  0x22   :  { %1172 = vmatprep.subr.bf16.mxu1 %v1270_v38 }
  0x23   :  { %742 = vmatmul.mubr.bf16.vlgmr.msra.gmra.mrb[0].mxu0 %v1262_v32 }
  0x24   :  { %791 = vmatmul.mubr.bf16.vlgmr.msra.gmra.mrb[0].mxu1 %v1265_v34  ;;  %1145 = vmatpush3.bf16.msra.mxu0 %v1269_v37 }
  0x25   :  { %1173 = vmatpush3.bf16.msra.mxu1 %v1271_v39  ;;  %1146 = vmatprep.subr.bf16.mxu0 %v1272_v40 }
  0x26   :  { %1174 = vmatprep.subr.bf16.mxu1 %v1274_v42  ;;  %749 = vmatprep.mubr.bf16.mxu0 %v1289_v57 }
  0x27   :  { %798 = vmatprep.mubr.bf16.mxu1 %v1291_v58 }
  0x28   :  { %1147 = vmatpush3.bf16.msra.mxu0 %v1273_v41 }
  0x29   :  { %1175 = vmatpush3.bf16.msra.mxu1 %v1275_v43  ;;  %1148 = vmatprep.subr.bf16.mxu0 %v1276_v44 }
  0x2a   :  { %1176 = vmatprep.subr.bf16.mxu1 %v1278_v46 }
  0x2b   :  { %750 = vmatmul.mubr.bf16.gmra.mrb[4].mxu0 %v1294_v60 }
  0x2c   :  { %1149 = vmatpush3.bf16.msra.mxu0 %v1277_v45  ;;  %799 = vmatmul.mubr.bf16.gmra.mrb[4].mxu1 %v1295_v61 }
  0x2d   :  { %1177 = vmatpush3.bf16.msra.mxu1 %v1279_v47  ;;  %1150 = vmatprep.subr.bf16.mxu0 %v1280_v48 }
  0x2e   :  { %1178 = vmatprep.subr.bf16.mxu1 %v1282_v50  ;;  %839 = vmatprep.mubr.bf16.mxu0 %v1307_v8 }
  0x2f   :  { %888 = vmatprep.mubr.bf16.mxu1 %v1312_v12 }
  0x30   :  { %1151 = vmatpush3.bf16.msra.mxu0 %v1281_v49 }
  0x31   :  { %1179 = vmatpush3.bf16.msra.mxu1 %v1283_v51  ;;  %1152 = vmatprep.subr.bf16.mxu0 %v1284_v52 }
  0x32   :  { %1180 = vmatprep.subr.bf16.mxu1 %v1286_v54 }
  0x34   :  { %1153 = vmatpush3.bf16.msra.mxu0 %v1285_v53 }
  0x35   :  { %1181 = vmatpush3.bf16.msra.mxu1 %v1287_v55  ;;  %1154 = vmatprep.subr.bf16.mxu0 %v1288_v56 }
  0x36   :  { %1182 = vmatprep.subr.bf16.mxu1 %v1296_v62 }
  0x38   :  { %1155 = vmatpush3.bf16.msra.mxu0 %v1293_v59 }
  0x39   :  { %1183 = vmatpush3.bf16.msra.mxu1 %v1297_v63  ;;  %1156 = vmatprep.subr.bf16.mxu0 %v1298_v0 }
  0x3a   :  { %1184 = vmatprep.subr.bf16.mxu1 %v1300_v2 }
  0x3c   :  { %1157 = vmatpush3.bf16.msra.mxu0 %v1299_v1 }
  0x3d   :  { %1185 = vmatpush3.bf16.msra.mxu1 %v1301_v3  ;;  %1158 = vmatprep.subr.bf16.mxu0 %v1302_v4 }
  0x3e   :  { %1186 = vmatprep.subr.bf16.mxu1 %v1304_v6 }
  0x40   :  { %1159 = vmatpush3.bf16.msra.mxu0 %v1303_v5 }
  0x41   :  { %1187 = vmatpush3.bf16.msra.mxu1 %v1308_v9  ;;  %1210 = vmatprep.subr.bf16.mxu0 %v1309_v10 }
  0x43   :  { %840 = vmatmul.mubr.bf16.vlgmr.msra.gmra.mrb[8].mxu0 %v1305_v7 }
  0x44   :  { %1211 = vmatpush3.bf16.msra.mxu0 %v1309_v10  ;;  %889 = vmatmul.mubr.bf16.vlgmr.msra.gmra.mrb[8].mxu1 %v1310_v11 }
  0x45   :  { %1212 = vmatprep.subr.bf16.mxu0 %v1313_v13  ;;  %847 = vmatprep.mubr.bf16.mxu0 %v1314_v14 }
  0x46   :  { %896 = vmatprep.mubr.bf16.mxu1 %v1318_v17 }
  0x48   :  { %1213 = vmatpush3.bf16.msra.mxu0 %v1313_v13 }
  0x49   :  { %1214 = vmatprep.subr.bf16.mxu0 %v1317_v16 }
  0x4b   :  { %848 = vmatmul.mubr.bf16.gmra.mrb[12].mxu0 %v1316_v15 }
  0x4c   :  { %1215 = vmatpush3.bf16.msra.mxu0 %v1317_v16  ;;  %897 = vmatmul.mubr.bf16.gmra.mrb[12].mxu1 %v1320_v18 }
  0x4d   :  { %1216 = vmatprep.subr.bf16.mxu0 %v1321_v19  ;;  %1226 = vmatprep.mubr.bf16.mxu0 %v1326_v21 }
  0x50   :  { %1217 = vmatpush3.bf16.msra.mxu0 %v1321_v19 }
  0x51   :  { %1218 = vmatprep.subr.bf16.mxu0 %v1322_v20 }
  0x54   :  { %1219 = vmatpush3.bf16.msra.mxu0 %v1322_v20 }
  0x55   :  { %1220 = vmatprep.subr.bf16.mxu0 %v1323_v22 }
  0x58   :  { %1221 = vmatpush3.bf16.msra.mxu0 %v1323_v22 }
  0x59   :  { %1222 = vmatprep.subr.bf16.mxu0 %v1324_v23 }
  0x5c   :  { %1223 = vmatpush3.bf16.msra.mxu0 %v1324_v23  ;;  %v1086_v23 = vld [vmem:[%s1660_s2] ss:$0 sm:$0xff] }
  0x5d   :  { %1224 = vmatprep.subr.bf16.mxu0 %v1325_v24 }
  0x60   :  { %1225 = vmatpush3.bf16.msra.mxu0 %v1325_v24 }
  0x63   :  { %1227 = vmatmul.mubr.bf16.vlgmr.msra.gmra.mrb[16].mxu0 %v1327_v25 }
  0xf6   :  { %v1104_v26 = vpop.f32.mrb[0].mxu0 }
  0xf7   :  { %v1132_v27 = vpop.f32.mrb[0].mxu1  ;;  %v1105_v28 = vpop.f32.mrb[1].mxu0 }
  0xf8   :  { %v1106_v29 = vadd.f32 %v1105_v28, %v1104_v26  ;;  %v1133_v30 = vpop.f32.mrb[1].mxu1  ;;  %v1107_v31 = vpop.f32.mrb[2].mxu0  ;;  %v1087_v26 = vld [vmem:[%s1661_s3] ss:$0 sm:$0xff] }
  0xf9   :  { %v1134_v32 = vadd.f32 %v1133_v30, %v1132_v27  ;;  %v1135_v33 = vpop.f32.mrb[2].mxu1  ;;  %v1108_v34 = vpop.f32.mrb[3].mxu0 }
  0xfa   :  { %v1109_v35 = vadd.f32 %v1108_v34, %v1107_v31  ;;  %v1136_v36 = vpop.f32.mrb[3].mxu1 }
  0xfb   :  { %v793_v37 = vadd.f32 %v1134_v32, %v1106_v29  ;;  %v1137_v38 = vadd.f32 %v1136_v36, %v1135_v33  ;;  %v978_v32 = vld [vmem:[%s1662_s4 + $0x10] sm:$0xff]  ;;  %v976_v36 = vld [vmem:[%s1662_s4] sm:$0xff] }
  0xfd   :  { %v796_v39 = vadd.f32 %v1137_v38, %v1109_v35 }
  0xfe   :  { %v1110_v40 = vpop.f32.mrb[4].mxu0 }
  0xff   :  { %v1138_v41 = vpop.f32.mrb[4].mxu1  ;;  %v1111_v42 = vpop.f32.mrb[5].mxu0 }
 0x100   :  { %v1139_v43 = vpop.f32.mrb[5].mxu1  ;;  %v1112_v44 = vadd.f32 %v1111_v42, %v1110_v40  ;;  %v1113_v46 = vpop.f32.mrb[6].mxu0 }
 0x101   :  { %v1140_v45 = vadd.f32 %v1139_v43, %v1138_v41  ;;  %v1141_v47 = vpop.f32.mrb[6].mxu1  ;;  %v1114_v48 = vpop.f32.mrb[7].mxu0  ;;  %v977_v43 = vld [vmem:[%s1662_s4 + $0x8] sm:$0xff] }
 0x102   :  { %v1142_v49 = vpop.f32.mrb[7].mxu1  ;;  %v1115_v51 = vadd.f32 %v1114_v48, %v1113_v46 }
 0x103   :  { %v801_v50 = vadd.f32 %v1140_v45, %v1112_v44  ;;  %v1143_v52 = vadd.f32 %v1142_v49, %v1141_v47 }
 0x105   :  { %v804_v53 = vadd.f32 %v1143_v52, %v1115_v51 }
 0x116   :  { %v1160_v54 = vpop.f32.mrb[8].mxu0 }
 0x117   :  { %v1161_v55 = vpop.f32.mrb[9].mxu0  ;;  %v1188_v58 = vpop.f32.mrb[8].mxu1 }
 0x118   :  { %v1162_v56 = vadd.f32 %v1161_v55, %v1160_v54  ;;  %v1163_v57 = vpop.f32.mrb[10].mxu0  ;;  %v1189_v62 = vpop.f32.mrb[9].mxu1 }
 0x119   :  { %v1164_v59 = vpop.f32.mrb[11].mxu0  ;;  %v1190_v63 = vadd.f32 %v1189_v62, %v1188_v58  ;;  %v1191_v0 = vpop.f32.mrb[10].mxu1 }
 0x11a   :  { %v842_v60 = vadd.f32 %v1162_v56, %v793_v37  ;;  %v1165_v61 = vadd.f32 %v1164_v59, %v1163_v57  ;;  %v1192_v2 = vpop.f32.mrb[11].mxu1 }
 0x11b   :  { %v1193_v3 = vadd.f32 %v1192_v2, %v1191_v0 }
 0x11c   :  { %v845_v1 = vadd.f32 %v1165_v61, %v796_v39  ;;  %v891_v4 = vadd.f32 %v1190_v63, %v842_v60  ;;  %v979_v39 = vld [vmem:[%s1662_s4 + $0x18] sm:$0xff] }
 0x11e   :  { %v1166_v5 = vpop.f32.mrb[12].mxu0  ;;  %v894_v7 = vadd.f32 %v1193_v3, %v845_v1 }
 0x11f   :  { %v1167_v6 = vpop.f32.mrb[13].mxu0  ;;  %v1194_v10 = vpop.f32.mrb[12].mxu1 }
 0x120   :  { %v1168_v8 = vadd.f32 %v1167_v6, %v1166_v5  ;;  %v1169_v9 = vpop.f32.mrb[14].mxu0  ;;  %v1195_v14 = vpop.f32.mrb[13].mxu1 }
 0x121   :  { %v1170_v11 = vpop.f32.mrb[15].mxu0  ;;  %v1196_v15 = vadd.f32 %v1195_v14, %v1194_v10  ;;  %v1197_v16 = vpop.f32.mrb[14].mxu1 }
 0x122   :  { %v850_v12 = vadd.f32 %v1168_v8, %v801_v50  ;;  %v1171_v13 = vadd.f32 %v1170_v11, %v1169_v9  ;;  %v1198_v18 = vpop.f32.mrb[15].mxu1 }
 0x123   :  { %v1199_v19 = vadd.f32 %v1198_v18, %v1197_v16 }
 0x124   :  { %v853_v17 = vadd.f32 %v1171_v13, %v804_v53  ;;  %v899_v20 = vadd.f32 %v1196_v15, %v850_v12 }
 0x126   :  { %v902_v21 = vadd.f32 %v1199_v19, %v853_v17 }
 0x136   :  { %v1228_v22 = vpop.f32.mrb[16].mxu0 }
 0x137   :  { %v948_v24 = vadd.f32 %v1228_v22, %v899_v20  ;;  %v939_v25 = vpop.f32.mrb[17].mxu0 }
 0x138   :  { %v940_v27 = vadd.f32 %v939_v25, %v891_v4  ;;  %v1229_v28 = vpop.f32.mrb[18].mxu0 }
 0x139   :  { %v963_v29 = vmul.f32 %v1086_v23, %v948_v24  ;;  %v951_v30 = vadd.f32 %v1229_v28, %v902_v21  ;;  %v942_v31 = vpop.f32.mrb[19].mxu0 }
 0x13a   :  { %v961_v33 = vmul.f32 %v1086_v23, %v940_v27  ;;  %v943_v34 = vadd.f32 %v942_v31, %v894_v7 }
 0x13b   :  { %v974_v35 = vadd.f32 %v1087_v26, %v963_v29  ;;  %v964_v37 = vmul.f32 %v1086_v23, %v951_v30 }
 0x13c   :  { %v972_v38 = vadd.f32 %v1087_v26, %v961_v33  ;;  %v962_v40 = vmul.f32 %v1086_v23, %v943_v34 }
 0x13d   :  { %v982_v41 = vadd.f32 %v978_v32, %v974_v35  ;;  %v975_v42 = vadd.f32 %v1087_v26, %v964_v37 }
 0x13e   :  { %v980_v44 = vadd.f32 %v976_v36, %v972_v38  ;;  %v973_v45 = vadd.f32 %v1087_v26, %v962_v40 }
 0x13f   :  { %v986_v46 = vmax.f32 %v982_v41, 0.0  ;;  %v983_v47 = vadd.f32 %v979_v39, %v975_v42 }
 0x140   :  { %v984_v48 = vmax.f32 %v980_v44, 0.0  ;;  %v981_v49 = vadd.f32 %v977_v43, %v973_v45 }
 0x141   :  { %990 = vst [vmem:[%s1663_s5 + $0x10] sm:$0xff] %v986_v46  ;;  %v987_v50 = vmax.f32 %v983_v47, 0.0 }
 0x142   :  { %988 = vst [vmem:[%s1663_s5] sm:$0xff] %v984_v48  ;;  %v985_v51 = vmax.f32 %v981_v49, 0.0 }
 0x143   :  { %991 = vst [vmem:[%s1663_s5 + $0x18] sm:$0xff] %v987_v50 }
 0x144   :  { %989 = vst [vmem:[%s1663_s5 + $0x8] sm:$0xff] %v985_v51 }

// kernel: moco_resnet_classifier_forward.13
= control target key start
LH: loop header
LB: loop body
LE: loop exit
PB: predicated region body
PF: predicated region fallthrough
CT: control target
= control target key end

     0   :  { %s1630_s1 = inlined_call_operand.vmem [shape: bf16[1152,128], index: 1, kind: input, shape index: {}]   ;;  %s1631_s0 = inlined_call_operand.vmem [shape: bf16[32,1152], index: 0, kind: input, shape index: {}]   ;;  %s1632_s2 = inlined_call_operand.vmem [shape: f32[1,128], index: 2, kind: input, shape index: {}]   ;;  %s1633_s3 = inlined_call_operand.vmem [shape: f32[1,128], index: 3, kind: input, shape index: {}]   ;;  %s1634_s4 = inlined_call_operand.vmem [shape: f32[32,128], index: 4, kind: output, shape index: {}]  }
   0x1   :  { %v1219_v0 = vld [vmem:[%s1630_s1 + $0x40] sm:$0xff]   ;;  %v1223_v4 = vld [vmem:[%s1630_s1 + $0x48] sm:$0xff]   ;;  %v1227_v8 = vld [vmem:[%s1630_s1 + $0x50] sm:$0xff]  }
   0x2   :  { %v1220_v1 = vld [vmem:[%s1630_s1 + $0xc0] sm:$0xff]   ;;  %1077 = vmatprep.subr.bf16.mxu0 %v1219_v0  ;;  %v1224_v5 = vld [vmem:[%s1630_s1 + $0xc8] sm:$0xff]   ;;  %v1228_v9 = vld [vmem:[%s1630_s1 + $0xd0] sm:$0xff]  }
   0x3   :  { %v1221_v2 = vld [vmem:[%s1630_s1] sm:$0xff]   ;;  %1105 = vmatprep.subr.bf16.mxu1 %v1220_v1  ;;  %v1225_v6 = vld [vmem:[%s1630_s1 + $0x8] sm:$0xff]   ;;  %v1229_v10 = vld [vmem:[%s1630_s1 + $0x10] sm:$0xff]  }
   0x4   :  { %v1222_v3 = vld [vmem:[%s1630_s1 + $0x80] sm:$0xff]   ;;  %1078 = vmatpush3.bf16.msra.mxu0 %v1221_v2  ;;  %v1226_v7 = vld [vmem:[%s1630_s1 + $0x88] sm:$0xff]   ;;  %v1230_v11 = vld [vmem:[%s1630_s1 + $0x90] sm:$0xff]  }
   0x5   :  { %1106 = vmatpush3.bf16.msra.mxu1 %v1222_v3  ;;  %1079 = vmatprep.subr.bf16.mxu0 %v1223_v4  ;;  %v1231_v12 = vld [vmem:[%s1630_s1 + $0x58] sm:$0xff]   ;;  %v1235_v16 = vld [vmem:[%s1630_s1 + $0x60] sm:$0xff]   ;;  %v1239_v20 = vld [vmem:[%s1630_s1 + $0x68] sm:$0xff]  }
   0x6   :  { %1107 = vmatprep.subr.bf16.mxu1 %v1224_v5  ;;  %v1232_v13 = vld [vmem:[%s1630_s1 + $0xd8] sm:$0xff]   ;;  %v1236_v17 = vld [vmem:[%s1630_s1 + $0xe0] sm:$0xff]   ;;  %v1240_v21 = vld [vmem:[%s1630_s1 + $0xe8] sm:$0xff]  }
   0x7   :  { %v1233_v14 = vld [vmem:[%s1630_s1 + $0x18] sm:$0xff]   ;;  %v1237_v18 = vld [vmem:[%s1630_s1 + $0x20] sm:$0xff]   ;;  %v1241_v22 = vld [vmem:[%s1630_s1 + $0x28] sm:$0xff]  }
   0x8   :  { %1080 = vmatpush3.bf16.msra.mxu0 %v1225_v6  ;;  %v1234_v15 = vld [vmem:[%s1630_s1 + $0x98] sm:$0xff]   ;;  %v1238_v19 = vld [vmem:[%s1630_s1 + $0xa0] sm:$0xff]   ;;  %v1242_v23 = vld [vmem:[%s1630_s1 + $0xa8] sm:$0xff]  }
   0x9   :  { %1108 = vmatpush3.bf16.msra.mxu1 %v1226_v7  ;;  %1081 = vmatprep.subr.bf16.mxu0 %v1227_v8  ;;  %v1243_v24 = vld [vmem:[%s1630_s1 + $0x70] sm:$0xff]   ;;  %v1247_v28 = vld [vmem:[%s1630_s1 + $0x78] sm:$0xff]   ;;  %v1251_v32 = vld [vmem:[%s1631_s0] ss:$36 sps:$4 sm:$0xff]  }
   0xa   :  { %1109 = vmatprep.subr.bf16.mxu1 %v1228_v9  ;;  %v1244_v25 = vld [vmem:[%s1630_s1 + $0xf0] sm:$0xff]   ;;  %v1248_v29 = vld [vmem:[%s1630_s1 + $0xf8] sm:$0xff]   ;;  %v1253_v33 = vld [vmem:[%s1631_s0 + $0x4] ss:$36 sps:$4 sm:$0xff]  }
   0xb   :  { %v1245_v26 = vld [vmem:[%s1630_s1 + $0x30] sm:$0xff]   ;;  %v1249_v30 = vld [vmem:[%s1630_s1 + $0x38] sm:$0xff]   ;;  %v1254_v34 = vld [vmem:[%s1631_s0 + $0x8] ss:$36 sps:$4 sm:$0xff]   ;;  %738 = vmatprep.mubr.bf16.mxu0 %v1253_v33 }
   0xc   :  { %1082 = vmatpush3.bf16.msra.mxu0 %v1229_v10  ;;  %v1246_v27 = vld [vmem:[%s1630_s1 + $0xb0] sm:$0xff]   ;;  %v1250_v31 = vld [vmem:[%s1630_s1 + $0xb8] sm:$0xff]   ;;  %v1257_v36 = vld [vmem:[%s1630_s1 + $0x140] sm:$0xff]  }
   0xd   :  { %1110 = vmatpush3.bf16.msra.mxu1 %v1230_v11  ;;  %1083 = vmatprep.subr.bf16.mxu0 %v1231_v12  ;;  %v1256_v35 = vld [vmem:[%s1631_s0 + $0xc] ss:$36 sps:$4 sm:$0xff]   ;;  %v1258_v37 = vld [vmem:[%s1630_s1 + $0x100] sm:$0xff]   ;;  %v1269_v48 = vld [vmem:[%s1630_s1 + $0x158] sm:$0xff]  }
   0xe   :  { %1111 = vmatprep.subr.bf16.mxu1 %v1232_v13  ;;  %787 = vmatprep.mubr.bf16.mxu1 %v1256_v35  ;;  %v1259_v38 = vld [vmem:[%s1630_s1 + $0x1c0] sm:$0xff]   ;;  %v1261_v40 = vld [vmem:[%s1630_s1 + $0x148] sm:$0xff]   ;;  %v1265_v44 = vld [vmem:[%s1630_s1 + $0x150] sm:$0xff]  }
   0xf   :  { %v1260_v39 = vld [vmem:[%s1630_s1 + $0x180] sm:$0xff]   ;;  %v1262_v41 = vld [vmem:[%s1630_s1 + $0x108] sm:$0xff]   ;;  %v1266_v45 = vld [vmem:[%s1630_s1 + $0x110] sm:$0xff]  }
  0x10   :  { %1084 = vmatpush3.bf16.msra.mxu0 %v1233_v14  ;;  %v1263_v42 = vld [vmem:[%s1630_s1 + $0x1c8] sm:$0xff]   ;;  %v1267_v46 = vld [vmem:[%s1630_s1 + $0x1d0] sm:$0xff]   ;;  %v1270_v49 = vld [vmem:[%s1630_s1 + $0x118] sm:$0xff]  }
  0x11   :  { %1112 = vmatpush3.bf16.msra.mxu1 %v1234_v15  ;;  %1085 = vmatprep.subr.bf16.mxu0 %v1235_v16  ;;  %v1264_v43 = vld [vmem:[%s1630_s1 + $0x188] sm:$0xff]   ;;  %v1268_v47 = vld [vmem:[%s1630_s1 + $0x190] sm:$0xff]   ;;  %v1271_v50 = vld [vmem:[%s1630_s1 + $0x1d8] sm:$0xff]  }
  0x12   :  { %1113 = vmatprep.subr.bf16.mxu1 %v1236_v17  ;;  %v1272_v51 = vld [vmem:[%s1630_s1 + $0x198] sm:$0xff]   ;;  %v1273_v52 = vld [vmem:[%s1630_s1 + $0x160] sm:$0xff]   ;;  %v1277_v56 = vld [vmem:[%s1630_s1 + $0x168] sm:$0xff]  }
  0x13   :  { %v1274_v53 = vld [vmem:[%s1630_s1 + $0x120] sm:$0xff]   ;;  %v1278_v57 = vld [vmem:[%s1631_s0 + $0x4c] ss:$36 sps:$4 sm:$0xff]   ;;  %v1280_v58 = vld [vmem:[%s1631_s0 + $0x54] ss:$36 sps:$4 sm:$0xff]  }
  0x14   :  { %1086 = vmatpush3.bf16.msra.mxu0 %v1237_v18  ;;  %v1275_v54 = vld [vmem:[%s1630_s1 + $0x1e0] sm:$0xff]   ;;  %v1282_v59 = vld [vmem:[%s1630_s1 + $0x128] sm:$0xff]   ;;  %v1284_v61 = vld [vmem:[%s1631_s0 + $0x50] ss:$36 sps:$4 sm:$0xff]  }
  0x15   :  { %1114 = vmatpush3.bf16.msra.mxu1 %v1238_v19  ;;  %1087 = vmatprep.subr.bf16.mxu0 %v1239_v20  ;;  %v1276_v55 = vld [vmem:[%s1630_s1 + $0x1a0] sm:$0xff]   ;;  %v1283_v60 = vld [vmem:[%s1631_s0 + $0x48] ss:$36 sps:$4 sm:$0xff]   ;;  %v1287_v0 = vld [vmem:[%s1630_s1 + $0x170] sm:$0xff]  }
  0x16   :  { %1115 = vmatprep.subr.bf16.mxu1 %v1240_v21  ;;  %v1285_v62 = vld [vmem:[%s1630_s1 + $0x1e8] sm:$0xff]   ;;  %v1288_v1 = vld [vmem:[%s1630_s1 + $0x130] sm:$0xff]   ;;  %v1291_v4 = vld [vmem:[%s1630_s1 + $0x178] sm:$0xff]  }
  0x17   :  { %v1286_v63 = vld [vmem:[%s1630_s1 + $0x1a8] sm:$0xff]   ;;  %v1289_v2 = vld [vmem:[%s1630_s1 + $0x1f0] sm:$0xff]   ;;  %v1292_v5 = vld [vmem:[%s1630_s1 + $0x138] sm:$0xff]  }
  0x18   :  { %1088 = vmatpush3.bf16.msra.mxu0 %v1241_v22  ;;  %v1290_v3 = vld [vmem:[%s1630_s1 + $0x1b0] sm:$0xff]   ;;  %v1293_v6 = vld [vmem:[%s1630_s1 + $0x1f8] sm:$0xff]   ;;  %v1298_v10 = vld [vmem:[%s1630_s1 + $0x200] sm:$0xff]  }
  0x19   :  { %1116 = vmatpush3.bf16.msra.mxu1 %v1242_v23  ;;  %1089 = vmatprep.subr.bf16.mxu0 %v1243_v24  ;;  %v1294_v7 = vld [vmem:[%s1631_s0 + $0x10] ss:$36 sps:$4 sm:$0xff]   ;;  %v1297_v9 = vld [vmem:[%s1630_s1 + $0x1b8] sm:$0xff]   ;;  %v1302_v13 = vld [vmem:[%s1630_s1 + $0x208] sm:$0xff]  }
  0x1a   :  { %1117 = vmatprep.subr.bf16.mxu1 %v1244_v25  ;;  %v1296_v8 = vld [vmem:[%s1631_s0 + $0x14] ss:$36 sps:$4 sm:$0xff]   ;;  %v1301_v12 = vld [vmem:[%s1631_s0 + $0x1c] ss:$36 sps:$4 sm:$0xff]   ;;  %v1307_v17 = vld [vmem:[%s1631_s0 + $0x64] ss:$36 sps:$4 sm:$0xff]  }
  0x1b   :  { %v1299_v11 = vld [vmem:[%s1631_s0 + $0x18] ss:$36 sps:$4 sm:$0xff]   ;;  %v1306_v16 = vld [vmem:[%s1630_s1 + $0x210] sm:$0xff]   ;;  %v1309_v18 = vld [vmem:[%s1631_s0 + $0x60] ss:$36 sps:$4 sm:$0xff]  }
  0x1c   :  { %1090 = vmatpush3.bf16.msra.mxu0 %v1245_v26  ;;  %v1303_v14 = vld [vmem:[%s1631_s0 + $0x5c] ss:$36 sps:$4 sm:$0xff]   ;;  %v1312_v22 = vld [vmem:[%s1630_s1 + $0x228] sm:$0xff]   ;;  %v1313_v23 = vld [vmem:[%s1630_s1 + $0x230] sm:$0xff]  }
  0x1d   :  { %1118 = vmatpush3.bf16.msra.mxu1 %v1246_v27  ;;  %1091 = vmatprep.subr.bf16.mxu0 %v1247_v28  ;;  %v1305_v15 = vld [vmem:[%s1631_s0 + $0x58] ss:$36 sps:$4 sm:$0xff]   ;;  %v1311_v20 = vld [vmem:[%s1630_s1 + $0x220] sm:$0xff]   ;;  %v1316_v25 = vld [vmem:[%s1631_s0 + $0x68] ss:$36 sps:$4 sm:$0xff]  }
  0x1e   :  { %1119 = vmatprep.subr.bf16.mxu1 %v1248_v29  ;;  %v1310_v19 = vld [vmem:[%s1630_s1 + $0x218] sm:$0xff]   ;;  %v1315_v21 = vld [vmem:[%s1631_s0 + $0x20] ss:$36 sps:$4 sm:$0xff]  }
  0x1f   :  { %v1314_v24 = vld [vmem:[%s1630_s1 + $0x238] sm:$0xff]  }
  0x20   :  { %1092 = vmatpush3.bf16.msra.mxu0 %v1249_v30 }
  0x21   :  { %1120 = vmatpush3.bf16.msra.mxu1 %v1250_v31  ;;  %1133 = vmatprep.subr.bf16.mxu0 %v1257_v36 }
  0x22   :  { %1161 = vmatprep.subr.bf16.mxu1 %v1259_v38 }
  0x23   :  { %739 = vmatmul.mubr.bf16.vlgmr.msra.gmra.mrb[0].mxu0 %v1251_v32 }
  0x24   :  { %788 = vmatmul.mubr.bf16.vlgmr.msra.gmra.mrb[0].mxu1 %v1254_v34  ;;  %1134 = vmatpush3.bf16.msra.mxu0 %v1258_v37 }
  0x25   :  { %1162 = vmatpush3.bf16.msra.mxu1 %v1260_v39  ;;  %1135 = vmatprep.subr.bf16.mxu0 %v1261_v40 }
  0x26   :  { %1163 = vmatprep.subr.bf16.mxu1 %v1263_v42  ;;  %746 = vmatprep.mubr.bf16.mxu0 %v1278_v57 }
  0x27   :  { %795 = vmatprep.mubr.bf16.mxu1 %v1280_v58 }
  0x28   :  { %1136 = vmatpush3.bf16.msra.mxu0 %v1262_v41 }
  0x29   :  { %1164 = vmatpush3.bf16.msra.mxu1 %v1264_v43  ;;  %1137 = vmatprep.subr.bf16.mxu0 %v1265_v44 }
  0x2a   :  { %1165 = vmatprep.subr.bf16.mxu1 %v1267_v46 }
  0x2b   :  { %747 = vmatmul.mubr.bf16.gmra.mrb[4].mxu0 %v1283_v60 }
  0x2c   :  { %1138 = vmatpush3.bf16.msra.mxu0 %v1266_v45  ;;  %796 = vmatmul.mubr.bf16.gmra.mrb[4].mxu1 %v1284_v61 }
  0x2d   :  { %1166 = vmatpush3.bf16.msra.mxu1 %v1268_v47  ;;  %1139 = vmatprep.subr.bf16.mxu0 %v1269_v48 }
  0x2e   :  { %1167 = vmatprep.subr.bf16.mxu1 %v1271_v50  ;;  %836 = vmatprep.mubr.bf16.mxu0 %v1296_v8 }
  0x2f   :  { %885 = vmatprep.mubr.bf16.mxu1 %v1301_v12 }
  0x30   :  { %1140 = vmatpush3.bf16.msra.mxu0 %v1270_v49 }
  0x31   :  { %1168 = vmatpush3.bf16.msra.mxu1 %v1272_v51  ;;  %1141 = vmatprep.subr.bf16.mxu0 %v1273_v52 }
  0x32   :  { %1169 = vmatprep.subr.bf16.mxu1 %v1275_v54 }
  0x34   :  { %1142 = vmatpush3.bf16.msra.mxu0 %v1274_v53 }
  0x35   :  { %1170 = vmatpush3.bf16.msra.mxu1 %v1276_v55  ;;  %1143 = vmatprep.subr.bf16.mxu0 %v1277_v56 }
  0x36   :  { %1171 = vmatprep.subr.bf16.mxu1 %v1285_v62 }
  0x38   :  { %1144 = vmatpush3.bf16.msra.mxu0 %v1282_v59 }
  0x39   :  { %1172 = vmatpush3.bf16.msra.mxu1 %v1286_v63  ;;  %1145 = vmatprep.subr.bf16.mxu0 %v1287_v0 }
  0x3a   :  { %1173 = vmatprep.subr.bf16.mxu1 %v1289_v2 }
  0x3c   :  { %1146 = vmatpush3.bf16.msra.mxu0 %v1288_v1 }
  0x3d   :  { %1174 = vmatpush3.bf16.msra.mxu1 %v1290_v3  ;;  %1147 = vmatprep.subr.bf16.mxu0 %v1291_v4 }
  0x3e   :  { %1175 = vmatprep.subr.bf16.mxu1 %v1293_v6 }
  0x40   :  { %1148 = vmatpush3.bf16.msra.mxu0 %v1292_v5 }
  0x41   :  { %1176 = vmatpush3.bf16.msra.mxu1 %v1297_v9  ;;  %1199 = vmatprep.subr.bf16.mxu0 %v1298_v10 }
  0x43   :  { %837 = vmatmul.mubr.bf16.vlgmr.msra.gmra.mrb[8].mxu0 %v1294_v7 }
  0x44   :  { %1200 = vmatpush3.bf16.msra.mxu0 %v1298_v10  ;;  %886 = vmatmul.mubr.bf16.vlgmr.msra.gmra.mrb[8].mxu1 %v1299_v11 }
  0x45   :  { %1201 = vmatprep.subr.bf16.mxu0 %v1302_v13  ;;  %844 = vmatprep.mubr.bf16.mxu0 %v1303_v14 }
  0x46   :  { %893 = vmatprep.mubr.bf16.mxu1 %v1307_v17 }
  0x48   :  { %1202 = vmatpush3.bf16.msra.mxu0 %v1302_v13 }
  0x49   :  { %1203 = vmatprep.subr.bf16.mxu0 %v1306_v16 }
  0x4b   :  { %845 = vmatmul.mubr.bf16.gmra.mrb[12].mxu0 %v1305_v15 }
  0x4c   :  { %1204 = vmatpush3.bf16.msra.mxu0 %v1306_v16  ;;  %894 = vmatmul.mubr.bf16.gmra.mrb[12].mxu1 %v1309_v18 }
  0x4d   :  { %1205 = vmatprep.subr.bf16.mxu0 %v1310_v19  ;;  %1215 = vmatprep.mubr.bf16.mxu0 %v1315_v21 }
  0x50   :  { %1206 = vmatpush3.bf16.msra.mxu0 %v1310_v19 }
  0x51   :  { %1207 = vmatprep.subr.bf16.mxu0 %v1311_v20 }
  0x54   :  { %1208 = vmatpush3.bf16.msra.mxu0 %v1311_v20 }
  0x55   :  { %1209 = vmatprep.subr.bf16.mxu0 %v1312_v22 }
  0x58   :  { %1210 = vmatpush3.bf16.msra.mxu0 %v1312_v22 }
  0x59   :  { %1211 = vmatprep.subr.bf16.mxu0 %v1313_v23 }
  0x5c   :  { %1212 = vmatpush3.bf16.msra.mxu0 %v1313_v23  ;;  %v1075_v23 = vld [vmem:[%s1632_s2] ss:$0 sm:$0xff] }
  0x5d   :  { %1213 = vmatprep.subr.bf16.mxu0 %v1314_v24 }
  0x60   :  { %1214 = vmatpush3.bf16.msra.mxu0 %v1314_v24 }
  0x63   :  { %1216 = vmatmul.mubr.bf16.vlgmr.msra.gmra.mrb[16].mxu0 %v1316_v25 }
  0xf6   :  { %v1093_v26 = vpop.f32.mrb[0].mxu0 }
  0xf7   :  { %v1121_v27 = vpop.f32.mrb[0].mxu1  ;;  %v1094_v28 = vpop.f32.mrb[1].mxu0 }
  0xf8   :  { %v1095_v29 = vadd.f32 %v1094_v28, %v1093_v26  ;;  %v1122_v30 = vpop.f32.mrb[1].mxu1  ;;  %v1096_v31 = vpop.f32.mrb[2].mxu0  ;;  %v1076_v26 = vld [vmem:[%s1633_s3] ss:$0 sm:$0xff] }
  0xf9   :  { %v1123_v32 = vadd.f32 %v1122_v30, %v1121_v27  ;;  %v1124_v33 = vpop.f32.mrb[2].mxu1  ;;  %v1097_v34 = vpop.f32.mrb[3].mxu0 }
  0xfa   :  { %v1098_v35 = vadd.f32 %v1097_v34, %v1096_v31  ;;  %v1125_v36 = vpop.f32.mrb[3].mxu1 }
  0xfb   :  { %v790_v37 = vadd.f32 %v1123_v32, %v1095_v29  ;;  %v1126_v38 = vadd.f32 %v1125_v36, %v1124_v33 }
  0xfd   :  { %v793_v39 = vadd.f32 %v1126_v38, %v1098_v35 }
  0xfe   :  { %v1099_v40 = vpop.f32.mrb[4].mxu0 }
  0xff   :  { %v1127_v41 = vpop.f32.mrb[4].mxu1  ;;  %v1100_v42 = vpop.f32.mrb[5].mxu0 }
 0x100   :  { %v1128_v43 = vpop.f32.mrb[5].mxu1  ;;  %v1101_v44 = vadd.f32 %v1100_v42, %v1099_v40  ;;  %v1102_v46 = vpop.f32.mrb[6].mxu0 }
 0x101   :  { %v1129_v45 = vadd.f32 %v1128_v43, %v1127_v41  ;;  %v1130_v47 = vpop.f32.mrb[6].mxu1  ;;  %v1103_v48 = vpop.f32.mrb[7].mxu0 }
 0x102   :  { %v1131_v49 = vpop.f32.mrb[7].mxu1  ;;  %v1104_v51 = vadd.f32 %v1103_v48, %v1102_v46 }
 0x103   :  { %v798_v50 = vadd.f32 %v1129_v45, %v1101_v44  ;;  %v1132_v52 = vadd.f32 %v1131_v49, %v1130_v47 }
 0x105   :  { %v801_v53 = vadd.f32 %v1132_v52, %v1104_v51 }
 0x116   :  { %v1149_v54 = vpop.f32.mrb[8].mxu0 }
 0x117   :  { %v1150_v55 = vpop.f32.mrb[9].mxu0  ;;  %v1177_v58 = vpop.f32.mrb[8].mxu1 }
 0x118   :  { %v1151_v56 = vadd.f32 %v1150_v55, %v1149_v54  ;;  %v1152_v57 = vpop.f32.mrb[10].mxu0  ;;  %v1178_v62 = vpop.f32.mrb[9].mxu1 }
 0x119   :  { %v1153_v59 = vpop.f32.mrb[11].mxu0  ;;  %v1179_v63 = vadd.f32 %v1178_v62, %v1177_v58  ;;  %v1180_v0 = vpop.f32.mrb[10].mxu1 }
 0x11a   :  { %v839_v60 = vadd.f32 %v1151_v56, %v790_v37  ;;  %v1154_v61 = vadd.f32 %v1153_v59, %v1152_v57  ;;  %v1181_v2 = vpop.f32.mrb[11].mxu1 }
 0x11b   :  { %v1182_v3 = vadd.f32 %v1181_v2, %v1180_v0 }
 0x11c   :  { %v842_v1 = vadd.f32 %v1154_v61, %v793_v39  ;;  %v888_v4 = vadd.f32 %v1179_v63, %v839_v60 }
 0x11e   :  { %v1155_v5 = vpop.f32.mrb[12].mxu0  ;;  %v891_v7 = vadd.f32 %v1182_v3, %v842_v1 }
 0x11f   :  { %v1156_v6 = vpop.f32.mrb[13].mxu0  ;;  %v1183_v10 = vpop.f32.mrb[12].mxu1 }
 0x120   :  { %v1157_v8 = vadd.f32 %v1156_v6, %v1155_v5  ;;  %v1158_v9 = vpop.f32.mrb[14].mxu0  ;;  %v1184_v14 = vpop.f32.mrb[13].mxu1 }
 0x121   :  { %v1159_v11 = vpop.f32.mrb[15].mxu0  ;;  %v1185_v15 = vadd.f32 %v1184_v14, %v1183_v10  ;;  %v1186_v16 = vpop.f32.mrb[14].mxu1 }
 0x122   :  { %v847_v12 = vadd.f32 %v1157_v8, %v798_v50  ;;  %v1160_v13 = vadd.f32 %v1159_v11, %v1158_v9  ;;  %v1187_v18 = vpop.f32.mrb[15].mxu1 }
 0x123   :  { %v1188_v19 = vadd.f32 %v1187_v18, %v1186_v16 }
 0x124   :  { %v850_v17 = vadd.f32 %v1160_v13, %v801_v53  ;;  %v896_v20 = vadd.f32 %v1185_v15, %v847_v12 }
 0x126   :  { %v899_v21 = vadd.f32 %v1188_v19, %v850_v17 }
 0x136   :  { %v1217_v22 = vpop.f32.mrb[16].mxu0 }
 0x137   :  { %v945_v24 = vadd.f32 %v1217_v22, %v896_v20  ;;  %v936_v25 = vpop.f32.mrb[17].mxu0 }
 0x138   :  { %v937_v27 = vadd.f32 %v936_v25, %v888_v4  ;;  %v1218_v28 = vpop.f32.mrb[18].mxu0 }
 0x139   :  { %v960_v29 = vmul.f32 %v1075_v23, %v945_v24  ;;  %v948_v30 = vadd.f32 %v1218_v28, %v899_v21  ;;  %v939_v31 = vpop.f32.mrb[19].mxu0 }
 0x13a   :  { %v958_v32 = vmul.f32 %v1075_v23, %v937_v27  ;;  %v940_v33 = vadd.f32 %v939_v31, %v891_v7 }
 0x13b   :  { %v971_v34 = vadd.f32 %v1076_v26, %v960_v29  ;;  %v961_v35 = vmul.f32 %v1075_v23, %v948_v30 }
 0x13c   :  { %v969_v36 = vadd.f32 %v1076_v26, %v958_v32  ;;  %v959_v37 = vmul.f32 %v1075_v23, %v940_v33 }
 0x13d   :  { %v975_v38 = vmax.f32 %v971_v34, 0.0  ;;  %v972_v39 = vadd.f32 %v1076_v26, %v961_v35 }
 0x13e   :  { %v973_v40 = vmax.f32 %v969_v36, 0.0  ;;  %v970_v41 = vadd.f32 %v1076_v26, %v959_v37 }
 0x13f   :  { %979 = vst [vmem:[%s1634_s4 + $0x10] sm:$0xff] %v975_v38  ;;  %v976_v42 = vmax.f32 %v972_v39, 0.0 }
 0x140   :  { %977 = vst [vmem:[%s1634_s4] sm:$0xff] %v973_v40  ;;  %v974_v43 = vmax.f32 %v970_v41, 0.0 }
 0x141   :  { %980 = vst [vmem:[%s1634_s4 + $0x18] sm:$0xff] %v976_v42 }
 0x142   :  { %978 = vst [vmem:[%s1634_s4 + $0x8] sm:$0xff] %v974_v43 }

</bundles_post_ra>
